<compile_context>
chip_gen: v5e
topology: v5e:2x2
jax: 0.10.0
libtpu: 0.0.40
codegen_flags: <defaults>
</compile_context>

<pallas_src>
import functools
import math

import numpy as np

import jax
import jax.numpy as jnp
from jax.experimental import pallas as pl
from jax.experimental.pallas import tpu as pltpu


def _round_up(x, m):
    return (x + m - 1) // m * m


# ---------------------------------------------------------------------------
# Pallas kernel: matmul + bias (+ tanh-form GELU), f32 MXU accumulation
# ---------------------------------------------------------------------------
def _gelu_tanh(x):
    # tanh-form GELU: 0.5*x*(1 + tanh(sqrt(2/pi)*(x + 0.044715*x^3))).
    # jnp.tanh lowers to the EUP (separate bundle slot), so only the few muls/
    # adds hit the VALU.  Max deviation from torch's exact-erf GELU is ~3e-3,
    # below bf16 output resolution for the activation magnitudes here.
    c = math.sqrt(2.0 / math.pi)
    return 0.5 * x * (1.0 + jnp.tanh(c * (x + 0.044715 * (x * x * x))))


def _matmul_bias_act_kernel(x_ref, w_ref, b_ref, o_ref, *, apply_gelu):
    acc = jnp.dot(x_ref[...], w_ref[...], preferred_element_type=jnp.float32)
    acc = acc + b_ref[...].astype(jnp.float32)           # (1, N) broadcast
    if apply_gelu:
        acc = _gelu_tanh(acc)
    o_ref[...] = acc.astype(o_ref.dtype)


def matmul_bias_act(x, w, b, *, apply_gelu, out_dtype=jnp.float32, max_tile_m=512):
    """(M, K) @ (K, N) + b [+ GELU], tiled over M with a 1-D parallel grid.

    Weight / bias blocks are VMEM-resident across grid steps; activation rows
    stream through double-buffered (tile_m, K) blocks.  No M padding: the grid
    is cdiv(M, tile_m) and Pallas clamps the ragged boundary block.
    """
    M, K = x.shape
    K2, N = w.shape
    assert K == K2 and b.shape == (N,)

    if M <= max_tile_m:
        # Single full-extent block: exempt from the 8-sublane divisibility rule.
        tile_m = M
    else:
        # >= 2 grid steps so the "parallel" M axis shards across v7x's two
        # TensorCores; tile is a multiple of 8 sublanes, capped for VMEM.
        tile_m = min(max_tile_m, _round_up(pl.cdiv(M, 2), 8))
    grid = (pl.cdiv(M, tile_m),)

    kernel = functools.partial(_matmul_bias_act_kernel, apply_gelu=apply_gelu)
    out_itemsize = np.dtype(out_dtype).itemsize
    cost = pl.CostEstimate(
        flops=2 * M * K * N,
        transcendentals=(M * N) if apply_gelu else 0,     # one tanh per output
        bytes_accessed=(M * K * x.dtype.itemsize
                        + K * N * w.dtype.itemsize
                        + N * b.dtype.itemsize
                        + M * N * out_itemsize),
    )

    return pl.pallas_call(
        kernel,
        out_shape=jax.ShapeDtypeStruct((M, N), out_dtype),
        grid_spec=pltpu.PrefetchScalarGridSpec(
            num_scalar_prefetch=0,
            grid=grid,
            in_specs=[
                pl.BlockSpec((tile_m, K), lambda i: (i, 0)),   # streamed rows
                pl.BlockSpec((K, N), lambda i: (0, 0)),        # resident weight
                pl.BlockSpec((1, N), lambda i: (0, 0)),        # resident bias
            ],
            out_specs=pl.BlockSpec((tile_m, N), lambda i: (i, 0)),
        ),
        compiler_params=pltpu.CompilerParams(
            dimension_semantics=("parallel",),    # megacore sharding of M tiles
        ),
        cost_estimate=cost,
    )(x, w, b.reshape(1, N))


# ---------------------------------------------------------------------------
# Conv layer = im2col (XLA glue) + Pallas matmul kernel
# ---------------------------------------------------------------------------
def conv3x3(x_nhwc, wmat, b, *, stride, apply_gelu=True):
    """3x3 conv, padding=1.  x: (B,H,W,Cin), wmat: (9*Cin, Cout) pre-reshaped."""
    B, H, W, C = x_nhwc.shape
    K, Cout = wmat.shape
    assert K == 9 * C
    Ho = (H + 2 - 3) // stride + 1
    Wo = (W + 2 - 3) // stride + 1
    xp = jnp.pad(x_nhwc, ((0, 0), (1, 1), (1, 1), (0, 0)))

    # im2col: rows = output pixels, cols = (ky, kx, cin) taps — same flatten
    # order as the pre-reshaped (3,3,Cin,Cout) -> (9*Cin, Cout) weight.
    # No K padding: the kernel's LHS/weight blocks use the full K dim.
    cols = [
        xp[:, ky:ky + stride * Ho:stride, kx:kx + stride * Wo:stride, :]
        for ky in range(3) for kx in range(3)
    ]
    patches = jnp.concatenate(cols, axis=-1).reshape(B * Ho * Wo, K)

    out = matmul_bias_act(patches, wmat, b, apply_gelu=apply_gelu,
                          out_dtype=jnp.bfloat16)
    return out.reshape(B, Ho, Wo, Cout)


# ---------------------------------------------------------------------------
# Parameters (deterministic synthetic init, shapes match the PyTorch module)
# ---------------------------------------------------------------------------
def init_params(key, z_dim):
    nf = 32
    conv_shapes = [
        (3, 3, 1, nf),           # Conv2d(1, 32,  k=3, p=1, s=2)
        (3, 3, nf, nf),          # Conv2d(32, 32, k=3, p=1)
        (3, 3, nf, 2 * nf),      # Conv2d(32, 64, k=3, p=1, s=2)
        (3, 3, 2 * nf, 2 * nf),  # Conv2d(64, 64, k=3, p=1)
        (3, 3, 2 * nf, 2 * nf),  # Conv2d(64, 64, k=3, p=1, s=2)
    ]
    keys = jax.random.split(key, 2 * len(conv_shapes) + 2)
    params = {}
    for i, shp in enumerate(conv_shapes):
        params[f"w{i + 1}"] = 0.05 * jax.random.normal(keys[2 * i], shp, jnp.float32)
        params[f"b{i + 1}"] = 0.01 * jax.random.normal(keys[2 * i + 1], (shp[-1],), jnp.float32)
    # Linear(2 * 16 * num_filters = 1024, z_dim), stored in PyTorch NCHW-flatten order.
    params["wl"] = 0.05 * jax.random.normal(keys[-2], (2 * 16 * nf, z_dim), jnp.float32)
    params["bl"] = 0.01 * jax.random.normal(keys[-1], (z_dim,), jnp.float32)
    return params


def prepare_params(params):
    """One-time parameter prep (hoisted out of the jitted forward):
      * conv weights (3,3,Cin,Cout) -> (9*Cin, Cout) matmul layout
      * bf16 cast for layers 2-5 (conv1 stays f32: Cin=1, tiny)
      * Linear weight permuted from NCHW-flatten order to NHWC-flatten order
        so the forward never transposes the activation before nn.Flatten.
    """
    nf = 32
    prepped = {}
    for i in range(1, 6):
        w = params[f"w{i}"]                              # (3,3,Cin,Cout)
        wmat = w.reshape(-1, w.shape[-1])                # (9*Cin, Cout)
        prepped[f"w{i}"] = wmat if i == 1 else wmat.astype(jnp.bfloat16)
        prepped[f"b{i}"] = params[f"b{i}"]               # f32 bias
    # Final feature map is (B, 4, 4, 64) NHWC; PyTorch flattens NCHW (C,H,W).
    Cf, Hf, Wf = 2 * nf, 4, 4
    wl = (params["wl"].reshape(Cf, Hf, Wf, -1)
          .transpose(1, 2, 0, 3)
          .reshape(Hf * Wf * Cf, -1))
    prepped["wl"] = wl.astype(jnp.bfloat16)
    prepped["bl"] = params["bl"]
    return prepped


# ---------------------------------------------------------------------------
# Forward pass (mirrors nn.Sequential in ConvEncoder)
# ---------------------------------------------------------------------------
def conv_encoder_forward(prepped, x_nchw):
    # PyTorch NCHW -> internal NHWC (channels-last, lane-friendly).
    # conv1 runs f32 (tiny, Cin=1); all conv outputs are bf16, so layers 2-5
    # and the Linear use the MXU's native bf16 path with f32 accumulation.
    x = jnp.transpose(x_nchw, (0, 2, 3, 1)).astype(jnp.float32)
    x = conv3x3(x, prepped["w1"], prepped["b1"], stride=2)   # 28 -> 14
    x = conv3x3(x, prepped["w2"], prepped["b2"], stride=1)   # 14 -> 14
    x = conv3x3(x, prepped["w3"], prepped["b3"], stride=2)   # 14 -> 7
    x = conv3x3(x, prepped["w4"], prepped["b4"], stride=1)   # 7  -> 7
    x = conv3x3(x, prepped["w5"], prepped["b5"], stride=2)   # 7  -> 4

    # nn.Flatten() is defined on NCHW; the Linear weight was permuted once in
    # prepare_params so it consumes the NHWC-flattened features directly.
    B, Hf, Wf, Cf = x.shape
    feats = x.reshape(B, Hf * Wf * Cf)
    z = matmul_bias_act(feats, prepped["wl"], prepped["bl"],
                        apply_gelu=False, out_dtype=jnp.float32)
    return z  # (B, z_dim)


if __name__ == "__main__":
    z_dim = 20
    key = jax.random.PRNGKey(0)
    pkey, xkey = jax.random.split(key)
    params = init_params(pkey, z_dim)
    prepped = prepare_params(params)        # one-time weight layout/cast prep
    # The module's Linear(2*16*32 = 1024, z_dim) implies 1x28x28 inputs (MNIST-like).
    x = jax.random.normal(xkey, (2, 1, 28, 28), jnp.float32)

    z = jax.jit(conv_encoder_forward)(prepped, x)
    jax.block_until_ready(z)
    assert z.shape == (2, z_dim) and z.dtype == jnp.float32
    print("KERNEL_OK")
</pallas_src>

<mosaic_0001>
module attributes {stable_mosaic.version = 11 : i64} {
  func.func @_matmul_bias_act_kernel(%arg0: i32, %arg1: memref<392x9xf32, #tpu.memory_space<vmem>>, %arg2: memref<9x32xf32, #tpu.memory_space<vmem>>, %arg3: memref<1x32xf32, #tpu.memory_space<vmem>>, %arg4: memref<392x32xbf16, #tpu.memory_space<vmem>>) attributes {dimension_semantics = [#tpu.dimension_semantics<parallel>], iteration_bounds = array<i64: 1>, scalar_prefetch = 0 : i64, scratch_operands = 0 : i64, tpu.core_type = #tpu.core_type<tc>, window_params = [{transform_indices = @transform_0, window_bounds = array<i64: 392, 9>}, {pipeline_mode = #tpu.pipeline_mode<synchronous>, transform_indices = @transform_1, window_bounds = array<i64: 9, 32>}, {pipeline_mode = #tpu.pipeline_mode<synchronous>, transform_indices = @transform_2, window_bounds = array<i64: 1, 32>}, {transform_indices = @transform_3, window_bounds = array<i64: 392, 32>}]} {
    %c0 = arith.constant 0 : index
    %c0_0 = arith.constant 0 : index
    %0 = vector.load %arg1[%c0, %c0_0] : memref<392x9xf32, #tpu.memory_space<vmem>>, vector<392x9xf32>
    %c0_1 = arith.constant 0 : index
    %c0_2 = arith.constant 0 : index
    %1 = vector.load %arg2[%c0_1, %c0_2] : memref<9x32xf32, #tpu.memory_space<vmem>>, vector<9x32xf32>
    %cst = arith.constant dense<0.000000e+00> : vector<392x32xf32>
    %2 = tpu.matmul %0, %1, %cst {dimension_numbers = #tpu.dot_dimension_numbers<[1], [0], [0], [1], [0, 0, 1, 1], [], []>} : vector<392x9xf32>, vector<9x32xf32>, vector<392x32xf32> -> vector<392x32xf32>
    %c0_3 = arith.constant 0 : index
    %c0_4 = arith.constant 0 : index
    %3 = vector.load %arg3[%c0_3, %c0_4] : memref<1x32xf32, #tpu.memory_space<vmem>>, vector<1x32xf32>
    %4 = vector.broadcast %3 : vector<1x32xf32> to vector<392x32xf32>
    %5 = arith.addf %2, %4 : vector<392x32xf32>
    %cst_5 = arith.constant 5.000000e-01 : f32
    %6 = vector.broadcast %cst_5 : f32 to vector<392x32xf32>
    %7 = arith.mulf %6, %5 : vector<392x32xf32>
    %8 = arith.mulf %5, %5 : vector<392x32xf32>
    %9 = arith.mulf %8, %5 : vector<392x32xf32>
    %cst_6 = arith.constant 4.471500e-02 : f32
    %10 = vector.broadcast %cst_6 : f32 to vector<392x32xf32>
    %11 = arith.mulf %10, %9 : vector<392x32xf32>
    %12 = arith.addf %5, %11 : vector<392x32xf32>
    %cst_7 = arith.constant 0.797884583 : f32
    %13 = vector.broadcast %cst_7 : f32 to vector<392x32xf32>
    %14 = arith.mulf %13, %12 : vector<392x32xf32>
    %15 = math.tanh %14 : vector<392x32xf32>
    %cst_8 = arith.constant 1.000000e+00 : f32
    %16 = vector.broadcast %cst_8 : f32 to vector<392x32xf32>
    %17 = arith.addf %16, %15 : vector<392x32xf32>
    %18 = arith.mulf %7, %17 : vector<392x32xf32>
    %19 = arith.truncf %18 : vector<392x32xf32> to vector<392x32xbf16>
    %c0_9 = arith.constant 0 : index
    %c0_10 = arith.constant 0 : index
    %20 = vector.load %arg4[%c0_9, %c0_10] : memref<392x32xbf16, #tpu.memory_space<vmem>>, vector<392x32xbf16>
    tpu.vector_store %arg4[%c0_9, %c0_10], %19 {strides = array<i32>} : memref<392x32xbf16, #tpu.memory_space<vmem>>, vector<392x32xbf16>,
    return
  }
  func.func @transform_0(%arg0: i32) -> (i32, i32) {
    %c0_i32 = arith.constant 0 : i32
    %c0_i32_0 = arith.constant 0 : i32
    return %arg0, %c0_i32 : i32, i32
  }
  func.func @transform_1(%arg0: i32) -> (i32, i32) {
    %c0_i32 = arith.constant 0 : i32
    %c0_i32_0 = arith.constant 0 : i32
    %c0_i32_1 = arith.constant 0 : i32
    return %c0_i32, %c0_i32_0 : i32, i32
  }
  func.func @transform_2(%arg0: i32) -> (i32, i32) {
    %c0_i32 = arith.constant 0 : i32
    %c0_i32_0 = arith.constant 0 : i32
    %c0_i32_1 = arith.constant 0 : i32
    return %c0_i32, %c0_i32_0 : i32, i32
  }
  func.func @transform_3(%arg0: i32) -> (i32, i32) {
    %c0_i32 = arith.constant 0 : i32
    %c0_i32_0 = arith.constant 0 : i32
    return %arg0, %c0_i32 : i32, i32
  }
}

module attributes {stable_mosaic.version = 11 : i64} {
  func.func @_matmul_bias_act_kernel(%arg0: i32, %arg1: memref<392x288xbf16, #tpu.memory_space<vmem>>, %arg2: memref<288x32xbf16, #tpu.memory_space<vmem>>, %arg3: memref<1x32xf32, #tpu.memory_space<vmem>>, %arg4: memref<392x32xbf16, #tpu.memory_space<vmem>>) attributes {dimension_semantics = [#tpu.dimension_semantics<parallel>], iteration_bounds = array<i64: 1>, scalar_prefetch = 0 : i64, scratch_operands = 0 : i64, tpu.core_type = #tpu.core_type<tc>, window_params = [{transform_indices = @transform_0, window_bounds = array<i64: 392, 288>}, {pipeline_mode = #tpu.pipeline_mode<synchronous>, transform_indices = @transform_1, window_bounds = array<i64: 288, 32>}, {pipeline_mode = #tpu.pipeline_mode<synchronous>, transform_indices = @transform_2, window_bounds = array<i64: 1, 32>}, {transform_indices = @transform_3, window_bounds = array<i64: 392, 32>}]} {
    %c0 = arith.constant 0 : index
    %c0_0 = arith.constant 0 : index
    %0 = vector.load %arg1[%c0, %c0_0] : memref<392x288xbf16, #tpu.memory_space<vmem>>, vector<392x288xbf16>
    %c0_1 = arith.constant 0 : index
    %c0_2 = arith.constant 0 : index
    %1 = vector.load %arg2[%c0_1, %c0_2] : memref<288x32xbf16, #tpu.memory_space<vmem>>, vector<288x32xbf16>
    %cst = arith.constant dense<0.000000e+00> : vector<392x32xf32>
    %2 = tpu.matmul %0, %1, %cst {dimension_numbers = #tpu.dot_dimension_numbers<[1], [0], [0], [1], [0, 0, 1, 1], [], []>} : vector<392x288xbf16>, vector<288x32xbf16>, vector<392x32xf32> -> vector<392x32xf32>
    %c0_3 = arith.constant 0 : index
    %c0_4 = arith.constant 0 : index
    %3 = vector.load %arg3[%c0_3, %c0_4] : memref<1x32xf32, #tpu.memory_space<vmem>>, vector<1x32xf32>
    %4 = vector.broadcast %3 : vector<1x32xf32> to vector<392x32xf32>
    %5 = arith.addf %2, %4 : vector<392x32xf32>
    %cst_5 = arith.constant 5.000000e-01 : f32
    %6 = vector.broadcast %cst_5 : f32 to vector<392x32xf32>
    %7 = arith.mulf %6, %5 : vector<392x32xf32>
    %8 = arith.mulf %5, %5 : vector<392x32xf32>
    %9 = arith.mulf %8, %5 : vector<392x32xf32>
    %cst_6 = arith.constant 4.471500e-02 : f32
    %10 = vector.broadcast %cst_6 : f32 to vector<392x32xf32>
    %11 = arith.mulf %10, %9 : vector<392x32xf32>
    %12 = arith.addf %5, %11 : vector<392x32xf32>
    %cst_7 = arith.constant 0.797884583 : f32
    %13 = vector.broadcast %cst_7 : f32 to vector<392x32xf32>
    %14 = arith.mulf %13, %12 : vector<392x32xf32>
    %15 = math.tanh %14 : vector<392x32xf32>
    %cst_8 = arith.constant 1.000000e+00 : f32
    %16 = vector.broadcast %cst_8 : f32 to vector<392x32xf32>
    %17 = arith.addf %16, %15 : vector<392x32xf32>
    %18 = arith.mulf %7, %17 : vector<392x32xf32>
    %19 = arith.truncf %18 : vector<392x32xf32> to vector<392x32xbf16>
    %c0_9 = arith.constant 0 : index
    %c0_10 = arith.constant 0 : index
    %20 = vector.load %arg4[%c0_9, %c0_10] : memref<392x32xbf16, #tpu.memory_space<vmem>>, vector<392x32xbf16>
    tpu.vector_store %arg4[%c0_9, %c0_10], %19 {strides = array<i32>} : memref<392x32xbf16, #tpu.memory_space<vmem>>, vector<392x32xbf16>,
    return
  }
  func.func @transform_0(%arg0: i32) -> (i32, i32) {
    %c0_i32 = arith.constant 0 : i32
    %c0_i32_0 = arith.constant 0 : i32
    return %arg0, %c0_i32 : i32, i32
  }
  func.func @transform_1(%arg0: i32) -> (i32, i32) {
    %c0_i32 = arith.constant 0 : i32
    %c0_i32_0 = arith.constant 0 : i32
    %c0_i32_1 = arith.constant 0 : i32
    return %c0_i32, %c0_i32_0 : i32, i32
  }
  func.func @transform_2(%arg0: i32) -> (i32, i32) {
    %c0_i32 = arith.constant 0 : i32
    %c0_i32_0 = arith.constant 0 : i32
    %c0_i32_1 = arith.constant 0 : i32
    return %c0_i32, %c0_i32_0 : i32, i32
  }
  func.func @transform_3(%arg0: i32) -> (i32, i32) {
    %c0_i32 = arith.constant 0 : i32
    %c0_i32_0 = arith.constant 0 : i32
    return %arg0, %c0_i32 : i32, i32
  }
}

module attributes {stable_mosaic.version = 11 : i64} {
  func.func @_matmul_bias_act_kernel(%arg0: i32, %arg1: memref<98x288xbf16, #tpu.memory_space<vmem>>, %arg2: memref<288x64xbf16, #tpu.memory_space<vmem>>, %arg3: memref<1x64xf32, #tpu.memory_space<vmem>>, %arg4: memref<98x64xbf16, #tpu.memory_space<vmem>>) attributes {dimension_semantics = [#tpu.dimension_semantics<parallel>], iteration_bounds = array<i64: 1>, scalar_prefetch = 0 : i64, scratch_operands = 0 : i64, tpu.core_type = #tpu.core_type<tc>, window_params = [{transform_indices = @transform_0, window_bounds = array<i64: 98, 288>}, {pipeline_mode = #tpu.pipeline_mode<synchronous>, transform_indices = @transform_1, window_bounds = array<i64: 288, 64>}, {pipeline_mode = #tpu.pipeline_mode<synchronous>, transform_indices = @transform_2, window_bounds = array<i64: 1, 64>}, {transform_indices = @transform_3, window_bounds = array<i64: 98, 64>}]} {
    %c0 = arith.constant 0 : index
    %c0_0 = arith.constant 0 : index
    %0 = vector.load %arg1[%c0, %c0_0] : memref<98x288xbf16, #tpu.memory_space<vmem>>, vector<98x288xbf16>
    %c0_1 = arith.constant 0 : index
    %c0_2 = arith.constant 0 : index
    %1 = vector.load %arg2[%c0_1, %c0_2] : memref<288x64xbf16, #tpu.memory_space<vmem>>, vector<288x64xbf16>
    %cst = arith.constant dense<0.000000e+00> : vector<98x64xf32>
    %2 = tpu.matmul %0, %1, %cst {dimension_numbers = #tpu.dot_dimension_numbers<[1], [0], [0], [1], [0, 0, 1, 1], [], []>} : vector<98x288xbf16>, vector<288x64xbf16>, vector<98x64xf32> -> vector<98x64xf32>
    %c0_3 = arith.constant 0 : index
    %c0_4 = arith.constant 0 : index
    %3 = vector.load %arg3[%c0_3, %c0_4] : memref<1x64xf32, #tpu.memory_space<vmem>>, vector<1x64xf32>
    %4 = vector.broadcast %3 : vector<1x64xf32> to vector<98x64xf32>
    %5 = arith.addf %2, %4 : vector<98x64xf32>
    %cst_5 = arith.constant 5.000000e-01 : f32
    %6 = vector.broadcast %cst_5 : f32 to vector<98x64xf32>
    %7 = arith.mulf %6, %5 : vector<98x64xf32>
    %8 = arith.mulf %5, %5 : vector<98x64xf32>
    %9 = arith.mulf %8, %5 : vector<98x64xf32>
    %cst_6 = arith.constant 4.471500e-02 : f32
    %10 = vector.broadcast %cst_6 : f32 to vector<98x64xf32>
    %11 = arith.mulf %10, %9 : vector<98x64xf32>
    %12 = arith.addf %5, %11 : vector<98x64xf32>
    %cst_7 = arith.constant 0.797884583 : f32
    %13 = vector.broadcast %cst_7 : f32 to vector<98x64xf32>
    %14 = arith.mulf %13, %12 : vector<98x64xf32>
    %15 = math.tanh %14 : vector<98x64xf32>
    %cst_8 = arith.constant 1.000000e+00 : f32
    %16 = vector.broadcast %cst_8 : f32 to vector<98x64xf32>
    %17 = arith.addf %16, %15 : vector<98x64xf32>
    %18 = arith.mulf %7, %17 : vector<98x64xf32>
    %19 = arith.truncf %18 : vector<98x64xf32> to vector<98x64xbf16>
    %c0_9 = arith.constant 0 : index
    %c0_10 = arith.constant 0 : index
    %20 = vector.load %arg4[%c0_9, %c0_10] : memref<98x64xbf16, #tpu.memory_space<vmem>>, vector<98x64xbf16>
    tpu.vector_store %arg4[%c0_9, %c0_10], %19 {strides = array<i32>} : memref<98x64xbf16, #tpu.memory_space<vmem>>, vector<98x64xbf16>,
    return
  }
  func.func @transform_0(%arg0: i32) -> (i32, i32) {
    %c0_i32 = arith.constant 0 : i32
    %c0_i32_0 = arith.constant 0 : i32
    return %arg0, %c0_i32 : i32, i32
  }
  func.func @transform_1(%arg0: i32) -> (i32, i32) {
    %c0_i32 = arith.constant 0 : i32
    %c0_i32_0 = arith.constant 0 : i32
    %c0_i32_1 = arith.constant 0 : i32
    return %c0_i32, %c0_i32_0 : i32, i32
  }
  func.func @transform_2(%arg0: i32) -> (i32, i32) {
    %c0_i32 = arith.constant 0 : i32
    %c0_i32_0 = arith.constant 0 : i32
    %c0_i32_1 = arith.constant 0 : i32
    return %c0_i32, %c0_i32_0 : i32, i32
  }
  func.func @transform_3(%arg0: i32) -> (i32, i32) {
    %c0_i32 = arith.constant 0 : i32
    %c0_i32_0 = arith.constant 0 : i32
    return %arg0, %c0_i32 : i32, i32
  }
}

module attributes {stable_mosaic.version = 11 : i64} {
  func.func @_matmul_bias_act_kernel(%arg0: i32, %arg1: memref<98x576xbf16, #tpu.memory_space<vmem>>, %arg2: memref<576x64xbf16, #tpu.memory_space<vmem>>, %arg3: memref<1x64xf32, #tpu.memory_space<vmem>>, %arg4: memref<98x64xbf16, #tpu.memory_space<vmem>>) attributes {dimension_semantics = [#tpu.dimension_semantics<parallel>], iteration_bounds = array<i64: 1>, scalar_prefetch = 0 : i64, scratch_operands = 0 : i64, tpu.core_type = #tpu.core_type<tc>, window_params = [{transform_indices = @transform_0, window_bounds = array<i64: 98, 576>}, {pipeline_mode = #tpu.pipeline_mode<synchronous>, transform_indices = @transform_1, window_bounds = array<i64: 576, 64>}, {pipeline_mode = #tpu.pipeline_mode<synchronous>, transform_indices = @transform_2, window_bounds = array<i64: 1, 64>}, {transform_indices = @transform_3, window_bounds = array<i64: 98, 64>}]} {
    %c0 = arith.constant 0 : index
    %c0_0 = arith.constant 0 : index
    %0 = vector.load %arg1[%c0, %c0_0] : memref<98x576xbf16, #tpu.memory_space<vmem>>, vector<98x576xbf16>
    %c0_1 = arith.constant 0 : index
    %c0_2 = arith.constant 0 : index
    %1 = vector.load %arg2[%c0_1, %c0_2] : memref<576x64xbf16, #tpu.memory_space<vmem>>, vector<576x64xbf16>
    %cst = arith.constant dense<0.000000e+00> : vector<98x64xf32>
    %2 = tpu.matmul %0, %1, %cst {dimension_numbers = #tpu.dot_dimension_numbers<[1], [0], [0], [1], [0, 0, 1, 1], [], []>} : vector<98x576xbf16>, vector<576x64xbf16>, vector<98x64xf32> -> vector<98x64xf32>
    %c0_3 = arith.constant 0 : index
    %c0_4 = arith.constant 0 : index
    %3 = vector.load %arg3[%c0_3, %c0_4] : memref<1x64xf32, #tpu.memory_space<vmem>>, vector<1x64xf32>
    %4 = vector.broadcast %3 : vector<1x64xf32> to vector<98x64xf32>
    %5 = arith.addf %2, %4 : vector<98x64xf32>
    %cst_5 = arith.constant 5.000000e-01 : f32
    %6 = vector.broadcast %cst_5 : f32 to vector<98x64xf32>
    %7 = arith.mulf %6, %5 : vector<98x64xf32>
    %8 = arith.mulf %5, %5 : vector<98x64xf32>
    %9 = arith.mulf %8, %5 : vector<98x64xf32>
    %cst_6 = arith.constant 4.471500e-02 : f32
    %10 = vector.broadcast %cst_6 : f32 to vector<98x64xf32>
    %11 = arith.mulf %10, %9 : vector<98x64xf32>
    %12 = arith.addf %5, %11 : vector<98x64xf32>
    %cst_7 = arith.constant 0.797884583 : f32
    %13 = vector.broadcast %cst_7 : f32 to vector<98x64xf32>
    %14 = arith.mulf %13, %12 : vector<98x64xf32>
    %15 = math.tanh %14 : vector<98x64xf32>
    %cst_8 = arith.constant 1.000000e+00 : f32
    %16 = vector.broadcast %cst_8 : f32 to vector<98x64xf32>
    %17 = arith.addf %16, %15 : vector<98x64xf32>
    %18 = arith.mulf %7, %17 : vector<98x64xf32>
    %19 = arith.truncf %18 : vector<98x64xf32> to vector<98x64xbf16>
    %c0_9 = arith.constant 0 : index
    %c0_10 = arith.constant 0 : index
    %20 = vector.load %arg4[%c0_9, %c0_10] : memref<98x64xbf16, #tpu.memory_space<vmem>>, vector<98x64xbf16>
    tpu.vector_store %arg4[%c0_9, %c0_10], %19 {strides = array<i32>} : memref<98x64xbf16, #tpu.memory_space<vmem>>, vector<98x64xbf16>,
    return
  }
  func.func @transform_0(%arg0: i32) -> (i32, i32) {
    %c0_i32 = arith.constant 0 : i32
    %c0_i32_0 = arith.constant 0 : i32
    return %arg0, %c0_i32 : i32, i32
  }
  func.func @transform_1(%arg0: i32) -> (i32, i32) {
    %c0_i32 = arith.constant 0 : i32
    %c0_i32_0 = arith.constant 0 : i32
    %c0_i32_1 = arith.constant 0 : i32
    return %c0_i32, %c0_i32_0 : i32, i32
  }
  func.func @transform_2(%arg0: i32) -> (i32, i32) {
    %c0_i32 = arith.constant 0 : i32
    %c0_i32_0 = arith.constant 0 : i32
    %c0_i32_1 = arith.constant 0 : i32
    return %c0_i32, %c0_i32_0 : i32, i32
  }
  func.func @transform_3(%arg0: i32) -> (i32, i32) {
    %c0_i32 = arith.constant 0 : i32
    %c0_i32_0 = arith.constant 0 : i32
    return %arg0, %c0_i32 : i32, i32
  }
}

module attributes {stable_mosaic.version = 11 : i64} {
  func.func @_matmul_bias_act_kernel(%arg0: i32, %arg1: memref<32x576xbf16, #tpu.memory_space<vmem>>, %arg2: memref<576x64xbf16, #tpu.memory_space<vmem>>, %arg3: memref<1x64xf32, #tpu.memory_space<vmem>>, %arg4: memref<32x64xbf16, #tpu.memory_space<vmem>>) attributes {dimension_semantics = [#tpu.dimension_semantics<parallel>], iteration_bounds = array<i64: 1>, scalar_prefetch = 0 : i64, scratch_operands = 0 : i64, tpu.core_type = #tpu.core_type<tc>, window_params = [{transform_indices = @transform_0, window_bounds = array<i64: 32, 576>}, {pipeline_mode = #tpu.pipeline_mode<synchronous>, transform_indices = @transform_1, window_bounds = array<i64: 576, 64>}, {pipeline_mode = #tpu.pipeline_mode<synchronous>, transform_indices = @transform_2, window_bounds = array<i64: 1, 64>}, {transform_indices = @transform_3, window_bounds = array<i64: 32, 64>}]} {
    %c0 = arith.constant 0 : index
    %c0_0 = arith.constant 0 : index
    %0 = vector.load %arg1[%c0, %c0_0] : memref<32x576xbf16, #tpu.memory_space<vmem>>, vector<32x576xbf16>
    %c0_1 = arith.constant 0 : index
    %c0_2 = arith.constant 0 : index
    %1 = vector.load %arg2[%c0_1, %c0_2] : memref<576x64xbf16, #tpu.memory_space<vmem>>, vector<576x64xbf16>
    %cst = arith.constant dense<0.000000e+00> : vector<32x64xf32>
    %2 = tpu.matmul %0, %1, %cst {dimension_numbers = #tpu.dot_dimension_numbers<[1], [0], [0], [1], [0, 0, 1, 1], [], []>} : vector<32x576xbf16>, vector<576x64xbf16>, vector<32x64xf32> -> vector<32x64xf32>
    %c0_3 = arith.constant 0 : index
    %c0_4 = arith.constant 0 : index
    %3 = vector.load %arg3[%c0_3, %c0_4] : memref<1x64xf32, #tpu.memory_space<vmem>>, vector<1x64xf32>
    %4 = vector.broadcast %3 : vector<1x64xf32> to vector<32x64xf32>
    %5 = arith.addf %2, %4 : vector<32x64xf32>
    %cst_5 = arith.constant 5.000000e-01 : f32
    %6 = vector.broadcast %cst_5 : f32 to vector<32x64xf32>
    %7 = arith.mulf %6, %5 : vector<32x64xf32>
    %8 = arith.mulf %5, %5 : vector<32x64xf32>
    %9 = arith.mulf %8, %5 : vector<32x64xf32>
    %cst_6 = arith.constant 4.471500e-02 : f32
    %10 = vector.broadcast %cst_6 : f32 to vector<32x64xf32>
    %11 = arith.mulf %10, %9 : vector<32x64xf32>
    %12 = arith.addf %5, %11 : vector<32x64xf32>
    %cst_7 = arith.constant 0.797884583 : f32
    %13 = vector.broadcast %cst_7 : f32 to vector<32x64xf32>
    %14 = arith.mulf %13, %12 : vector<32x64xf32>
    %15 = math.tanh %14 : vector<32x64xf32>
    %cst_8 = arith.constant 1.000000e+00 : f32
    %16 = vector.broadcast %cst_8 : f32 to vector<32x64xf32>
    %17 = arith.addf %16, %15 : vector<32x64xf32>
    %18 = arith.mulf %7, %17 : vector<32x64xf32>
    %19 = arith.truncf %18 : vector<32x64xf32> to vector<32x64xbf16>
    %c0_9 = arith.constant 0 : index
    %c0_10 = arith.constant 0 : index
    %20 = vector.load %arg4[%c0_9, %c0_10] : memref<32x64xbf16, #tpu.memory_space<vmem>>, vector<32x64xbf16>
    tpu.vector_store %arg4[%c0_9, %c0_10], %19 {strides = array<i32>} : memref<32x64xbf16, #tpu.memory_space<vmem>>, vector<32x64xbf16>,
    return
  }
  func.func @transform_0(%arg0: i32) -> (i32, i32) {
    %c0_i32 = arith.constant 0 : i32
    %c0_i32_0 = arith.constant 0 : i32
    return %arg0, %c0_i32 : i32, i32
  }
  func.func @transform_1(%arg0: i32) -> (i32, i32) {
    %c0_i32 = arith.constant 0 : i32
    %c0_i32_0 = arith.constant 0 : i32
    %c0_i32_1 = arith.constant 0 : i32
    return %c0_i32, %c0_i32_0 : i32, i32
  }
  func.func @transform_2(%arg0: i32) -> (i32, i32) {
    %c0_i32 = arith.constant 0 : i32
    %c0_i32_0 = arith.constant 0 : i32
    %c0_i32_1 = arith.constant 0 : i32
    return %c0_i32, %c0_i32_0 : i32, i32
  }
  func.func @transform_3(%arg0: i32) -> (i32, i32) {
    %c0_i32 = arith.constant 0 : i32
    %c0_i32_0 = arith.constant 0 : i32
    return %arg0, %c0_i32 : i32, i32
  }
}

module attributes {stable_mosaic.version = 11 : i64} {
  func.func @_matmul_bias_act_kernel(%arg0: i32, %arg1: memref<2x1024xbf16, #tpu.memory_space<vmem>>, %arg2: memref<1024x20xbf16, #tpu.memory_space<vmem>>, %arg3: memref<1x20xf32, #tpu.memory_space<vmem>>, %arg4: memref<2x20xf32, #tpu.memory_space<vmem>>) attributes {dimension_semantics = [#tpu.dimension_semantics<parallel>], iteration_bounds = array<i64: 1>, scalar_prefetch = 0 : i64, scratch_operands = 0 : i64, tpu.core_type = #tpu.core_type<tc>, window_params = [{transform_indices = @transform_0, window_bounds = array<i64: 2, 1024>}, {pipeline_mode = #tpu.pipeline_mode<synchronous>, transform_indices = @transform_1, window_bounds = array<i64: 1024, 20>}, {pipeline_mode = #tpu.pipeline_mode<synchronous>, transform_indices = @transform_2, window_bounds = array<i64: 1, 20>}, {transform_indices = @transform_3, window_bounds = array<i64: 2, 20>}]} {
    %c0 = arith.constant 0 : index
    %c0_0 = arith.constant 0 : index
    %0 = vector.load %arg1[%c0, %c0_0] : memref<2x1024xbf16, #tpu.memory_space<vmem>>, vector<2x1024xbf16>
    %c0_1 = arith.constant 0 : index
    %c0_2 = arith.constant 0 : index
    %1 = vector.load %arg2[%c0_1, %c0_2] : memref<1024x20xbf16, #tpu.memory_space<vmem>>, vector<1024x20xbf16>
    %cst = arith.constant dense<0.000000e+00> : vector<2x20xf32>
    %2 = tpu.matmul %0, %1, %cst {dimension_numbers = #tpu.dot_dimension_numbers<[1], [0], [0], [1], [0, 0, 1, 1], [], []>} : vector<2x1024xbf16>, vector<1024x20xbf16>, vector<2x20xf32> -> vector<2x20xf32>
    %c0_3 = arith.constant 0 : index
    %c0_4 = arith.constant 0 : index
    %3 = vector.load %arg3[%c0_3, %c0_4] : memref<1x20xf32, #tpu.memory_space<vmem>>, vector<1x20xf32>
    %4 = vector.broadcast %3 : vector<1x20xf32> to vector<2x20xf32>
    %5 = arith.addf %2, %4 : vector<2x20xf32>
    %c0_5 = arith.constant 0 : index
    %c0_6 = arith.constant 0 : index
    %6 = vector.load %arg4[%c0_5, %c0_6] : memref<2x20xf32, #tpu.memory_space<vmem>>, vector<2x20xf32>
    tpu.vector_store %arg4[%c0_5, %c0_6], %5 {strides = array<i32>} : memref<2x20xf32, #tpu.memory_space<vmem>>, vector<2x20xf32>,
    return
  }
  func.func @transform_0(%arg0: i32) -> (i32, i32) {
    %c0_i32 = arith.constant 0 : i32
    %c0_i32_0 = arith.constant 0 : i32
    return %arg0, %c0_i32 : i32, i32
  }
  func.func @transform_1(%arg0: i32) -> (i32, i32) {
    %c0_i32 = arith.constant 0 : i32
    %c0_i32_0 = arith.constant 0 : i32
    %c0_i32_1 = arith.constant 0 : i32
    return %c0_i32, %c0_i32_0 : i32, i32
  }
  func.func @transform_2(%arg0: i32) -> (i32, i32) {
    %c0_i32 = arith.constant 0 : i32
    %c0_i32_0 = arith.constant 0 : i32
    %c0_i32_1 = arith.constant 0 : i32
    return %c0_i32, %c0_i32_0 : i32, i32
  }
  func.func @transform_3(%arg0: i32) -> (i32, i32) {
    %c0_i32 = arith.constant 0 : i32
    %c0_i32_0 = arith.constant 0 : i32
    return %arg0, %c0_i32 : i32, i32
  }
}

</mosaic_0001>

<bundles_post_ra>
// kernel: conv_encoder_forward.6
= control target key start
LH: loop header
LB: loop body
LE: loop exit
PB: predicated region body
PF: predicated region fallthrough
CT: control target
= control target key end

     0   :  { %vm217_vm0 = vcmask 1040384   ;;  %vm69_vm1 = vcmask 72704   ;;  %vm875_vm2 = vcmask 257024   ;;  %s1863_s1 = inlined_call_operand.vmem [shape: f32[9,32], index: 1, kind: input, shape index: {}]   ;;  %s1864_s0 = inlined_call_operand.vmem [shape: f32[392,9], index: 0, kind: input, shape index: {}]   ;;  %s1865_s2 = inlined_call_operand.vmem [shape: f32[1,32], index: 2, kind: input, shape index: {}]   ;;  %s1866_s3 = inlined_call_operand.vmem [shape: bf16[392,32], index: 3, kind: output, shape index: {}]  }
   0x1   :  { %v64_v0 = vld [vmem:[%s1863_s1 + $0x8] sm:$0x1]  ;;  %v63_v1 = vld [vmem:[%s1863_s1] sm:$0xff]  ;;  %v52_v5 = vld [vmem:[%s1864_s0 + $0x130] sm:$0xff] }
   0x2   :  { %929 = vmatpush.msk.msra.mxu0 %vm217_vm0, %v64_v0  ;;  %979 = vmatpush.msk.msra.mxu1 %vm217_vm0, %v64_v0  ;;  %v14_v2 = vld [vmem:[%s1864_s0] sm:$0xff]  ;;  %v39_v4 = vld [vmem:[%s1864_s0 + $0xc8] sm:$0xff]  ;;  %v40_v8 = vld [vmem:[%s1864_s0 + $0xd0] sm:$0xff] }
   0x3   :  { %980 = vmatpush.msk.msra.mxu2 %vm217_vm0, %v64_v0  ;;  %981 = vmatpush.msk.msra.mxu3 %vm217_vm0, %v64_v0  ;;  %v26_v3 = vld [vmem:[%s1864_s0 + $0x60] sm:$0xff]  ;;  %v15_v6 = vld [vmem:[%s1864_s0 + $0x8] sm:$0xff]  ;;  %v53_v9 = vld [vmem:[%s1864_s0 + $0x138] sm:$0xff] }
   0x4   :  { %236 = vmatpush.msra.mxu0 %v63_v1  ;;  %982 = vmatpush.msra.mxu1 %v63_v1  ;;  %v27_v7 = vld [vmem:[%s1864_s0 + $0x68] sm:$0xff]  ;;  %v16_v10 = vld [vmem:[%s1864_s0 + $0x10] sm:$0xff]  ;;  %v41_v12 = vld [vmem:[%s1864_s0 + $0xd8] sm:$0xff] }
   0x5   :  { %983 = vmatpush.msra.mxu2 %v63_v1  ;;  %984 = vmatpush.msra.mxu3 %v63_v1  ;;  %v28_v11 = vld [vmem:[%s1864_s0 + $0x70] sm:$0xff]  ;;  %v54_v13 = vld [vmem:[%s1864_s0 + $0x140] sm:$0xff]  ;;  %v17_v14 = vld [vmem:[%s1864_s0 + $0x18] sm:$0xff] }
   0x6   :  { %930 = vmatmul.msk.f32.vlgmr.msra.gmra.mxu0 %vm69_vm1, %v14_v2  ;;  %942 = vmatmul.msk.f32.vlgmr.msra.gmra.mxu1 %vm69_vm1, %v26_v3  ;;  %v29_v15 = vld [vmem:[%s1864_s0 + $0x78] sm:$0xff]  ;;  %v42_v16 = vld [vmem:[%s1864_s0 + $0xe0] sm:$0xff]  ;;  %v55_v17 = vld [vmem:[%s1864_s0 + $0x148] sm:$0xff] }
   0x7   :  { %955 = vmatmul.msk.f32.vlgmr.msra.gmra.mxu2 %vm69_vm1, %v39_v4  ;;  %968 = vmatmul.msk.f32.vlgmr.msra.gmra.mxu3 %vm69_vm1, %v52_v5  ;;  %v18_v18 = vld [vmem:[%s1864_s0 + $0x20] sm:$0xff]  ;;  %v43_v20 = vld [vmem:[%s1864_s0 + $0xe8] sm:$0xff]  ;;  %v56_v21 = vld [vmem:[%s1864_s0 + $0x150] sm:$0xff] }
   0x8   :  { %v30_v19 = vld [vmem:[%s1864_s0 + $0x80] sm:$0xff]  ;;  %v19_v22 = vld [vmem:[%s1864_s0 + $0x28] sm:$0xff]  ;;  %v44_v24 = vld [vmem:[%s1864_s0 + $0xf0] sm:$0xff] }
   0x9   :  { %v31_v23 = vld [vmem:[%s1864_s0 + $0x88] sm:$0xff]  ;;  %v57_v25 = vld [vmem:[%s1864_s0 + $0x158] sm:$0xff]  ;;  %v20_v26 = vld [vmem:[%s1864_s0 + $0x30] sm:$0xff] }
   0xa   :  { %v32_v27 = vld [vmem:[%s1864_s0 + $0x90] sm:$0xff]  ;;  %v45_v28 = vld [vmem:[%s1864_s0 + $0xf8] sm:$0xff]  ;;  %v58_v29 = vld [vmem:[%s1864_s0 + $0x160] sm:$0xff] }
   0xb   :  { %v21_v30 = vld [vmem:[%s1864_s0 + $0x38] sm:$0xff]  ;;  %v46_v32 = vld [vmem:[%s1864_s0 + $0x100] sm:$0xff]  ;;  %v59_v33 = vld [vmem:[%s1864_s0 + $0x168] sm:$0xff] }
   0xc   :  { %v33_v31 = vld [vmem:[%s1864_s0 + $0x98] sm:$0xff]  ;;  %v22_v34 = vld [vmem:[%s1864_s0 + $0x40] sm:$0xff]  ;;  %v47_v36 = vld [vmem:[%s1864_s0 + $0x108] sm:$0xff] }
   0xd   :  { %v34_v35 = vld [vmem:[%s1864_s0 + $0xa0] sm:$0xff]  ;;  %v60_v37 = vld [vmem:[%s1864_s0 + $0x170] sm:$0xff]  ;;  %v23_v38 = vld [vmem:[%s1864_s0 + $0x48] sm:$0xff] }
   0xe   :  { %931 = vmatmul.msk.f32.gmra.mxu0 %vm69_vm1, %v15_v6  ;;  %943 = vmatmul.msk.f32.gmra.mxu1 %vm69_vm1, %v27_v7  ;;  %v35_v39 = vld [vmem:[%s1864_s0 + $0xa8] sm:$0xff]  ;;  %v48_v40 = vld [vmem:[%s1864_s0 + $0x110] sm:$0xff]  ;;  %v61_v41 = vld [vmem:[%s1864_s0 + $0x178] sm:$0xff] }
   0xf   :  { %956 = vmatmul.msk.f32.gmra.mxu2 %vm69_vm1, %v40_v8  ;;  %969 = vmatmul.msk.f32.gmra.mxu3 %vm69_vm1, %v53_v9  ;;  %v24_v42 = vld [vmem:[%s1864_s0 + $0x50] sm:$0xff]  ;;  %v49_v44 = vld [vmem:[%s1864_s0 + $0x118] sm:$0xff]  ;;  %v62_v45 = vld [vmem:[%s1864_s0 + $0x180] sm:$0xff] }
  0x10   :  { %v36_v43 = vld [vmem:[%s1864_s0 + $0xb0] sm:$0xff]  ;;  %v25_v46 = vld [vmem:[%s1864_s0 + $0x58] sm:$0xff]  ;;  %v50_v48 = vld [vmem:[%s1864_s0 + $0x120] sm:$0xff] }
  0x11   :  { %v37_v47 = vld [vmem:[%s1864_s0 + $0xb8] sm:$0xff]  ;;  %v38_v49 = vld [vmem:[%s1864_s0 + $0xc0] sm:$0xff]  ;;  %v51_v50 = vld [vmem:[%s1864_s0 + $0x128] sm:$0xff] }
  0x12   :  { %v1310_v51 = vld [vmem:[%s1865_s2] ss:$0 sm:$0xff] }
  0x16   :  { %932 = vmatmul.msk.f32.gmra.mxu0 %vm69_vm1, %v16_v10  ;;  %944 = vmatmul.msk.f32.gmra.mxu1 %vm69_vm1, %v28_v11 }
  0x17   :  { %957 = vmatmul.msk.f32.gmra.mxu2 %vm69_vm1, %v41_v12  ;;  %970 = vmatmul.msk.f32.gmra.mxu3 %vm69_vm1, %v54_v13 }
  0x1e   :  { %933 = vmatmul.msk.f32.gmra.mxu0 %vm69_vm1, %v17_v14  ;;  %945 = vmatmul.msk.f32.gmra.mxu1 %vm69_vm1, %v29_v15 }
  0x1f   :  { %958 = vmatmul.msk.f32.gmra.mxu2 %vm69_vm1, %v42_v16  ;;  %971 = vmatmul.msk.f32.gmra.mxu3 %vm69_vm1, %v55_v17 }
  0x26   :  { %934 = vmatmul.msk.f32.gmra.mxu0 %vm69_vm1, %v18_v18  ;;  %946 = vmatmul.msk.f32.gmra.mxu1 %vm69_vm1, %v30_v19 }
  0x27   :  { %959 = vmatmul.msk.f32.gmra.mxu2 %vm69_vm1, %v43_v20  ;;  %972 = vmatmul.msk.f32.gmra.mxu3 %vm69_vm1, %v56_v21 }
  0x2e   :  { %935 = vmatmul.msk.f32.gmra.mxu0 %vm69_vm1, %v19_v22  ;;  %947 = vmatmul.msk.f32.gmra.mxu1 %vm69_vm1, %v31_v23 }
  0x2f   :  { %960 = vmatmul.msk.f32.gmra.mxu2 %vm69_vm1, %v44_v24  ;;  %973 = vmatmul.msk.f32.gmra.mxu3 %vm69_vm1, %v57_v25 }
  0x36   :  { %936 = vmatmul.msk.f32.gmra.mxu0 %vm69_vm1, %v20_v26  ;;  %948 = vmatmul.msk.f32.gmra.mxu1 %vm69_vm1, %v32_v27 }
  0x37   :  { %961 = vmatmul.msk.f32.gmra.mxu2 %vm69_vm1, %v45_v28  ;;  %974 = vmatmul.msk.f32.gmra.mxu3 %vm69_vm1, %v58_v29 }
  0x3e   :  { %937 = vmatmul.msk.f32.gmra.mxu0 %vm69_vm1, %v21_v30  ;;  %949 = vmatmul.msk.f32.gmra.mxu1 %vm69_vm1, %v33_v31 }
  0x3f   :  { %962 = vmatmul.msk.f32.gmra.mxu2 %vm69_vm1, %v46_v32  ;;  %975 = vmatmul.msk.f32.gmra.mxu3 %vm69_vm1, %v59_v33 }
  0x46   :  { %938 = vmatmul.msk.f32.gmra.mxu0 %vm69_vm1, %v22_v34  ;;  %950 = vmatmul.msk.f32.gmra.mxu1 %vm69_vm1, %v34_v35 }
  0x47   :  { %963 = vmatmul.msk.f32.gmra.mxu2 %vm69_vm1, %v47_v36  ;;  %976 = vmatmul.msk.f32.gmra.mxu3 %vm69_vm1, %v60_v37 }
  0x4e   :  { %939 = vmatmul.msk.f32.gmra.mxu0 %vm69_vm1, %v23_v38  ;;  %951 = vmatmul.msk.f32.gmra.mxu1 %vm69_vm1, %v35_v39 }
  0x4f   :  { %964 = vmatmul.msk.f32.gmra.mxu2 %vm69_vm1, %v48_v40  ;;  %977 = vmatmul.msk.f32.gmra.mxu3 %vm69_vm1, %v61_v41 }
  0x56   :  { %940 = vmatmul.msk.f32.gmra.mxu0 %vm69_vm1, %v24_v42  ;;  %952 = vmatmul.msk.f32.gmra.mxu1 %vm69_vm1, %v36_v43 }
  0x57   :  { %965 = vmatmul.msk.f32.gmra.mxu2 %vm69_vm1, %v49_v44  ;;  %978 = vmatmul.msk.f32.gmra.mxu3 %vm69_vm1, %v62_v45 }
  0x5e   :  { %941 = vmatmul.msk.f32.gmra.mxu0 %vm69_vm1, %v25_v46  ;;  %953 = vmatmul.msk.f32.gmra.mxu1 %vm69_vm1, %v37_v47 }
  0x5f   :  { %966 = vmatmul.msk.f32.gmra.mxu2 %vm69_vm1, %v50_v48 }
  0x66   :  { %954 = vmatmul.msk.f32.gmra.mxu1 %vm69_vm1, %v38_v49 }
  0x67   :  { %967 = vmatmul.msk.f32.gmra.mxu2 %vm69_vm1, %v51_v50 }
  0x83   :  { %v238_v52 = vpop.f32.mrf.mxu0  ;;  %v274_v53 = vpop.f32.mrf.mxu1 }
  0x84   :  { %v239_v54 = vadd.f32 %v1310_v51, %v238_v52  ;;  %v275_v55 = vadd.f32 %v1310_v51, %v274_v53 }
  0x86   :  { %v434_v56 = vmul.f32 %v239_v54, %v239_v54  ;;  %v446_v57 = vmul.f32 %v275_v55, %v275_v55  ;;  %v385_v20 = vmul.f32 0.5, %v239_v54  ;;  %v397_v29 = vmul.f32 0.5, %v275_v55 }
  0x88   :  { %v483_v58 = vmul.f32 %v434_v56, %v239_v54  ;;  %v495_v59 = vmul.f32 %v446_v57, %v275_v55 }
  0x8a   :  { %v532_v60 = vmul.f32 0.044715, %v483_v58  ;;  %v544_v61 = vmul.f32 0.044715, %v495_v59  ;;  %v313_v62 = vpop.f32.mrf.mxu2  ;;  %v352_v63 = vpop.f32.mrf.mxu3 }
  0x8b   :  { %v314_v0 = vadd.f32 %v1310_v51, %v313_v62  ;;  %v353_v1 = vadd.f32 %v1310_v51, %v352_v63  ;;  %v241_v2 = vpop.f32.mrf.mxu0  ;;  %v277_v3 = vpop.f32.mrf.mxu1 }
  0x8c   :  { %v581_v4 = vadd.f32 %v532_v60, %v239_v54  ;;  %v593_v5 = vadd.f32 %v544_v61, %v275_v55  ;;  %v242_v6 = vadd.f32 %v1310_v51, %v241_v2  ;;  %v1318_v7 = vadd.f32 %v1310_v51, %v277_v3 }
  0x8d   :  { %v459_v8 = vmul.f32 %v314_v0, %v314_v0  ;;  %v472_v9 = vmul.f32 %v353_v1, %v353_v1  ;;  %v410_v30 = vmul.f32 0.5, %v314_v0  ;;  %v423_v39 = vmul.f32 0.5, %v353_v1 }
  0x8e   :  { %v630_v10 = vmul.f32 0.7978846, %v581_v4  ;;  %v642_v11 = vmul.f32 0.7978846, %v593_v5  ;;  %v435_v12 = vmul.f32 %v242_v6, %v242_v6  ;;  %v447_v15 = vmul.f32 %v1318_v7, %v1318_v7 }
  0x8f   :  { %v508_v13 = vmul.f32 %v459_v8, %v314_v0  ;;  %v521_v14 = vmul.f32 %v472_v9, %v353_v1  ;;  %v386_v52 = vmul.f32 0.5, %v242_v6  ;;  %v398_v4 = vmul.f32 0.5, %v1318_v7 }
  0x90   :  { %986 = vtanh.f32 %v630_v10  ;;  %v484_v16 = vmul.f32 %v435_v12, %v242_v6  ;;  %v496_v19 = vmul.f32 %v447_v15, %v1318_v7 }
  0x91   :  { %988 = vtanh.f32 %v642_v11  ;;  %v557_v17 = vmul.f32 0.044715, %v508_v13  ;;  %v570_v18 = vmul.f32 0.044715, %v521_v14 }
  0x92   :  { %v533_v21 = vmul.f32 0.044715, %v484_v16  ;;  %v316_v22 = vpop.f32.mrf.mxu2  ;;  %v355_v23 = vpop.f32.mrf.mxu3  ;;  %v545_v26 = vmul.f32 0.044715, %v496_v19 }
  0x93   :  { %v606_v24 = vadd.f32 %v557_v17, %v314_v0  ;;  %v619_v25 = vadd.f32 %v570_v18, %v353_v1  ;;  %v317_v27 = vadd.f32 %v1310_v51, %v316_v22  ;;  %v244_v28 = vpop.f32.mrf.mxu0  ;;  %v1325_v32 = vadd.f32 %v1310_v51, %v355_v23  ;;  %v280_v33 = vpop.f32.mrf.mxu1 }
  0x94   :  { %v582_v31 = vadd.f32 %v533_v21, %v242_v6  ;;  %v594_v36 = vadd.f32 %v545_v26, %v1318_v7  ;;  %v1329_v37 = vadd.f32 %v1310_v51, %v244_v28  ;;  %v1334_v46 = vadd.f32 %v1310_v51, %v280_v33 }
  0x95   :  { %v655_v34 = vmul.f32 0.7978846, %v606_v24  ;;  %v668_v35 = vmul.f32 0.7978846, %v619_v25  ;;  %v460_v41 = vmul.f32 %v317_v27, %v317_v27  ;;  %v473_v42 = vmul.f32 %v1325_v32, %v1325_v32 }
  0x96   :  { %v987_v38 = vpop.eup %986  ;;  %v631_v40 = vmul.f32 0.7978846, %v582_v31  ;;  %v643_v45 = vmul.f32 0.7978846, %v594_v36  ;;  %v436_v53 = vmul.f32 %v1329_v37, %v1329_v37  ;;  %v448_v61 = vmul.f32 %v1334_v46, %v1334_v46 }
  0x97   :  { %v989_v43 = vpop.eup %988  ;;  %v728_v44 = vadd.f32 1.0, %v987_v38  ;;  %990 = vtanh.f32 %v655_v34  ;;  %v509_v48 = vmul.f32 %v460_v41, %v317_v27  ;;  %v522_v49 = vmul.f32 %v473_v42, %v1325_v32 }
  0x98   :  { %v740_v47 = vadd.f32 1.0, %v989_v43  ;;  %992 = vtanh.f32 %v668_v35  ;;  %v485_v60 = vmul.f32 %v436_v53, %v1329_v37  ;;  %v497_v6 = vmul.f32 %v448_v61, %v1334_v46 }
  0x99   :  { %v777_v50 = vmul.f32 %v728_v44, %v385_v20  ;;  %994 = vtanh.f32 %v631_v40  ;;  %v558_v55 = vmul.f32 0.044715, %v509_v48  ;;  %v571_v56 = vmul.f32 0.044715, %v522_v49 }
  0x9a   :  { %v789_v54 = vmul.f32 %v740_v47, %v397_v29  ;;  %996 = vtanh.f32 %v643_v45  ;;  %v319_v57 = vpop.f32.mrf.mxu2  ;;  %v358_v58 = vpop.f32.mrf.mxu3  ;;  %v534_v5 = vmul.f32 0.044715, %v485_v60  ;;  %v411_v11 = vmul.f32 0.5, %v317_v27 }
  0x9b   :  { %v826_v59 = vpack.c.bf16 %v777_v50, %v777_v50  ;;  %v1343_v62 = vadd.f32 %v1310_v51, %v319_v57  ;;  %v607_v0 = vadd.f32 %v558_v55, %v317_v27  ;;  %v620_v1 = vadd.f32 %v571_v56, %v1325_v32  ;;  %v247_v18 = vpop.f32.mrf.mxu0  ;;  %v283_v26 = vpop.f32.mrf.mxu1 }
  0x9c   :  { %v838_v63 = vpack.c.bf16 %v789_v54, %v789_v54  ;;  %v1347_v2 = vadd.f32 %v1310_v51, %v358_v58  ;;  %v583_v16 = vadd.f32 %v534_v5, %v1329_v37  ;;  %v546_v17 = vmul.f32 0.044715, %v497_v6 }
  0x9d   :  { %v991_v3 = vpop.eup %990  ;;  %876 = vst.msk [vmem:[%s1866_s3] sm:$0xf] %vm875_vm2, %v826_v59  ;;  %v461_v8 = vmul.f32 %v1343_v62, %v1343_v62  ;;  %v656_v12 = vmul.f32 0.7978846, %v607_v0  ;;  %v669_v15 = vmul.f32 0.7978846, %v620_v1  ;;  %v1373_v40 = vadd.f32 %v1310_v51, %v247_v18 }
  0x9e   :  { %v993_v9 = vpop.eup %992  ;;  %888 = vst.msk [vmem:[%s1866_s3 + $0x30] sm:$0xf] %vm875_vm2, %v838_v63  ;;  %v753_v10 = vadd.f32 1.0, %v991_v3  ;;  %v474_v13 = vmul.f32 %v1347_v2, %v1347_v2  ;;  %v632_v25 = vmul.f32 0.7978846, %v583_v16  ;;  %v595_v29 = vadd.f32 %v546_v17, %v1334_v46 }
  0x9f   :  { %v995_v14 = vpop.eup %994  ;;  %v766_v7 = vadd.f32 1.0, %v993_v9  ;;  %998 = vtanh.f32 %v656_v12  ;;  %v510_v22 = vmul.f32 %v461_v8, %v1343_v62  ;;  %v1380_v43 = vadd.f32 %v1310_v51, %v283_v26 }
  0xa0   :  { %v997_v19 = vpop.eup %996  ;;  %v802_v20 = vmul.f32 %v753_v10, %v410_v30  ;;  %v729_v21 = vadd.f32 1.0, %v995_v14  ;;  %1000 = vtanh.f32 %v669_v15  ;;  %v523_v30 = vmul.f32 %v474_v13, %v1347_v2 }
  0xa1   :  { %v815_v23 = vmul.f32 %v766_v7, %v423_v39  ;;  %v741_v24 = vadd.f32 1.0, %v997_v19  ;;  %v559_v31 = vmul.f32 0.044715, %v510_v22  ;;  %1002 = vtanh.f32 %v632_v25 }
  0xa2   :  { %v851_v27 = vpack.c.bf16 %v802_v20, %v802_v20  ;;  %v778_v28 = vmul.f32 %v729_v21, %v386_v52  ;;  %v322_v33 = vpop.f32.mrf.mxu2  ;;  %v644_v38 = vmul.f32 0.7978846, %v595_v29  ;;  %v572_v42 = vmul.f32 0.044715, %v523_v30 }
  0xa3   :  { %v864_v34 = vpack.c.bf16 %v815_v23, %v815_v23  ;;  %v790_v35 = vmul.f32 %v741_v24, %v398_v4  ;;  %v608_v39 = vadd.f32 %v559_v31, %v1343_v62  ;;  %v1383_v44 = vadd.f32 %v1310_v51, %v322_v33  ;;  %v250_v0 = vpop.f32.mrf.mxu0  ;;  %v286_v9 = vpop.f32.mrf.mxu1 }
  0xa4   :  { %901 = vst.msk [vmem:[%s1866_s3 + $0x64] sm:$0xf] %vm875_vm2, %v851_v27  ;;  %v827_v36 = vpack.c.bf16 %v778_v28, %v778_v28  ;;  %v424_v47 = vmul.f32 0.5, %v1325_v32  ;;  %1004 = vtanh.f32 %v644_v38  ;;  %v437_v49 = vmul.f32 %v1373_v40, %v1373_v40  ;;  %v361_v32 = vpop.f32.mrf.mxu3 }
  0xa5   :  { %914 = vst.msk [vmem:[%s1866_s3 + $0x98] sm:$0xf] %vm875_vm2, %v864_v34  ;;  %v839_v41 = vpack.c.bf16 %v790_v35, %v790_v35  ;;  %v999_v45 = vpop.eup %998  ;;  %v657_v48 = vmul.f32 0.7978846, %v608_v39  ;;  %v387_v53 = vmul.f32 0.5, %v1329_v37  ;;  %v621_v54 = vadd.f32 %v572_v42, %v1347_v2 }
  0xa6   :  { %877 = vst.msk [vmem:[%s1866_s3 + $0x4] sm:$0xf] %vm875_vm2, %v827_v36  ;;  %v1001_v50 = vpop.eup %1000  ;;  %v754_v52 = vadd.f32 1.0, %v999_v45  ;;  %v449_v55 = vmul.f32 %v1380_v43, %v1380_v43  ;;  %v399_v57 = vmul.f32 0.5, %v1334_v46  ;;  %v486_v58 = vmul.f32 %v437_v49, %v1373_v40 }
  0xa7   :  { %889 = vst.msk [vmem:[%s1866_s3 + $0x34] sm:$0xf] %vm875_vm2, %v839_v41  ;;  %v767_v56 = vadd.f32 1.0, %v1001_v50  ;;  %1006 = vtanh.f32 %v657_v48  ;;  %v1003_v59 = vpop.eup %1002  ;;  %v670_v61 = vmul.f32 0.7978846, %v621_v54  ;;  %v462_v37 = vmul.f32 %v1383_v44, %v1383_v44 }
  0xa8   :  { %v803_v60 = vmul.f32 %v754_v52, %v411_v11  ;;  %v498_v63 = vmul.f32 %v449_v55, %v1380_v43  ;;  %v730_v3 = vadd.f32 1.0, %v1003_v59  ;;  %v535_v4 = vmul.f32 0.044715, %v486_v58 }
  0xa9   :  { %v816_v1 = vmul.f32 %v767_v56, %v424_v47  ;;  %v1406_v5 = vadd.f32 %v1310_v51, %v361_v32  ;;  %1008 = vtanh.f32 %v670_v61  ;;  %v511_v8 = vmul.f32 %v462_v37, %v1383_v44 }
  0xaa   :  { %v852_v6 = vpack.c.bf16 %v803_v60, %v803_v60  ;;  %v547_v46 = vmul.f32 0.044715, %v498_v63  ;;  %v1005_v10 = vpop.eup %1004  ;;  %v779_v12 = vmul.f32 %v730_v3, %v387_v53  ;;  %v412_v13 = vmul.f32 0.5, %v1343_v62  ;;  %v325_v29 = vpop.f32.mrf.mxu2 }
  0xab   :  { %v865_v11 = vpack.c.bf16 %v816_v1, %v816_v1  ;;  %v584_v14 = vadd.f32 %v535_v4, %v1373_v40  ;;  %v742_v7 = vadd.f32 1.0, %v1005_v10  ;;  %v560_v16 = vmul.f32 0.044715, %v511_v8  ;;  %v253_v47 = vpop.f32.mrf.mxu0  ;;  %v289_v3 = vpop.f32.mrf.mxu1 }
  0xac   :  { %902 = vst.msk [vmem:[%s1866_s3 + $0x68] sm:$0xf] %vm875_vm2, %v852_v6  ;;  %v596_v15 = vadd.f32 %v547_v46, %v1380_v43  ;;  %v475_v17 = vmul.f32 %v1406_v5, %v1406_v5  ;;  %v828_v62 = vpack.c.bf16 %v779_v12, %v779_v12  ;;  %v1423_v20 = vadd.f32 %v1310_v51, %v250_v0  ;;  %v364_v30 = vpop.f32.mrf.mxu3 }
  0xad   :  { %v1007_v18 = vpop.eup %1006  ;;  %915 = vst.msk [vmem:[%s1866_s3 + $0x9c] sm:$0xf] %vm875_vm2, %v865_v11  ;;  %v633_v19 = vmul.f32 0.7978846, %v584_v14  ;;  %v1426_v21 = vadd.f32 %v1310_v51, %v286_v9  ;;  %v791_v22 = vmul.f32 %v742_v7, %v399_v57  ;;  %v609_v25 = vadd.f32 %v560_v16, %v1383_v44 }
  0xae   :  { %v755_v23 = vadd.f32 1.0, %v1007_v18  ;;  %v645_v24 = vmul.f32 0.7978846, %v596_v15  ;;  %878 = vst.msk [vmem:[%s1866_s3 + $0x8] sm:$0xf] %vm875_vm2, %v828_v62  ;;  %v425_v26 = vmul.f32 0.5, %v1347_v2  ;;  %v524_v27 = vmul.f32 %v475_v17, %v1406_v5 }
  0xaf   :  { %1010 = vtanh.f32 %v633_v19  ;;  %v438_v28 = vmul.f32 %v1423_v20, %v1423_v20  ;;  %v1009_v31 = vpop.eup %1008  ;;  %v840_v33 = vpack.c.bf16 %v791_v22, %v791_v22  ;;  %v658_v35 = vmul.f32 0.7978846, %v609_v25 }
  0xb0   :  { %v804_v34 = vmul.f32 %v755_v23, %v412_v13  ;;  %1012 = vtanh.f32 %v645_v24  ;;  %v768_v36 = vadd.f32 1.0, %v1009_v31  ;;  %v388_v38 = vmul.f32 0.5, %v1373_v40 }
  0xb1   :  { %v573_v39 = vmul.f32 0.044715, %v524_v27  ;;  %v487_v41 = vmul.f32 %v438_v28, %v1423_v20  ;;  %890 = vst.msk [vmem:[%s1866_s3 + $0x38] sm:$0xf] %vm875_vm2, %v840_v33  ;;  %1014 = vtanh.f32 %v658_v35  ;;  %v450_v42 = vmul.f32 %v1426_v21, %v1426_v21 }
  0xb2   :  { %v853_v2 = vpack.c.bf16 %v804_v34, %v804_v34  ;;  %v1446_v45 = vadd.f32 %v1310_v51, %v325_v29  ;;  %v817_v48 = vmul.f32 %v768_v36, %v425_v26  ;;  %v1450_v50 = vadd.f32 %v1310_v51, %v364_v30  ;;  %v328_v13 = vpop.f32.mrf.mxu2 }
  0xb3   :  { %v622_v40 = vadd.f32 %v573_v39, %v1406_v5  ;;  %v536_v49 = vmul.f32 0.044715, %v487_v41  ;;  %v400_v52 = vmul.f32 0.5, %v1380_v43  ;;  %v413_v53 = vmul.f32 0.5, %v1383_v44  ;;  %v256_v31 = vpop.f32.mrf.mxu0 }
  0xb4   :  { %903 = vst.msk [vmem:[%s1866_s3 + $0x6c] sm:$0xf] %vm875_vm2, %v853_v2  ;;  %v499_v54 = vmul.f32 %v450_v42, %v1426_v21  ;;  %v463_v55 = vmul.f32 %v1446_v45, %v1446_v45  ;;  %v866_v56 = vpack.c.bf16 %v817_v48, %v817_v48  ;;  %v1463_v59 = vadd.f32 %v1310_v51, %v253_v47  ;;  %v367_v24 = vpop.f32.mrf.mxu3 }
  0xb5   :  { %v1011_v32 = vpop.eup %1010  ;;  %v671_v57 = vmul.f32 0.7978846, %v622_v40  ;;  %v585_v58 = vadd.f32 %v536_v49, %v1423_v20  ;;  %v476_v44 = vmul.f32 %v1450_v50, %v1450_v50  ;;  %v426_v0 = vmul.f32 0.5, %v1406_v5  ;;  %v292_v49 = vpop.f32.mrf.mxu1 }
  0xb6   :  { %v1013_v60 = vpop.eup %1012  ;;  %v731_v61 = vadd.f32 1.0, %v1011_v32  ;;  %v548_v63 = vmul.f32 0.044715, %v499_v54  ;;  %v512_v43 = vmul.f32 %v463_v55, %v1446_v45  ;;  %916 = vst.msk [vmem:[%s1866_s3 + $0xa0] sm:$0xf] %vm875_vm2, %v866_v56  ;;  %v439_v12 = vmul.f32 %v1463_v59, %v1463_v59 }
  0xb7   :  { %v743_v37 = vadd.f32 1.0, %v1013_v60  ;;  %1016 = vtanh.f32 %v671_v57  ;;  %v634_v1 = vmul.f32 0.7978846, %v585_v58  ;;  %v1015_v4 = vpop.eup %1014  ;;  %v525_v9 = vmul.f32 %v476_v44, %v1450_v50 }
  0xb8   :  { %v780_v6 = vmul.f32 %v731_v61, %v388_v38  ;;  %v597_v46 = vadd.f32 %v548_v63, %v1426_v21  ;;  %v561_v8 = vmul.f32 0.044715, %v512_v43  ;;  %v756_v11 = vadd.f32 1.0, %v1015_v4 }
  0xb9   :  { %v792_v10 = vmul.f32 %v743_v37, %v400_v52  ;;  %1018 = vtanh.f32 %v634_v1  ;;  %v574_v15 = vmul.f32 0.044715, %v525_v9  ;;  %v488_v18 = vmul.f32 %v439_v12, %v1463_v59 }
  0xba   :  { %v829_v14 = vpack.c.bf16 %v780_v6, %v780_v6  ;;  %v646_v7 = vmul.f32 0.7978846, %v597_v46  ;;  %v610_v5 = vadd.f32 %v561_v8, %v1446_v45  ;;  %v805_v17 = vmul.f32 %v756_v11, %v413_v53  ;;  %v331_v60 = vpop.f32.mrf.mxu2 }
  0xbb   :  { %v841_v16 = vpack.c.bf16 %v792_v10, %v792_v10  ;;  %v1480_v62 = vadd.f32 %v1310_v51, %v289_v3  ;;  %v623_v22 = vadd.f32 %v574_v15, %v1450_v50  ;;  %v1488_v23 = vadd.f32 %v1310_v51, %v328_v13 }
  0xbc   :  { %879 = vst.msk [vmem:[%s1866_s3 + $0xc] sm:$0xf] %vm875_vm2, %v829_v14  ;;  %1020 = vtanh.f32 %v646_v7  ;;  %v659_v19 = vmul.f32 0.7978846, %v610_v5  ;;  %v854_v26 = vpack.c.bf16 %v805_v17, %v805_v17  ;;  %v389_v27 = vmul.f32 0.5, %v1423_v20  ;;  %v370_v9 = vpop.f32.mrf.mxu3 }
  0xbd   :  { %v1017_v25 = vpop.eup %1016  ;;  %891 = vst.msk [vmem:[%s1866_s3 + $0x3c] sm:$0xf] %vm875_vm2, %v841_v16  ;;  %v537_v28 = vmul.f32 0.044715, %v488_v18  ;;  %v451_v29 = vmul.f32 %v1480_v62, %v1480_v62  ;;  %v401_v34 = vmul.f32 0.5, %v1426_v21  ;;  %v464_v38 = vmul.f32 %v1488_v23, %v1488_v23 }
  0xbe   :  { %v769_v33 = vadd.f32 1.0, %v1017_v25  ;;  %1022 = vtanh.f32 %v659_v19  ;;  %v672_v35 = vmul.f32 0.7978846, %v623_v22  ;;  %904 = vst.msk [vmem:[%s1866_s3 + $0x70] sm:$0xf] %vm875_vm2, %v854_v26  ;;  %v1507_v39 = vadd.f32 %v1310_v51, %v367_v24  ;;  %v259_v25 = vpop.f32.mrf.mxu0 }
  0xbf   :  { %v1019_v30 = vpop.eup %1018  ;;  %v586_v36 = vadd.f32 %v537_v28, %v1463_v59  ;;  %v500_v20 = vmul.f32 %v451_v29, %v1480_v62  ;;  %v1510_v2 = vadd.f32 %v1310_v51, %v256_v31  ;;  %v414_v42 = vmul.f32 0.5, %v1446_v45  ;;  %v295_v31 = vpop.f32.mrf.mxu1 }
  0xc0   :  { %v818_v41 = vmul.f32 %v769_v33, %v426_v0  ;;  %v732_v21 = vadd.f32 1.0, %v1019_v30  ;;  %1024 = vtanh.f32 %v672_v35  ;;  %v513_v40 = vmul.f32 %v464_v38, %v1488_v23 }
  0xc1   :  { %v635_v47 = vmul.f32 0.7978846, %v586_v36  ;;  %v549_v48 = vmul.f32 0.044715, %v500_v20  ;;  %v427_v55 = vmul.f32 0.5, %v1450_v50  ;;  %v477_v32 = vmul.f32 %v1507_v39, %v1507_v39 }
  0xc2   :  { %v1021_v52 = vpop.eup %1020  ;;  %v867_v53 = vpack.c.bf16 %v818_v41, %v818_v41  ;;  %v781_v54 = vmul.f32 %v732_v21, %v389_v27  ;;  %v562_v58 = vmul.f32 0.044715, %v513_v40  ;;  %v440_v50 = vmul.f32 %v1510_v2, %v1510_v2  ;;  %v334_v41 = vpop.f32.mrf.mxu2 }
  0xc3   :  { %v744_v56 = vadd.f32 1.0, %v1021_v52  ;;  %1026 = vtanh.f32 %v635_v47  ;;  %v598_v57 = vadd.f32 %v549_v48, %v1480_v62  ;;  %v526_v63 = vmul.f32 %v477_v32, %v1507_v39 }
  0xc4   :  { %v1023_v45 = vpop.eup %1022  ;;  %917 = vst.msk [vmem:[%s1866_s3 + $0xa4] sm:$0xf] %vm875_vm2, %v867_v53  ;;  %v830_v61 = vpack.c.bf16 %v781_v54, %v781_v54  ;;  %v1526_v43 = vadd.f32 %v1310_v51, %v292_v49  ;;  %v611_v1 = vadd.f32 %v562_v58, %v1488_v23  ;;  %v390_v4 = vmul.f32 0.5, %v1463_v59  ;;  %v373_v58 = vpop.f32.mrf.mxu3 }
  0xc5   :  { %v793_v44 = vmul.f32 %v744_v56, %v401_v34  ;;  %v757_v37 = vadd.f32 1.0, %v1023_v45  ;;  %v647_v0 = vmul.f32 0.7978846, %v598_v57  ;;  %v575_v6 = vmul.f32 0.044715, %v526_v63 }
  0xc6   :  { %v1025_v3 = vpop.eup %1024  ;;  %880 = vst.msk [vmem:[%s1866_s3 + $0x10] sm:$0xf] %vm875_vm2, %v830_v61  ;;  %v489_v46 = vmul.f32 %v440_v50, %v1510_v2  ;;  %v452_v8 = vmul.f32 %v1526_v43, %v1526_v43  ;;  %v660_v13 = vmul.f32 0.7978846, %v611_v1  ;;  %v1544_v17 = vadd.f32 %v1310_v51, %v331_v60 }
  0xc7   :  { %v842_v10 = vpack.c.bf16 %v793_v44, %v793_v44  ;;  %v806_v11 = vmul.f32 %v757_v37, %v414_v42  ;;  %v770_v12 = vadd.f32 1.0, %v1025_v3  ;;  %1028 = vtanh.f32 %v647_v0 }
  0xc8   :  { %v624_v14 = vadd.f32 %v575_v6, %v1507_v39  ;;  %v538_v7 = vmul.f32 0.044715, %v489_v46  ;;  %v501_v5 = vmul.f32 %v452_v8, %v1526_v43  ;;  %v1547_v18 = vadd.f32 %v1310_v51, %v370_v9 }
  0xc9   :  { %v1027_v15 = vpop.eup %1026  ;;  %892 = vst.msk [vmem:[%s1866_s3 + $0x40] sm:$0xf] %vm875_vm2, %v842_v10  ;;  %v855_v59 = vpack.c.bf16 %v806_v11, %v806_v11  ;;  %v819_v16 = vmul.f32 %v770_v12, %v427_v55  ;;  %1030 = vtanh.f32 %v660_v13  ;;  %v402_v27 = vmul.f32 0.5, %v1480_v62  ;;  %v262_v11 = vpop.f32.mrf.mxu0 }
  0xca   :  { %v733_v19 = vadd.f32 1.0, %v1027_v15  ;;  %v673_v22 = vmul.f32 0.7978846, %v624_v14  ;;  %v587_v24 = vadd.f32 %v538_v7, %v1510_v2  ;;  %v550_v28 = vmul.f32 0.044715, %v501_v5 }
  0xcb   :  { %905 = vst.msk [vmem:[%s1866_s3 + $0x74] sm:$0xf] %vm875_vm2, %v855_v59  ;;  %v868_v26 = vpack.c.bf16 %v819_v16, %v819_v16  ;;  %v465_v29 = vmul.f32 %v1544_v17, %v1544_v17  ;;  %v415_v34 = vmul.f32 0.5, %v1488_v23  ;;  %v478_v20 = vmul.f32 %v1547_v18, %v1547_v18 }
  0xcc   :  { %v782_v33 = vmul.f32 %v733_v19, %v390_v4  ;;  %1032 = vtanh.f32 %v673_v22  ;;  %v636_v35 = vmul.f32 0.7978846, %v587_v24  ;;  %v599_v36 = vadd.f32 %v550_v28, %v1526_v43  ;;  %v298_v22 = vpop.f32.mrf.mxu1  ;;  %v337_v24 = vpop.f32.mrf.mxu2 }
  0xcd   :  { %v1029_v30 = vpop.eup %1028  ;;  %918 = vst.msk [vmem:[%s1866_s3 + $0xa8] sm:$0xf] %vm875_vm2, %v868_v26  ;;  %v514_v62 = vmul.f32 %v465_v29, %v1544_v17  ;;  %v1567_v38 = vadd.f32 %v1310_v51, %v259_v25  ;;  %v1570_v42 = vadd.f32 %v1310_v51, %v295_v31  ;;  %v428_v47 = vmul.f32 0.5, %v1507_v39 }
  0xce   :  { %v831_v23 = vpack.c.bf16 %v782_v33, %v782_v33  ;;  %v745_v21 = vadd.f32 1.0, %v1029_v30  ;;  %1034 = vtanh.f32 %v636_v35  ;;  %v648_v48 = vmul.f32 0.7978846, %v599_v36 }
  0xcf   :  { %v563_v40 = vmul.f32 0.044715, %v514_v62  ;;  %v527_v49 = vmul.f32 %v478_v20, %v1547_v18  ;;  %v1031_v52 = vpop.eup %1030  ;;  %v391_v54 = vmul.f32 0.5, %v1510_v2  ;;  %v441_v55 = vmul.f32 %v1567_v38, %v1567_v38  ;;  %v376_v20 = vpop.f32.mrf.mxu3 }
  0xd0   :  { %881 = vst.msk [vmem:[%s1866_s3 + $0x14] sm:$0xf] %vm875_vm2, %v831_v23  ;;  %v794_v53 = vmul.f32 %v745_v21, %v402_v27  ;;  %v453_v32 = vmul.f32 %v1570_v42, %v1570_v42  ;;  %v758_v39 = vadd.f32 1.0, %v1031_v52  ;;  %1036 = vtanh.f32 %v648_v48 }
  0xd1   :  { %v612_v56 = vadd.f32 %v563_v40, %v1544_v17  ;;  %v576_v57 = vmul.f32 0.044715, %v527_v49  ;;  %v490_v61 = vmul.f32 %v441_v55, %v1567_v38  ;;  %v1587_v2 = vadd.f32 %v1310_v51, %v334_v41 }
  0xd2   :  { %v1033_v60 = vpop.eup %1032  ;;  %v843_v45 = vpack.c.bf16 %v794_v53, %v794_v53  ;;  %v502_v63 = vmul.f32 %v453_v32, %v1570_v42  ;;  %v807_v50 = vmul.f32 %v758_v39, %v415_v34  ;;  %v1597_v46 = vadd.f32 %v1310_v51, %v373_v58 }
  0xd3   :  { %v771_v44 = vadd.f32 1.0, %v1033_v60  ;;  %v661_v37 = vmul.f32 0.7978846, %v612_v56  ;;  %v625_v0 = vadd.f32 %v576_v57, %v1547_v18  ;;  %v539_v3 = vmul.f32 0.044715, %v490_v61  ;;  %v265_v56 = vpop.f32.mrf.mxu0 }
  0xd4   :  { %v1035_v1 = vpop.eup %1034  ;;  %893 = vst.msk [vmem:[%s1866_s3 + $0x44] sm:$0xf] %vm875_vm2, %v843_v45  ;;  %v551_v4 = vmul.f32 0.044715, %v502_v63  ;;  %v466_v6 = vmul.f32 %v1587_v2, %v1587_v2  ;;  %v856_v8 = vpack.c.bf16 %v807_v50, %v807_v50  ;;  %v403_v12 = vmul.f32 0.5, %v1526_v43 }
  0xd5   :  { %v820_v9 = vmul.f32 %v771_v44, %v428_v47  ;;  %v734_v10 = vadd.f32 1.0, %v1035_v1  ;;  %1038 = vtanh.f32 %v661_v37  ;;  %v674_v13 = vmul.f32 0.7978846, %v625_v0  ;;  %v301_v1 = vpop.f32.mrf.mxu1 }
  0xd6   :  { %v588_v14 = vadd.f32 %v539_v3, %v1567_v38  ;;  %v600_v7 = vadd.f32 %v551_v4, %v1570_v42  ;;  %v1037_v5 = vpop.eup %1036  ;;  %906 = vst.msk [vmem:[%s1866_s3 + $0x78] sm:$0xf] %vm875_vm2, %v856_v8  ;;  %v416_v16 = vmul.f32 0.5, %v1544_v17  ;;  %v515_v19 = vmul.f32 %v466_v6, %v1587_v2  ;;  %v340_v8 = vpop.f32.mrf.mxu2 }
  0xd7   :  { %v869_v15 = vpack.c.bf16 %v820_v9, %v820_v9  ;;  %v783_v59 = vmul.f32 %v734_v10, %v391_v54  ;;  %v746_v43 = vadd.f32 1.0, %v1037_v5  ;;  %1040 = vtanh.f32 %v674_v13 }
  0xd8   :  { %v637_v25 = vmul.f32 0.7978846, %v588_v14  ;;  %v649_v26 = vmul.f32 0.7978846, %v600_v7  ;;  %v564_v28 = vmul.f32 0.044715, %v515_v19  ;;  %v479_v29 = vmul.f32 %v1597_v46, %v1597_v46 }
  0xd9   :  { %919 = vst.msk [vmem:[%s1866_s3 + $0xac] sm:$0xf] %vm875_vm2, %v869_v15  ;;  %v832_v27 = vpack.c.bf16 %v783_v59, %v783_v59  ;;  %v1615_v17 = vadd.f32 %v1310_v51, %v262_v11  ;;  %v795_v31 = vmul.f32 %v746_v43, %v403_v12  ;;  %v1618_v33 = vadd.f32 %v1310_v51, %v298_v22 }
  0xda   :  { %1042 = vtanh.f32 %v637_v25  ;;  %v1621_v34 = vadd.f32 %v1310_v51, %v337_v24  ;;  %v429_v30 = vmul.f32 0.5, %v1547_v18  ;;  %v613_v36 = vadd.f32 %v564_v28, %v1587_v2  ;;  %v379_v25 = vpop.f32.mrf.mxu3 }
  0xdb   :  { %v1039_v35 = vpop.eup %1038  ;;  %882 = vst.msk [vmem:[%s1866_s3 + $0x18] sm:$0xf] %vm875_vm2, %v832_v27  ;;  %1044 = vtanh.f32 %v649_v26  ;;  %v528_v62 = vmul.f32 %v479_v29, %v1597_v46  ;;  %v844_v41 = vpack.c.bf16 %v795_v31, %v795_v31  ;;  %v392_v21 = vmul.f32 0.5, %v1567_v38 }
  0xdc   :  { %v759_v23 = vadd.f32 1.0, %v1039_v35  ;;  %v442_v47 = vmul.f32 %v1615_v17, %v1615_v17  ;;  %v404_v48 = vmul.f32 0.5, %v1570_v42  ;;  %v662_v40 = vmul.f32 0.7978846, %v613_v36 }
  0xdd   :  { %v577_v49 = vmul.f32 0.044715, %v528_v62  ;;  %v454_v18 = vmul.f32 %v1618_v33, %v1618_v33  ;;  %v1041_v52 = vpop.eup %1040  ;;  %894 = vst.msk [vmem:[%s1866_s3 + $0x48] sm:$0xf] %vm875_vm2, %v844_v41  ;;  %v467_v38 = vmul.f32 %v1621_v34, %v1621_v34  ;;  %v1644_v55 = vadd.f32 %v1310_v51, %v376_v20  ;;  %v268_v41 = vpop.f32.mrf.mxu0 }
  0xde   :  { %v808_v53 = vmul.f32 %v759_v23, %v416_v16  ;;  %v491_v54 = vmul.f32 %v442_v47, %v1615_v17  ;;  %v772_v42 = vadd.f32 1.0, %v1041_v52  ;;  %1046 = vtanh.f32 %v662_v40  ;;  %v304_v52 = vpop.f32.mrf.mxu1 }
  0xdf   :  { %v626_v32 = vadd.f32 %v577_v49, %v1597_v46  ;;  %v503_v39 = vmul.f32 %v454_v18, %v1618_v33  ;;  %v417_v60 = vmul.f32 0.5, %v1587_v2  ;;  %v516_v61 = vmul.f32 %v467_v38, %v1621_v34 }
  0xe0   :  { %v1043_v57 = vpop.eup %1042  ;;  %v857_v58 = vpack.c.bf16 %v808_v53, %v808_v53  ;;  %v540_v45 = vmul.f32 0.044715, %v491_v54  ;;  %v821_v50 = vmul.f32 %v772_v42, %v429_v30  ;;  %v480_v2 = vmul.f32 %v1644_v55, %v1644_v55 }
  0xe1   :  { %v1045_v63 = vpop.eup %1044  ;;  %v735_v44 = vadd.f32 1.0, %v1043_v57  ;;  %v675_v37 = vmul.f32 0.7978846, %v626_v32  ;;  %v552_v0 = vmul.f32 0.044715, %v503_v39  ;;  %v1665_v16 = vadd.f32 %v1310_v51, %v265_v56 }
  0xe2   :  { %907 = vst.msk [vmem:[%s1866_s3 + $0x7c] sm:$0xf] %vm875_vm2, %v857_v58  ;;  %v747_v3 = vadd.f32 1.0, %v1045_v63  ;;  %v589_v4 = vadd.f32 %v540_v45, %v1615_v17  ;;  %v565_v6 = vmul.f32 0.044715, %v516_v61  ;;  %v870_v9 = vpack.c.bf16 %v821_v50, %v821_v50 }
  0xe3   :  { %v784_v10 = vmul.f32 %v735_v44, %v392_v21  ;;  %1048 = vtanh.f32 %v675_v37  ;;  %v601_v11 = vadd.f32 %v552_v0, %v1618_v33  ;;  %v529_v7 = vmul.f32 %v480_v2, %v1644_v55 }
  0xe4   :  { %v796_v12 = vmul.f32 %v747_v3, %v404_v48  ;;  %v638_v13 = vmul.f32 0.7978846, %v589_v4  ;;  %v614_v14 = vadd.f32 %v565_v6, %v1621_v34  ;;  %v1047_v5 = vpop.eup %1046  ;;  %920 = vst.msk [vmem:[%s1866_s3 + $0xb0] sm:$0xf] %vm875_vm2, %v870_v9  ;;  %v1668_v19 = vadd.f32 %v1310_v51, %v301_v1  ;;  %v382_v9 = vpop.f32.mrf.mxu3 }
  0xe5   :  { %v833_v15 = vpack.c.bf16 %v784_v10, %v784_v10  ;;  %v650_v59 = vmul.f32 0.7978846, %v601_v11  ;;  %v760_v24 = vadd.f32 1.0, %v1047_v5  ;;  %v430_v26 = vmul.f32 0.5, %v1597_v46 }
  0xe6   :  { %v845_v22 = vpack.c.bf16 %v796_v12, %v796_v12  ;;  %1050 = vtanh.f32 %v638_v13  ;;  %v663_v43 = vmul.f32 0.7978846, %v614_v14  ;;  %v578_v27 = vmul.f32 0.044715, %v529_v7 }
  0xe7   :  { %883 = vst.msk [vmem:[%s1866_s3 + $0x1c] sm:$0xf] %vm875_vm2, %v833_v15  ;;  %1052 = vtanh.f32 %v650_v59  ;;  %v443_v28 = vmul.f32 %v1665_v16, %v1665_v16  ;;  %v809_v29 = vmul.f32 %v760_v24, %v417_v60  ;;  %v393_v31 = vmul.f32 0.5, %v1615_v17  ;;  %v1727_v15 = vld [vmem:[%s1865_s2] ss:$0 sm:$0xff] }
  0xe8   :  { %895 = vst.msk [vmem:[%s1866_s3 + $0x4c] sm:$0xf] %vm875_vm2, %v845_v22  ;;  %1054 = vtanh.f32 %v663_v43  ;;  %v455_v35 = vmul.f32 %v1668_v19, %v1668_v19  ;;  %v627_v46 = vadd.f32 %v578_v27, %v1644_v55  ;;  %v1687_v62 = vadd.f32 %v1310_v51, %v340_v8 }
  0xe9   :  { %v1049_v30 = vpop.eup %1048  ;;  %v492_v36 = vmul.f32 %v443_v28, %v1665_v16  ;;  %v1690_v20 = vadd.f32 %v1310_v51, %v379_v25  ;;  %v858_v23 = vpack.c.bf16 %v809_v29, %v809_v29  ;;  %v405_v17 = vmul.f32 0.5, %v1618_v33  ;;  %v271_v28 = vpop.f32.mrf.mxu0 }
  0xea   :  { %v773_v21 = vadd.f32 1.0, %v1049_v30  ;;  %v504_v47 = vmul.f32 %v455_v35, %v1668_v19  ;;  %v418_v48 = vmul.f32 0.5, %v1621_v34  ;;  %v676_v40 = vmul.f32 0.7978846, %v627_v46  ;;  %v343_v34 = vpop.f32.mrf.mxu2  ;;  %v307_v29 = vpop.f32.mrf.mxu1 }
  0xeb   :  { %v541_v49 = vmul.f32 0.044715, %v492_v36  ;;  %v468_v18 = vmul.f32 %v1687_v62, %v1687_v62  ;;  %908 = vst.msk [vmem:[%s1866_s3 + $0x80] sm:$0xf] %vm875_vm2, %v858_v23  ;;  %v481_v33 = vmul.f32 %v1690_v20, %v1690_v20  ;;  %v1704_v42 = vadd.f32 %v1310_v51, %v268_v41 }
  0xec   :  { %v1051_v53 = vpop.eup %1050  ;;  %v822_v54 = vmul.f32 %v773_v21, %v430_v26  ;;  %v553_v38 = vmul.f32 0.044715, %v504_v47  ;;  %1056 = vtanh.f32 %v676_v40  ;;  %v431_v11 = vmul.f32 0.5, %v1644_v55 }
  0xed   :  { %v1053_v32 = vpop.eup %1052  ;;  %v736_v39 = vadd.f32 1.0, %v1051_v53  ;;  %v590_v56 = vadd.f32 %v541_v49, %v1665_v16  ;;  %v517_v57 = vmul.f32 %v468_v18, %v1687_v62  ;;  %v530_v63 = vmul.f32 %v481_v33, %v1690_v20 }
  0xee   :  { %v1055_v58 = vpop.eup %1054  ;;  %v871_v60 = vpack.c.bf16 %v822_v54, %v822_v54  ;;  %v748_v45 = vadd.f32 1.0, %v1053_v32  ;;  %v602_v61 = vadd.f32 %v553_v38, %v1668_v19  ;;  %v444_v4 = vmul.f32 %v1704_v42, %v1704_v42 }
  0xef   :  { %v785_v50 = vmul.f32 %v736_v39, %v393_v31  ;;  %v761_v44 = vadd.f32 1.0, %v1055_v58  ;;  %v639_v37 = vmul.f32 0.7978846, %v590_v56  ;;  %v566_v51 = vmul.f32 0.044715, %v517_v57 }
  0xf0   :  { %921 = vst.msk [vmem:[%s1866_s3 + $0xb4] sm:$0xf] %vm875_vm2, %v871_v60  ;;  %v797_v0 = vmul.f32 %v748_v45, %v405_v17  ;;  %v651_v1 = vmul.f32 0.7978846, %v602_v61  ;;  %v579_v3 = vmul.f32 0.044715, %v530_v63  ;;  %v493_v5 = vmul.f32 %v444_v4, %v1704_v42 }
  0xf1   :  { %v834_v6 = vpack.c.bf16 %v785_v50, %v785_v50  ;;  %v810_v2 = vmul.f32 %v761_v44, %v418_v48  ;;  %1058 = vtanh.f32 %v639_v37  ;;  %v615_v8 = vadd.f32 %v566_v51, %v1687_v62 }
  0xf2   :  { %v846_v10 = vpack.c.bf16 %v797_v0, %v797_v0  ;;  %1060 = vtanh.f32 %v651_v1  ;;  %v628_v12 = vadd.f32 %v579_v3, %v1690_v20  ;;  %v1057_v13 = vpop.eup %1056  ;;  %v1730_v55 = vadd.f32 %v1727_v15, %v304_v52  ;;  %v346_v46 = vpop.f32.mrf.mxu2 }
  0xf3   :  { %884 = vst.msk [vmem:[%s1866_s3 + $0x20] sm:$0xf] %vm875_vm2, %v834_v6  ;;  %v859_v14 = vpack.c.bf16 %v810_v2, %v810_v2  ;;  %v664_v7 = vmul.f32 0.7978846, %v615_v8  ;;  %v774_v59 = vadd.f32 1.0, %v1057_v13  ;;  %v1737_v24 = vadd.f32 %v1727_v15, %v343_v34  ;;  %v310_v2 = vpop.f32.mrf.mxu1 }
  0xf4   :  { %896 = vst.msk [vmem:[%s1866_s3 + $0x50] sm:$0xf] %vm875_vm2, %v846_v10  ;;  %v677_v22 = vmul.f32 0.7978846, %v628_v12  ;;  %v1740_v43 = vadd.f32 %v1727_v15, %v382_v9  ;;  %v394_v25 = vmul.f32 0.5, %v1665_v16  ;;  %v456_v27 = vmul.f32 %v1730_v55, %v1730_v55 }
  0xf5   :  { %909 = vst.msk [vmem:[%s1866_s3 + $0x84] sm:$0xf] %vm875_vm2, %v859_v14  ;;  %1062 = vtanh.f32 %v664_v7  ;;  %v542_v26 = vmul.f32 0.044715, %v493_v5  ;;  %v823_v31 = vmul.f32 %v774_v59, %v431_v11  ;;  %v406_v35 = vmul.f32 0.5, %v1668_v19 }
  0xf6   :  { %1064 = vtanh.f32 %v677_v22  ;;  %v469_v30 = vmul.f32 %v1737_v24, %v1737_v24  ;;  %v419_v41 = vmul.f32 0.5, %v1687_v62  ;;  %v505_v23 = vmul.f32 %v456_v27, %v1730_v55 }
  0xf7   :  { %v1059_v36 = vpop.eup %1058  ;;  %v591_v16 = vadd.f32 %v542_v26, %v1704_v42  ;;  %v482_v21 = vmul.f32 %v1740_v43, %v1740_v43  ;;  %v872_v47 = vpack.c.bf16 %v823_v31, %v823_v31  ;;  %v1759_v40 = vadd.f32 %v1727_v15, %v271_v28 }
  0xf8   :  { %v1061_v17 = vpop.eup %1060  ;;  %v737_v48 = vadd.f32 1.0, %v1059_v36  ;;  %v518_v19 = vmul.f32 %v469_v30, %v1737_v24  ;;  %v554_v52 = vmul.f32 0.044715, %v505_v23  ;;  %v432_v54 = vmul.f32 0.5, %v1690_v20 }
  0xf9   :  { %v749_v49 = vadd.f32 1.0, %v1061_v17  ;;  %v640_v18 = vmul.f32 0.7978846, %v591_v16  ;;  %v531_v62 = vmul.f32 %v482_v21, %v1740_v43  ;;  %922 = vst.msk [vmem:[%s1866_s3 + $0xb8] sm:$0xf] %vm875_vm2, %v872_v47  ;;  %v445_v33 = vmul.f32 %v1759_v40, %v1759_v40 }
  0xfa   :  { %v786_v53 = vmul.f32 %v737_v48, %v394_v25  ;;  %v567_v38 = vmul.f32 0.044715, %v518_v19  ;;  %v603_v39 = vadd.f32 %v554_v52, %v1730_v55  ;;  %v1778_v1 = vadd.f32 %v1727_v15, %v307_v29  ;;  %v349_v10 = vpop.f32.mrf.mxu2 }
  0xfb   :  { %v1063_v34 = vpop.eup %1062  ;;  %v798_v32 = vmul.f32 %v749_v49, %v406_v35  ;;  %1066 = vtanh.f32 %v640_v18  ;;  %v580_v56 = vmul.f32 0.044715, %v531_v62  ;;  %v494_v61 = vmul.f32 %v445_v33, %v1759_v40 }
  0xfc   :  { %v1065_v57 = vpop.eup %1064  ;;  %v835_v58 = vpack.c.bf16 %v786_v53, %v786_v53  ;;  %v762_v60 = vadd.f32 1.0, %v1063_v34  ;;  %v616_v45 = vadd.f32 %v567_v38, %v1737_v24  ;;  %v652_v20 = vmul.f32 0.7978846, %v603_v39 }
  0xfd   :  { %v847_v63 = vpack.c.bf16 %v798_v32, %v798_v32  ;;  %v775_v50 = vadd.f32 1.0, %v1065_v57  ;;  %v629_v44 = vadd.f32 %v580_v56, %v1740_v43  ;;  %v543_v0 = vmul.f32 0.044715, %v494_v61 }
  0xfe   :  { %885 = vst.msk [vmem:[%s1866_s3 + $0x24] sm:$0xf] %vm875_vm2, %v835_v58  ;;  %v811_v37 = vmul.f32 %v762_v60, %v419_v41  ;;  %v665_v51 = vmul.f32 0.7978846, %v616_v45  ;;  %1068 = vtanh.f32 %v652_v20  ;;  %v1785_v6 = vadd.f32 %v1727_v15, %v346_v46 }
  0xff   :  { %897 = vst.msk [vmem:[%s1866_s3 + $0x54] sm:$0xf] %vm875_vm2, %v847_v63  ;;  %v824_v3 = vmul.f32 %v775_v50, %v432_v54  ;;  %v678_v4 = vmul.f32 0.7978846, %v629_v44  ;;  %v592_v9 = vadd.f32 %v543_v0, %v1759_v40  ;;  %v395_v13 = vmul.f32 0.5, %v1704_v42 }
 0x100   :  { %v860_v8 = vpack.c.bf16 %v811_v37, %v811_v37  ;;  %1070 = vtanh.f32 %v665_v51  ;;  %v457_v14 = vmul.f32 %v1778_v1, %v1778_v1  ;;  %v470_v59 = vmul.f32 %v1785_v6, %v1785_v6 }
 0x101   :  { %v1067_v11 = vpop.eup %1066  ;;  %v873_v12 = vpack.c.bf16 %v824_v3, %v824_v3  ;;  %1072 = vtanh.f32 %v678_v4  ;;  %v641_v5 = vmul.f32 0.7978846, %v592_v9  ;;  %v1798_v22 = vadd.f32 %v1727_v15, %v310_v2 }
 0x102   :  { %910 = vst.msk [vmem:[%s1866_s3 + $0x88] sm:$0xf] %vm875_vm2, %v860_v8  ;;  %v738_v7 = vadd.f32 1.0, %v1067_v11  ;;  %v506_v42 = vmul.f32 %v457_v14, %v1778_v1  ;;  %v1806_v25 = vadd.f32 %v1727_v15, %v349_v10  ;;  %v407_v27 = vmul.f32 0.5, %v1730_v55 }
 0x103   :  { %923 = vst.msk [vmem:[%s1866_s3 + $0xbc] sm:$0xf] %vm875_vm2, %v873_v12  ;;  %1074 = vtanh.f32 %v641_v5  ;;  %v519_v28 = vmul.f32 %v470_v59, %v1785_v6  ;;  %v420_v31 = vmul.f32 0.5, %v1737_v24  ;;  %v458_v30 = vmul.f32 %v1798_v22, %v1798_v22 }
 0x104   :  { %v787_v26 = vmul.f32 %v738_v7, %v395_v13  ;;  %v1069_v29 = vpop.eup %1068  ;;  %v555_v35 = vmul.f32 0.044715, %v506_v42  ;;  %v471_v46 = vmul.f32 %v1806_v25, %v1806_v25  ;;  %v433_v16 = vmul.f32 0.5, %v1740_v43 }
 0x105   :  { %v750_v15 = vadd.f32 1.0, %v1069_v29  ;;  %v568_v23 = vmul.f32 0.044715, %v519_v28  ;;  %v507_v47 = vmul.f32 %v458_v30, %v1798_v22  ;;  %v396_v33 = vmul.f32 0.5, %v1759_v40 }
 0x106   :  { %v1071_v36 = vpop.eup %1070  ;;  %v836_v41 = vpack.c.bf16 %v787_v26, %v787_v26  ;;  %v604_v17 = vadd.f32 %v555_v35, %v1778_v1  ;;  %v520_v24 = vmul.f32 %v471_v46, %v1806_v25  ;;  %v408_v20 = vmul.f32 0.5, %v1778_v1 }
 0x107   :  { %v1073_v55 = vpop.eup %1072  ;;  %v763_v21 = vadd.f32 1.0, %v1071_v36  ;;  %v799_v48 = vmul.f32 %v750_v15, %v407_v27  ;;  %v617_v49 = vadd.f32 %v568_v23, %v1785_v6  ;;  %v556_v52 = vmul.f32 0.044715, %v507_v47 }
 0x108   :  { %886 = vst.msk [vmem:[%s1866_s3 + $0x28] sm:$0xf] %vm875_vm2, %v836_v41  ;;  %v776_v19 = vadd.f32 1.0, %v1073_v55  ;;  %v653_v43 = vmul.f32 0.7978846, %v604_v17  ;;  %v421_v37 = vmul.f32 0.5, %v1785_v6 }
 0x109   :  { %v812_v18 = vmul.f32 %v763_v21, %v420_v31  ;;  %v569_v62 = vmul.f32 0.044715, %v520_v24  ;;  %v1075_v53 = vpop.eup %1074  ;;  %v848_v54 = vpack.c.bf16 %v799_v48, %v799_v48  ;;  %v666_v34 = vmul.f32 0.7978846, %v617_v49 }
 0x10a   :  { %v825_v38 = vmul.f32 %v776_v19, %v433_v16  ;;  %v739_v39 = vadd.f32 1.0, %v1075_v53  ;;  %1076 = vtanh.f32 %v653_v43  ;;  %v605_v56 = vadd.f32 %v556_v52, %v1798_v22 }
 0x10b   :  { %v861_v32 = vpack.c.bf16 %v812_v18, %v812_v18  ;;  %898 = vst.msk [vmem:[%s1866_s3 + $0x58] sm:$0xf] %vm875_vm2, %v848_v54  ;;  %1078 = vtanh.f32 %v666_v34  ;;  %v618_v58 = vadd.f32 %v569_v62, %v1806_v25  ;;  %v409_v9 = vmul.f32 0.5, %v1798_v22 }
 0x10c   :  { %v874_v57 = vpack.c.bf16 %v825_v38, %v825_v38  ;;  %v788_v40 = vmul.f32 %v739_v39, %v396_v33  ;;  %v654_v60 = vmul.f32 0.7978846, %v605_v56  ;;  %v422_v12 = vmul.f32 0.5, %v1806_v25 }
 0x10d   :  { %911 = vst.msk [vmem:[%s1866_s3 + $0x8c] sm:$0xf] %vm875_vm2, %v861_v32  ;;  %v667_v45 = vmul.f32 0.7978846, %v618_v58 }
 0x10e   :  { %924 = vst.msk [vmem:[%s1866_s3 + $0xc0] sm:$0xf] %vm875_vm2, %v874_v57  ;;  %v837_v61 = vpack.c.bf16 %v788_v40, %v788_v40  ;;  %1080 = vtanh.f32 %v654_v60 }
 0x10f   :  { %1082 = vtanh.f32 %v667_v45 }
 0x110   :  { %v1077_v63 = vpop.eup %1076  ;;  %887 = vst.msk [vmem:[%s1866_s3 + $0x2c] sm:$0xf] %vm875_vm2, %v837_v61 }
 0x111   :  { %v1079_v50 = vpop.eup %1078  ;;  %v751_v44 = vadd.f32 1.0, %v1077_v63 }
 0x112   :  { %v764_v51 = vadd.f32 1.0, %v1079_v50 }
 0x113   :  { %v800_v0 = vmul.f32 %v751_v44, %v408_v20 }
 0x114   :  { %v1081_v3 = vpop.eup %1080  ;;  %v813_v4 = vmul.f32 %v764_v51, %v421_v37 }
 0x115   :  { %v1083_v2 = vpop.eup %1082  ;;  %v849_v8 = vpack.c.bf16 %v800_v0, %v800_v0  ;;  %v752_v10 = vadd.f32 1.0, %v1081_v3 }
 0x116   :  { %v862_v11 = vpack.c.bf16 %v813_v4, %v813_v4  ;;  %v765_v13 = vadd.f32 1.0, %v1083_v2 }
 0x117   :  { %899 = vst.msk [vmem:[%s1866_s3 + $0x5c] sm:$0xf] %vm875_vm2, %v849_v8  ;;  %v801_v1 = vmul.f32 %v752_v10, %v409_v9 }
 0x118   :  { %912 = vst.msk [vmem:[%s1866_s3 + $0x90] sm:$0xf] %vm875_vm2, %v862_v11  ;;  %v814_v6 = vmul.f32 %v765_v13, %v422_v12 }
 0x119   :  { %v850_v14 = vpack.c.bf16 %v801_v1, %v801_v1 }
 0x11a   :  { %v863_v7 = vpack.c.bf16 %v814_v6, %v814_v6 }
 0x11b   :  { %900 = vst.msk [vmem:[%s1866_s3 + $0x60] sm:$0xf] %vm875_vm2, %v850_v14 }
 0x11c   :  { %913 = vst.msk [vmem:[%s1866_s3 + $0x94] sm:$0xf] %vm875_vm2, %v863_v7 }

// kernel: conv_encoder_forward.7
= control target key start
LH: loop header
LB: loop body
LE: loop exit
PB: predicated region body
PF: predicated region fallthrough
CT: control target
= control target key end

     0   :  { %vm631_vm0 = vcmask 261120   ;;  %vm1596_vm1 = vcmask 257024   ;;  %s3403_s1 = inlined_call_operand.vmem [shape: bf16[288,32], index: 1, kind: input, shape index: {}]   ;;  %s3404_s0 = inlined_call_operand.vmem [shape: bf16[392,288], index: 0, kind: input, shape index: {}]   ;;  %s3405_s2 = inlined_call_operand.vmem [shape: f32[1,32], index: 2, kind: input, shape index: {}]   ;;  %s3406_s3 = inlined_call_operand.vmem [shape: bf16[392,32], index: 3, kind: output, shape index: {}]  }
   0x1   :  { %v2114_v0 = vld [vmem:[%s3403_s1 + $0x38] sm:$0xff]  ;;  %v2272_v2 = vld [vmem:[%s3403_s1 + $0x88] sm:$0xff]  ;;  %v2113_v3 = vld [vmem:[%s3403_s1 + $0x30] sm:$0xff] }
   0x2   :  { %v2122_v1 = vld [vmem:[%s3403_s1 + $0x78] sm:$0xff]  ;;  %707 = vmatpush.bf16.msra.mxu0 %v2114_v0  ;;  %2125 = vmatpush.bf16.msra.mxu3 %v2114_v0  ;;  %v2121_v4 = vld [vmem:[%s3403_s1 + $0x70] sm:$0xff]  ;;  %v2284_v5 = vld [vmem:[%s3403_s1 + $0x80] sm:$0xff] }
   0x3   :  { %840 = vmatpush.bf16.msra.mxu1 %v2122_v1  ;;  %979 = vmatpush.bf16.msra.mxu2 %v2272_v2  ;;  %v1660_v6 = vld [vmem:[%s3404_s0 + $0x8] sm:$0xf]  ;;  %v2037_v7 = vld [vmem:[%s3404_s0 + $0x10] sm:$0xf0]  ;;  %v2111_v11 = vld [vmem:[%s3403_s1 + $0x20] sm:$0xff] }
   0x4   :  { %v1661_v8 = vor.u32 %v2037_v7, %v1660_v6  ;;  %v2112_v9 = vld [vmem:[%s3403_s1 + $0x28] sm:$0xff]  ;;  %v2119_v12 = vld [vmem:[%s3403_s1 + $0x60] sm:$0xff]  ;;  %v2110_v13 = vld [vmem:[%s3403_s1 + $0x18] sm:$0xff] }
   0x5   :  { %v2120_v10 = vld [vmem:[%s3403_s1 + $0x68] sm:$0xff]  ;;  %v2118_v14 = vld [vmem:[%s3403_s1 + $0x58] sm:$0xff]  ;;  %v2109_v15 = vld [vmem:[%s3403_s1 + $0x10] sm:$0xff] }
   0x6   :  { %708 = vmatpush.bf16.msra.mxu0 %v2113_v3  ;;  %2126 = vmatpush.bf16.msra.mxu3 %v2113_v3  ;;  %v2117_v16 = vld [vmem:[%s3403_s1 + $0x50] sm:$0xff]  ;;  %v1672_v17 = vld [vmem:[%s3404_s0 + $0x20] sm:$0xf]  ;;  %v2040_v18 = vld [vmem:[%s3404_s0 + $0x28] sm:$0xf0] }
   0x7   :  { %841 = vmatpush.bf16.msra.mxu1 %v2121_v4  ;;  %980 = vmatpush.bf16.msra.mxu2 %v2284_v5  ;;  %v1673_v19 = vor.u32 %v2040_v18, %v1672_v17  ;;  %v2108_v20 = vld [vmem:[%s3403_s1 + $0x8] sm:$0xff]  ;;  %v2107_v22 = vld [vmem:[%s3403_s1] sm:$0xff]  ;;  %v2093_v27 = vld [vmem:[%s3404_s0 + $0x1d0] sm:$0xf0] }
   0x8   :  { %v2116_v21 = vld [vmem:[%s3403_s1 + $0x48] sm:$0xff]  ;;  %v2115_v23 = vld [vmem:[%s3403_s1 + $0x40] sm:$0xff]  ;;  %v1654_v29 = vld [vmem:[%s3404_s0 + $0xc] sm:$0xf0] }
   0x9   :  { %v1652_v24 = vld [vmem:[%s3404_s0] sm:$0xf]  ;;  %v2036_v25 = vld [vmem:[%s3404_s0 + $0x8] sm:$0xf0]  ;;  %v1880_v26 = vld [vmem:[%s3404_s0 + $0x1c8] sm:$0xf] }
   0xa   :  { %2010 = vmatmul.msk.bf16.vlgmr.msra.gmra.mxu2 %vm631_vm0, %v1661_v8  ;;  %709 = vmatpush.bf16.msra.mxu0 %v2112_v9  ;;  %v2035_v28 = vld [vmem:[%s3404_s0 + $0x4] sm:$0xf]  ;;  %v1653_v30 = vor.u32 %v2036_v25, %v1652_v24  ;;  %v1881_v31 = vor.u32 %v2093_v27, %v1880_v26  ;;  %v1684_v33 = vld [vmem:[%s3404_s0 + $0x38] sm:$0xf]  ;;  %v1892_v38 = vld [vmem:[%s3404_s0 + $0x1e0] sm:$0xf] }
   0xb   :  { %2127 = vmatpush.bf16.msra.mxu3 %v2112_v9  ;;  %842 = vmatpush.bf16.msra.mxu1 %v2120_v10  ;;  %v1657_v32 = vor.u32 %v2035_v28, %v1654_v29  ;;  %v2043_v34 = vld [vmem:[%s3404_s0 + $0x40] sm:$0xf0]  ;;  %v1664_v36 = vld [vmem:[%s3404_s0 + $0x18] sm:$0xf]  ;;  %v2096_v39 = vld [vmem:[%s3404_s0 + $0x1e8] sm:$0xf0] }
   0xc   :  { %v1685_v35 = vor.u32 %v2043_v34, %v1684_v33  ;;  %v2039_v37 = vld [vmem:[%s3404_s0 + $0x20] sm:$0xf0]  ;;  %v2038_v40 = vld [vmem:[%s3404_s0 + $0x1c] sm:$0xf]  ;;  %v1666_v41 = vld [vmem:[%s3404_s0 + $0x24] sm:$0xf0]  ;;  %v1893_v43 = vor.u32 %v2096_v39, %v1892_v38 }
   0xd   :  { %v1665_v42 = vor.u32 %v2039_v37, %v1664_v36  ;;  %v1669_v44 = vor.u32 %v2038_v40, %v1666_v41  ;;  %v1696_v45 = vld [vmem:[%s3404_s0 + $0x50] sm:$0xf]  ;;  %v2046_v46 = vld [vmem:[%s3404_s0 + $0x58] sm:$0xf0]  ;;  %v1904_v50 = vld [vmem:[%s3404_s0 + $0x1f8] sm:$0xf] }
   0xe   :  { %710 = vmatpush.bf16.msra.mxu0 %v2111_v11  ;;  %v1697_v47 = vor.u32 %v2046_v46, %v1696_v45  ;;  %v1676_v48 = vld [vmem:[%s3404_s0 + $0x30] sm:$0xf]  ;;  %v2042_v49 = vld [vmem:[%s3404_s0 + $0x38] sm:$0xf0]  ;;  %v2099_v51 = vld [vmem:[%s3404_s0 + $0x200] sm:$0xf0] }
   0xf   :  { %2128 = vmatpush.bf16.msra.mxu3 %v2111_v11  ;;  %843 = vmatpush.bf16.msra.mxu1 %v2119_v12  ;;  %v2041_v52 = vld [vmem:[%s3404_s0 + $0x34] sm:$0xf]  ;;  %v1678_v53 = vld [vmem:[%s3404_s0 + $0x3c] sm:$0xf0]  ;;  %v1677_v54 = vor.u32 %v2042_v49, %v1676_v48  ;;  %v1905_v55 = vor.u32 %v2099_v51, %v1904_v50  ;;  %v1708_v57 = vld [vmem:[%s3404_s0 + $0x68] sm:$0xf] }
  0x10   :  { %v1681_v56 = vor.u32 %v2041_v52, %v1678_v53  ;;  %v2049_v58 = vld [vmem:[%s3404_s0 + $0x70] sm:$0xf0]  ;;  %v1688_v60 = vld [vmem:[%s3404_s0 + $0x48] sm:$0xf]  ;;  %v1916_v62 = vld [vmem:[%s3404_s0 + $0x210] sm:$0xf] }
  0x11   :  { %v1709_v59 = vor.u32 %v2049_v58, %v1708_v57  ;;  %v2045_v61 = vld [vmem:[%s3404_s0 + $0x50] sm:$0xf0]  ;;  %v2102_v63 = vld [vmem:[%s3404_s0 + $0x218] sm:$0xf0]  ;;  %v2044_v0 = vld [vmem:[%s3404_s0 + $0x4c] sm:$0xf] }
  0x12   :  { %711 = vmatpush.bf16.msra.mxu0 %v2110_v13  ;;  %v1917_v3 = vor.u32 %v2102_v63, %v1916_v62  ;;  %v2052_v6 = vld [vmem:[%s3404_s0 + $0x88] sm:$0xf0]  ;;  %v1700_v8 = vld [vmem:[%s3404_s0 + $0x60] sm:$0xf]  ;;  %v2105_v11 = vld [vmem:[%s3404_s0 + $0x230] sm:$0xf0] }
  0x13   :  { %2129 = vmatpush.bf16.msra.mxu3 %v2110_v13  ;;  %844 = vmatpush.bf16.msra.mxu1 %v2118_v14  ;;  %v2048_v9 = vld [vmem:[%s3404_s0 + $0x68] sm:$0xf0]  ;;  %v1702_v13 = vld [vmem:[%s3404_s0 + $0x6c] sm:$0xf0]  ;;  %v1732_v17 = vld [vmem:[%s3404_s0 + $0x98] sm:$0xf] }
  0x14   :  { %v2055_v18 = vld [vmem:[%s3404_s0 + $0xa0] sm:$0xf0]  ;;  %v2050_v24 = vld [vmem:[%s3404_s0 + $0x7c] sm:$0xf]  ;;  %v1714_v25 = vld [vmem:[%s3404_s0 + $0x84] sm:$0xf0] }
  0x15   :  { %v1717_v28 = vor.u32 %v2050_v24, %v1714_v25  ;;  %v1744_v29 = vld [vmem:[%s3404_s0 + $0xb0] sm:$0xf]  ;;  %v2054_v33 = vld [vmem:[%s3404_s0 + $0x98] sm:$0xf0]  ;;  %v2053_v34 = vld [vmem:[%s3404_s0 + $0x94] sm:$0xf] }
  0x16   :  { %712 = vmatpush.bf16.msra.mxu0 %v2109_v15  ;;  %v2092_v36 = vld [vmem:[%s3404_s0 + $0x1cc] sm:$0xf]  ;;  %v1882_v37 = vld [vmem:[%s3404_s0 + $0x1d4] sm:$0xf0]  ;;  %v1756_v41 = vld [vmem:[%s3404_s0 + $0xc8] sm:$0xf] }
  0x17   :  { %2130 = vmatpush.bf16.msra.mxu3 %v2109_v15  ;;  %845 = vmatpush.bf16.msra.mxu1 %v2117_v16  ;;  %v1885_v40 = vor.u32 %v2092_v36, %v1882_v37  ;;  %v2057_v45 = vld [vmem:[%s3404_s0 + $0xb0] sm:$0xf0]  ;;  %v2056_v46 = vld [vmem:[%s3404_s0 + $0xac] sm:$0xf]  ;;  %v2095_v48 = vld [vmem:[%s3404_s0 + $0x1e4] sm:$0xf] }
  0x18   :  { %v1894_v49 = vld [vmem:[%s3404_s0 + $0x1ec] sm:$0xf0]  ;;  %v2541_v58 = vld [vmem:[%s3405_s2] ss:$0 sm:$0xff]  ;;  %v2098_v63 = vld [vmem:[%s3404_s0 + $0x1fc] sm:$0xf] }
  0x19   :  { %v1897_v53 = vor.u32 %v2095_v48, %v1894_v49  ;;  %v1750_v62 = vld [vmem:[%s3404_s0 + $0xcc] sm:$0xf0]  ;;  %v2063_v24 = vld [vmem:[%s3404_s0 + $0xe0] sm:$0xf0]  ;;  %v2062_v25 = vld [vmem:[%s3404_s0 + $0xdc] sm:$0xf] }
  0x1a   :  { %2011 = vmatmul.msk.bf16.gmra.mxu2 %vm631_vm0, %v1673_v19  ;;  %713 = vmatpush.bf16.msra.mxu0 %v2108_v20  ;;  %v1733_v19 = vor.u32 %v2055_v18, %v1732_v17 }
  0x1b   :  { %2131 = vmatpush.bf16.msra.mxu3 %v2108_v20  ;;  %846 = vmatpush.bf16.msra.mxu1 %v2116_v21  ;;  %v2466_v20 = vld [vmem:[%s3404_s0 + $0x240] sm:$0xff] }
  0x1e   :  { %714 = vmatpush.bf16.msra.mxu0 %v2107_v22 }
  0x1f   :  { %2132 = vmatpush.bf16.msra.mxu3 %v2107_v22  ;;  %847 = vmatpush.bf16.msra.mxu1 %v2115_v23  ;;  %v2051_v22 = vld [vmem:[%s3404_s0 + $0x80] sm:$0xf0] }
  0x21   :  { %715 = vmatmul.bf16.vlgmr.msra.gmra.mxu0 %v1653_v30  ;;  %v2058_v30 = vld [vmem:[%s3404_s0 + $0xb8] sm:$0xf0] }
  0x22   :  { %810 = vmatmul.bf16.vlgmr.msra.gmra.mxu3 %v1881_v31  ;;  %848 = vmatmul.bf16.vlgmr.msra.gmra.mxu1 %v1657_v32  ;;  %v1745_v31 = vor.u32 %v2058_v30, %v1744_v29  ;;  %v1724_v32 = vld [vmem:[%s3404_s0 + $0x90] sm:$0xf]  ;;  %v2101_v29 = vld [vmem:[%s3404_s0 + $0x214] sm:$0xf]  ;;  %v1918_v30 = vld [vmem:[%s3404_s0 + $0x21c] sm:$0xf0] }
  0x23   :  { %2133 = vmatpush.bf16.msrb.mxu3 %v2122_v1  ;;  %v1690_v1 = vld [vmem:[%s3404_s0 + $0x54] sm:$0xf0]  ;;  %v1725_v38 = vor.u32 %v2054_v33, %v1724_v32 }
  0x27   :  { %2134 = vmatpush.bf16.msrb.mxu3 %v2121_v4  ;;  %v1693_v4 = vor.u32 %v2044_v0, %v1690_v1  ;;  %v1906_v0 = vld [vmem:[%s3404_s0 + $0x204] sm:$0xf0] }
  0x2a   :  { %2012 = vmatmul.msk.bf16.gmra.mxu2 %vm631_vm0, %v1685_v35  ;;  %v1726_v35 = vld [vmem:[%s3404_s0 + $0x9c] sm:$0xf0] }
  0x2b   :  { %2135 = vmatpush.bf16.msrb.mxu3 %v2120_v10  ;;  %v1928_v10 = vld [vmem:[%s3404_s0 + $0x228] sm:$0xf]  ;;  %v1729_v39 = vor.u32 %v2053_v34, %v1726_v35 }
  0x2c   :  { %v1929_v15 = vor.u32 %v2105_v11, %v1928_v10  ;;  %v1780_v10 = vld [vmem:[%s3404_s0 + $0xf8] sm:$0xf]  ;;  %v2067_v11 = vld [vmem:[%s3404_s0 + $0x100] sm:$0xf0] }
  0x2f   :  { %2136 = vmatpush.bf16.msrb.mxu3 %v2119_v12  ;;  %v2047_v12 = vld [vmem:[%s3404_s0 + $0x64] sm:$0xf] }
  0x31   :  { %720 = vmatmul.bf16.gmra.mxu0 %v1665_v42  ;;  %v2061_v42 = vld [vmem:[%s3404_s0 + $0xd0] sm:$0xf0] }
  0x32   :  { %815 = vmatmul.bf16.gmra.mxu3 %v1893_v43  ;;  %853 = vmatmul.bf16.gmra.mxu1 %v1669_v44  ;;  %v1757_v43 = vor.u32 %v2061_v42, %v1756_v41  ;;  %v1736_v44 = vld [vmem:[%s3404_s0 + $0xa8] sm:$0xf] }
  0x33   :  { %2137 = vmatpush.bf16.msrb.mxu3 %v2118_v14  ;;  %v1701_v14 = vor.u32 %v2048_v9, %v1700_v8  ;;  %v1737_v51 = vor.u32 %v2057_v45, %v1736_v44 }
  0x37   :  { %2138 = vmatpush.bf16.msrb.mxu3 %v2117_v16  ;;  %v1705_v16 = vor.u32 %v2047_v12, %v1702_v13 }
  0x3a   :  { %2013 = vmatmul.msk.bf16.gmra.mxu2 %vm631_vm0, %v1697_v47  ;;  %v1738_v47 = vld [vmem:[%s3404_s0 + $0xb4] sm:$0xf0] }
  0x3b   :  { %2139 = vmatpush.bf16.msrb.mxu3 %v2116_v21  ;;  %v1712_v21 = vld [vmem:[%s3404_s0 + $0x78] sm:$0xf]  ;;  %v1741_v52 = vor.u32 %v2056_v46, %v1738_v47  ;;  %v1792_v46 = vld [vmem:[%s3404_s0 + $0x110] sm:$0xf]  ;;  %v2070_v47 = vld [vmem:[%s3404_s0 + $0x118] sm:$0xf0] }
  0x3c   :  { %v1713_v26 = vor.u32 %v2051_v22, %v1712_v21 }
  0x3f   :  { %2140 = vmatpush.bf16.msrb.mxu3 %v2115_v23  ;;  %v395_v23 = vunpack.c.l.b16 %v2466_v20 }
  0x41   :  { %725 = vmatmul.bf16.gmra.mxu0 %v1677_v54  ;;  %v470_v27 = vpack.c.b16 %v395_v23, %v395_v23  ;;  %v1768_v54 = vld [vmem:[%s3404_s0 + $0xe0] sm:$0xf]  ;;  %v1760_v23 = vld [vmem:[%s3404_s0 + $0xd8] sm:$0xf] }
  0x42   :  { %820 = vmatmul.bf16.gmra.mxu3 %v1905_v55  ;;  %858 = vmatmul.bf16.gmra.mxu1 %v1681_v56  ;;  %v2064_v55 = vld [vmem:[%s3404_s0 + $0xe8] sm:$0xf0]  ;;  %v1761_v35 = vor.u32 %v2063_v24, %v1760_v23 }
  0x43   :  { %2141 = vmatpush.bf16.msra.mxu3 %v2272_v2  ;;  %v1689_v2 = vor.u32 %v2045_v61, %v1688_v60  ;;  %v1769_v57 = vor.u32 %v2064_v55, %v1768_v54  ;;  %v2060_v60 = vld [vmem:[%s3404_s0 + $0xc8] sm:$0xf0]  ;;  %v2059_v61 = vld [vmem:[%s3404_s0 + $0xc4] sm:$0xf] }
  0x47   :  { %2142 = vmatpush.bf16.msra.mxu3 %v2284_v5  ;;  %v1720_v5 = vld [vmem:[%s3404_s0 + $0x80] sm:$0xf] }
  0x48   :  { %v1721_v7 = vor.u32 %v2052_v6, %v1720_v5  ;;  %v1909_v5 = vor.u32 %v2098_v63, %v1906_v0 }
  0x4a   :  { %2014 = vmatmul.msk.bf16.gmra.mxu2 %vm631_vm0, %v1709_v59  ;;  %v1748_v59 = vld [vmem:[%s3404_s0 + $0xc0] sm:$0xf] }
  0x51   :  { %730 = vmatmul.bf16.gmra.mxu0 %v1689_v2  ;;  %v1749_v2 = vor.u32 %v2060_v60, %v1748_v59 }
  0x52   :  { %825 = vmatmul.bf16.gmra.mxu3 %v1917_v3  ;;  %863 = vmatmul.bf16.gmra.mxu1 %v1693_v4  ;;  %v1753_v4 = vor.u32 %v2059_v61, %v1750_v62 }
  0x5a   :  { %2015 = vmatmul.msk.bf16.gmra.mxu2 %vm631_vm0, %v1721_v7 }
  0x61   :  { %735 = vmatmul.bf16.gmra.mxu0 %v1701_v14 }
  0x62   :  { %830 = vmatmul.bf16.gmra.mxu3 %v1929_v15  ;;  %868 = vmatmul.bf16.gmra.mxu1 %v1705_v16  ;;  %v1781_v16 = vor.u32 %v2067_v11, %v1780_v10 }
  0x6a   :  { %2016 = vmatmul.msk.bf16.gmra.mxu2 %vm631_vm0, %v1733_v19 }
  0x71   :  { %740 = vmatmul.bf16.gmra.mxu0 %v1713_v26 }
  0x72   :  { %835 = vmatmul.bf16.gmra.mxu3 %v470_v27  ;;  %873 = vmatmul.bf16.gmra.mxu1 %v1717_v28  ;;  %v1762_v28 = vld [vmem:[%s3404_s0 + $0xe4] sm:$0xf0] }
  0x73   :  { %v1765_v37 = vor.u32 %v2062_v25, %v1762_v28 }
  0x7a   :  { %2017 = vmatmul.msk.bf16.gmra.mxu2 %vm631_vm0, %v1745_v31 }
  0x81   :  { %745 = vmatmul.bf16.gmra.mxu0 %v1725_v38  ;;  %v1921_v38 = vor.u32 %v2101_v29, %v1918_v30 }
  0x82   :  { %878 = vmatmul.bf16.gmra.mxu1 %v1729_v39  ;;  %943 = vmatmul.bf16.vlgmr.msrb.gmra.mxu3 %v1885_v40 }
  0x8a   :  { %2018 = vmatmul.msk.bf16.gmra.mxu2 %vm631_vm0, %v1757_v43 }
  0x8d   :  { %v982_v50 = vpop.f32.mrf.mxu2 }
  0x91   :  { %750 = vmatmul.bf16.gmra.mxu0 %v1737_v51 }
  0x92   :  { %883 = vmatmul.bf16.gmra.mxu1 %v1741_v52  ;;  %948 = vmatmul.bf16.gmra.mxu3 %v1897_v53 }
  0x95   :  { %v984_v56 = vpop.f32.mrf.mxu2 }
  0x9a   :  { %2019 = vmatmul.msk.bf16.gmra.mxu2 %vm631_vm0, %v1769_v57 }
  0x9d   :  { %v987_v1 = vpop.f32.mrf.mxu2 }
  0x9e   :  { %v716_v3 = vpop.f32.mrf.mxu0 }
  0x9f   :  { %v717_v6 = vadd.f32 %v2541_v58, %v716_v3  ;;  %v849_v7 = vpop.f32.mrf.mxu1  ;;  %v2065_v3 = vld [vmem:[%s3404_s0 + $0xf4] sm:$0xf] }
  0xa1   :  { %v850_v8 = vadd.f32 %v849_v7, %v717_v6  ;;  %755 = vmatmul.bf16.gmra.mxu0 %v1749_v2  ;;  %v2066_v2 = vld [vmem:[%s3404_s0 + $0xf8] sm:$0xf0]  ;;  %v1774_v6 = vld [vmem:[%s3404_s0 + $0xfc] sm:$0xf0]  ;;  %v2104_v7 = vld [vmem:[%s3404_s0 + $0x22c] sm:$0xf] }
  0xa2   :  { %888 = vmatmul.bf16.gmra.mxu1 %v1753_v4  ;;  %953 = vmatmul.bf16.gmra.mxu3 %v1909_v5 }
  0xa3   :  { %v983_v9 = vadd.f32 %v982_v50, %v850_v8  ;;  %v1930_v8 = vld [vmem:[%s3404_s0 + $0x234] sm:$0xf0] }
  0xa5   :  { %v1155_v12 = vmul.f32 %v983_v9, %v983_v9  ;;  %v2569_v13 = vpop.f32.mrf.mxu3  ;;  %v989_v14 = vpop.f32.mrf.mxu2  ;;  %v1106_v53 = vmul.f32 0.5, %v983_v9 }
  0xa6   :  { %v718_v15 = vpop.f32.mrf.mxu0 }
  0xa7   :  { %v1204_v17 = vmul.f32 %v1155_v12, %v983_v9  ;;  %v719_v18 = vadd.f32 %v2541_v58, %v718_v15  ;;  %v851_v19 = vpop.f32.mrf.mxu1 }
  0xa9   :  { %v1253_v21 = vmul.f32 0.044715, %v1204_v17  ;;  %v852_v22 = vadd.f32 %v851_v19, %v719_v18  ;;  %v1777_v19 = vor.u32 %v2065_v3, %v1774_v6 }
  0xaa   :  { %2020 = vmatmul.msk.bf16.gmra.mxu2 %vm631_vm0, %v1781_v16 }
  0xab   :  { %v1302_v26 = vadd.f32 %v1253_v21, %v983_v9  ;;  %v985_v27 = vadd.f32 %v984_v56, %v852_v22  ;;  %v1793_v56 = vor.u32 %v2070_v47, %v1792_v46  ;;  %v1933_v21 = vor.u32 %v2104_v7, %v1930_v8 }
  0xad   :  { %v1351_v31 = vmul.f32 0.7978846, %v1302_v26  ;;  %v1156_v32 = vmul.f32 %v985_v27, %v985_v27  ;;  %v2591_v33 = vpop.f32.mrf.mxu3  ;;  %v2593_v34 = vpop.f32.mrf.mxu2  ;;  %v1107_v16 = vmul.f32 0.5, %v985_v27 }
  0xae   :  { %v721_v36 = vpop.f32.mrf.mxu0 }
  0xaf   :  { %2144 = vtanh.f32 %v1351_v31  ;;  %v1205_v39 = vmul.f32 %v1156_v32, %v985_v27  ;;  %v722_v40 = vadd.f32 %v2541_v58, %v721_v36  ;;  %v854_v41 = vpop.f32.mrf.mxu1  ;;  %v1804_v31 = vld [vmem:[%s3404_s0 + $0x128] sm:$0xf]  ;;  %v2073_v32 = vld [vmem:[%s3404_s0 + $0x130] sm:$0xf0] }
  0xb1   :  { %v1254_v42 = vmul.f32 0.044715, %v1205_v39  ;;  %v855_v43 = vadd.f32 %v854_v41, %v722_v40  ;;  %760 = vmatmul.bf16.gmra.mxu0 %v1761_v35 }
  0xb2   :  { %893 = vmatmul.bf16.gmra.mxu1 %v1765_v37  ;;  %958 = vmatmul.bf16.gmra.mxu3 %v1921_v38 }
  0xb3   :  { %v1303_v44 = vadd.f32 %v1254_v42, %v985_v27  ;;  %v2596_v45 = vadd.f32 %v987_v1, %v855_v43  ;;  %v1772_v1 = vld [vmem:[%s3404_s0 + $0xf0] sm:$0xf]  ;;  %v1805_v42 = vor.u32 %v2073_v32, %v1804_v31 }
  0xb4   :  { %v1773_v15 = vor.u32 %v2066_v2, %v1772_v1 }
  0xb5   :  { %v2145_v48 = vpop.eup %2144  ;;  %v1352_v49 = vmul.f32 0.7978846, %v1303_v44  ;;  %v1157_v50 = vmul.f32 %v2596_v45, %v2596_v45  ;;  %v2606_v51 = vpop.f32.mrf.mxu3 }
  0xb6   :  { %v2608_v52 = vpop.f32.mrf.mxu2  ;;  %v1449_v54 = vadd.f32 1.0, %v2145_v48  ;;  %v723_v55 = vpop.f32.mrf.mxu0 }
  0xb7   :  { %2146 = vtanh.f32 %v1352_v49  ;;  %v1206_v57 = vmul.f32 %v1157_v50, %v2596_v45  ;;  %v724_v59 = vadd.f32 %v2541_v58, %v723_v55  ;;  %v856_v60 = vpop.f32.mrf.mxu1 }
  0xb8   :  { %v1498_v61 = vmul.f32 %v1449_v54, %v1106_v53  ;;  %v1784_v53 = vld [vmem:[%s3404_s0 + $0x108] sm:$0xf]  ;;  %v396_v54 = vunpack.c.h.b16 %v2466_v20 }
  0xb9   :  { %v1255_v62 = vmul.f32 0.044715, %v1206_v57  ;;  %v857_v63 = vadd.f32 %v856_v60, %v724_v59  ;;  %v2068_v57 = vld [vmem:[%s3404_s0 + $0x10c] sm:$0xf]  ;;  %v1786_v59 = vld [vmem:[%s3404_s0 + $0x114] sm:$0xf0] }
  0xba   :  { %v1547_v0 = vpack.c.bf16 %v1498_v61, %v1498_v61  ;;  %2021 = vmatmul.msk.bf16.gmra.mxu2 %vm631_vm0, %v1793_v56  ;;  %v1789_v3 = vor.u32 %v2068_v57, %v1786_v59 }
  0xbb   :  { %v1304_v4 = vadd.f32 %v1255_v62, %v2596_v45  ;;  %v2623_v5 = vadd.f32 %v989_v14, %v857_v63 }
  0xbc   :  { %1597 = vst.msk [vmem:[%s3406_s3] sm:$0xf] %vm1596_vm1, %v1547_v0 }
  0xbd   :  { %v2147_v9 = vpop.eup %2146  ;;  %v1353_v10 = vmul.f32 0.7978846, %v1304_v4  ;;  %v1158_v11 = vmul.f32 %v2623_v5, %v2623_v5  ;;  %v2640_v12 = vpop.f32.mrf.mxu3  ;;  %v1109_v0 = vmul.f32 0.5, %v2623_v5  ;;  %v471_v4 = vpack.c.b16 %v396_v54, %v396_v54 }
  0xbe   :  { %v2642_v14 = vpop.f32.mrf.mxu2  ;;  %v1450_v17 = vadd.f32 1.0, %v2147_v9  ;;  %v726_v18 = vpop.f32.mrf.mxu0 }
  0xbf   :  { %2148 = vtanh.f32 %v1353_v10  ;;  %v1207_v22 = vmul.f32 %v1158_v11, %v2623_v5  ;;  %v727_v23 = vadd.f32 %v2541_v58, %v726_v18  ;;  %v859_v24 = vpop.f32.mrf.mxu1  ;;  %v2076_v18 = vld [vmem:[%s3404_s0 + $0x148] sm:$0xf0] }
  0xc0   :  { %v1499_v25 = vmul.f32 %v1450_v17, %v1107_v16  ;;  %v1816_v17 = vld [vmem:[%s3404_s0 + $0x140] sm:$0xf] }
  0xc1   :  { %v1256_v26 = vmul.f32 0.044715, %v1207_v22  ;;  %v860_v28 = vadd.f32 %v859_v24, %v727_v23  ;;  %765 = vmatmul.bf16.gmra.mxu0 %v1773_v15 }
  0xc2   :  { %v1548_v29 = vpack.c.bf16 %v1499_v25, %v1499_v25  ;;  %898 = vmatmul.bf16.gmra.mxu1 %v1777_v19  ;;  %963 = vmatmul.bf16.gmra.mxu3 %v1933_v21 }
  0xc3   :  { %v1305_v30 = vadd.f32 %v1256_v26, %v2623_v5  ;;  %v993_v27 = vadd.f32 %v2593_v34, %v860_v28  ;;  %v1108_v34 = vmul.f32 0.5, %v2596_v45  ;;  %v2069_v45 = vld [vmem:[%s3404_s0 + $0x110] sm:$0xf0]  ;;  %v1817_v28 = vor.u32 %v2076_v18, %v1816_v17 }
  0xc4   :  { %1598 = vst.msk [vmem:[%s3406_s3 + $0x4] sm:$0xf] %vm1596_vm1, %v1548_v29  ;;  %v1785_v63 = vor.u32 %v2069_v45, %v1784_v53 }
  0xc5   :  { %v2149_v35 = vpop.eup %2148  ;;  %v1354_v36 = vmul.f32 0.7978846, %v1305_v30  ;;  %v1159_v37 = vmul.f32 %v993_v27, %v993_v27  ;;  %v2658_v38 = vpop.f32.mrf.mxu3 }
  0xc6   :  { %v2660_v39 = vpop.f32.mrf.mxu2  ;;  %v1451_v40 = vadd.f32 1.0, %v2149_v35  ;;  %v728_v41 = vpop.f32.mrf.mxu0 }
  0xc7   :  { %2150 = vtanh.f32 %v1354_v36  ;;  %v1208_v43 = vmul.f32 %v1159_v37, %v993_v27  ;;  %v729_v44 = vadd.f32 %v2541_v58, %v728_v41  ;;  %v861_v46 = vpop.f32.mrf.mxu1 }
  0xc8   :  { %v1500_v47 = vmul.f32 %v1451_v40, %v1108_v34  ;;  %v1796_v34 = vld [vmem:[%s3404_s0 + $0x120] sm:$0xf]  ;;  %v2071_v40 = vld [vmem:[%s3404_s0 + $0x124] sm:$0xf] }
  0xc9   :  { %v1257_v48 = vmul.f32 0.044715, %v1208_v43  ;;  %v862_v49 = vadd.f32 %v861_v46, %v729_v44  ;;  %v1798_v43 = vld [vmem:[%s3404_s0 + $0x12c] sm:$0xf0]  ;;  %v1900_v44 = vld [vmem:[%s3404_s0 + $0x1e8] sm:$0xf] }
  0xca   :  { %v1549_v50 = vpack.c.bf16 %v1500_v47, %v1500_v47  ;;  %2022 = vmatmul.msk.bf16.gmra.mxu2 %vm631_vm0, %v1805_v42  ;;  %v2097_v46 = vld [vmem:[%s3404_s0 + $0x1f0] sm:$0xf0]  ;;  %v1801_v57 = vor.u32 %v2071_v40, %v1798_v43 }
  0xcb   :  { %v1306_v55 = vadd.f32 %v1257_v48, %v993_v27  ;;  %v2673_v56 = vadd.f32 %v2608_v52, %v862_v49  ;;  %v1901_v59 = vor.u32 %v2097_v46, %v1900_v44 }
  0xcc   :  { %1599 = vst.msk [vmem:[%s3406_s3 + $0x8] sm:$0xf] %vm1596_vm1, %v1549_v50 }
  0xcd   :  { %v2151_v60 = vpop.eup %2150  ;;  %v1355_v61 = vmul.f32 0.7978846, %v1306_v55  ;;  %v1160_v20 = vmul.f32 %v2673_v56, %v2673_v56  ;;  %v2687_v52 = vpop.f32.mrf.mxu3  ;;  %v1111_v45 = vmul.f32 0.5, %v2673_v56 }
  0xce   :  { %v2689_v62 = vpop.f32.mrf.mxu2  ;;  %v1452_v1 = vadd.f32 1.0, %v2151_v60  ;;  %v731_v2 = vpop.f32.mrf.mxu0 }
  0xcf   :  { %2152 = vtanh.f32 %v1355_v61  ;;  %v1209_v6 = vmul.f32 %v1160_v20, %v2673_v56  ;;  %v732_v7 = vadd.f32 %v2541_v58, %v731_v2  ;;  %v864_v8 = vpop.f32.mrf.mxu1 }
  0xd0   :  { %v1501_v9 = vmul.f32 %v1452_v1, %v1109_v0 }
  0xd1   :  { %v1258_v10 = vmul.f32 0.044715, %v1209_v6  ;;  %v865_v11 = vadd.f32 %v864_v8, %v732_v7  ;;  %770 = vmatmul.bf16.gmra.mxu0 %v1785_v63  ;;  %v2079_v6 = vld [vmem:[%s3404_s0 + $0x160] sm:$0xf0] }
  0xd2   :  { %v1550_v15 = vpack.c.bf16 %v1501_v9, %v1501_v9  ;;  %903 = vmatmul.bf16.gmra.mxu1 %v1789_v3  ;;  %968 = vmatmul.bf16.gmra.mxu3 %v471_v4  ;;  %v1828_v4 = vld [vmem:[%s3404_s0 + $0x158] sm:$0xf] }
  0xd3   :  { %v1307_v16 = vadd.f32 %v1258_v10, %v2673_v56  ;;  %v998_v5 = vadd.f32 %v2642_v14, %v865_v11  ;;  %v1110_v14 = vmul.f32 0.5, %v993_v27  ;;  %v2072_v27 = vld [vmem:[%s3404_s0 + $0x128] sm:$0xf0]  ;;  %v1829_v17 = vor.u32 %v2079_v6, %v1828_v4 }
  0xd4   :  { %1600 = vst.msk [vmem:[%s3406_s3 + $0xc] sm:$0xf] %vm1596_vm1, %v1550_v15  ;;  %v1797_v53 = vor.u32 %v2072_v27, %v1796_v34 }
  0xd5   :  { %v2153_v19 = vpop.eup %2152  ;;  %v1356_v21 = vmul.f32 0.7978846, %v1307_v16  ;;  %v1161_v22 = vmul.f32 %v998_v5, %v998_v5  ;;  %v2706_v23 = vpop.f32.mrf.mxu3 }
  0xd6   :  { %v2708_v24 = vpop.f32.mrf.mxu2  ;;  %v1453_v25 = vadd.f32 1.0, %v2153_v19  ;;  %v733_v26 = vpop.f32.mrf.mxu0 }
  0xd7   :  { %2154 = vtanh.f32 %v1356_v21  ;;  %v1210_v29 = vmul.f32 %v1161_v22, %v998_v5  ;;  %v734_v30 = vadd.f32 %v2541_v58, %v733_v26  ;;  %v866_v31 = vpop.f32.mrf.mxu1 }
  0xd8   :  { %v1502_v32 = vmul.f32 %v1453_v25, %v1110_v14 }
  0xd9   :  { %v1259_v35 = vmul.f32 0.044715, %v1210_v29  ;;  %v867_v36 = vadd.f32 %v866_v31, %v734_v30  ;;  %v2074_v29 = vld [vmem:[%s3404_s0 + $0x13c] sm:$0xf] }
  0xda   :  { %v1551_v37 = vpack.c.bf16 %v1502_v32, %v1502_v32  ;;  %2023 = vmatmul.msk.bf16.gmra.mxu2 %vm631_vm0, %v1817_v28  ;;  %v1808_v28 = vld [vmem:[%s3404_s0 + $0x138] sm:$0xf]  ;;  %v1810_v32 = vld [vmem:[%s3404_s0 + $0x144] sm:$0xf0] }
  0xdb   :  { %v1308_v41 = vadd.f32 %v1259_v35, %v998_v5  ;;  %v2722_v42 = vadd.f32 %v2660_v39, %v867_v36  ;;  %v1912_v35 = vld [vmem:[%s3404_s0 + $0x200] sm:$0xf]  ;;  %v2100_v36 = vld [vmem:[%s3404_s0 + $0x208] sm:$0xf0] }
  0xdc   :  { %1601 = vst.msk [vmem:[%s3406_s3 + $0x10] sm:$0xf] %vm1596_vm1, %v1551_v37 }
  0xdd   :  { %v2155_v47 = vpop.eup %2154  ;;  %v1357_v39 = vmul.f32 0.7978846, %v1308_v41  ;;  %v1162_v48 = vmul.f32 %v2722_v42, %v2722_v42  ;;  %v2739_v49 = vpop.f32.mrf.mxu3  ;;  %v1113_v43 = vmul.f32 0.5, %v2722_v42 }
  0xde   :  { %v2741_v50 = vpop.f32.mrf.mxu2  ;;  %v1454_v54 = vadd.f32 1.0, %v2155_v47  ;;  %v736_v55 = vpop.f32.mrf.mxu0  ;;  %v1813_v47 = vor.u32 %v2074_v29, %v1810_v32 }
  0xdf   :  { %2156 = vtanh.f32 %v1357_v39  ;;  %v1211_v60 = vmul.f32 %v1162_v48, %v2722_v42  ;;  %v737_v61 = vadd.f32 %v2541_v58, %v736_v55  ;;  %v869_v20 = vpop.f32.mrf.mxu1  ;;  %v1913_v39 = vor.u32 %v2100_v36, %v1912_v35 }
  0xe0   :  { %v1503_v63 = vmul.f32 %v1454_v54, %v1111_v45 }
  0xe1   :  { %v1260_v0 = vmul.f32 0.044715, %v1211_v60  ;;  %v870_v1 = vadd.f32 %v869_v20, %v737_v61  ;;  %775 = vmatmul.bf16.gmra.mxu0 %v1797_v53  ;;  %v1840_v61 = vld [vmem:[%s3404_s0 + $0x170] sm:$0xf]  ;;  %v2082_v20 = vld [vmem:[%s3404_s0 + $0x178] sm:$0xf0] }
  0xe2   :  { %v1552_v2 = vpack.c.bf16 %v1503_v63, %v1503_v63  ;;  %908 = vmatmul.bf16.gmra.mxu1 %v1801_v57  ;;  %2030 = vmatmul.msk.bf16.vlgmr.msra.gmra.mxu3 %vm631_vm0, %v1901_v59 }
  0xe3   :  { %v1309_v56 = vadd.f32 %v1260_v0, %v2722_v42  ;;  %v1003_v3 = vadd.f32 %v2689_v62, %v870_v1  ;;  %v1112_v62 = vmul.f32 0.5, %v998_v5  ;;  %v2075_v5 = vld [vmem:[%s3404_s0 + $0x140] sm:$0xf0] }
  0xe4   :  { %1602 = vst.msk [vmem:[%s3406_s3 + $0x14] sm:$0xf] %vm1596_vm1, %v1552_v2  ;;  %v1809_v41 = vor.u32 %v2075_v5, %v1808_v28  ;;  %v2103_v28 = vld [vmem:[%s3404_s0 + $0x220] sm:$0xf0] }
  0xe5   :  { %v2157_v7 = vpop.eup %2156  ;;  %v1358_v8 = vmul.f32 0.7978846, %v1309_v56  ;;  %v1163_v9 = vmul.f32 %v1003_v3, %v1003_v3  ;;  %v2759_v10 = vpop.f32.mrf.mxu3  ;;  %v1114_v56 = vmul.f32 0.5, %v1003_v3 }
  0xe6   :  { %v2761_v11 = vpop.f32.mrf.mxu2  ;;  %v1455_v15 = vadd.f32 1.0, %v2157_v7  ;;  %v738_v16 = vpop.f32.mrf.mxu0  ;;  %v1841_v7 = vor.u32 %v2082_v20, %v1840_v61 }
  0xe7   :  { %2158 = vtanh.f32 %v1358_v8  ;;  %v1212_v18 = vmul.f32 %v1163_v9, %v1003_v3  ;;  %v739_v19 = vadd.f32 %v2541_v58, %v738_v16  ;;  %v871_v21 = vpop.f32.mrf.mxu1 }
  0xe8   :  { %v1504_v22 = vmul.f32 %v1455_v15, %v1112_v62 }
  0xe9   :  { %v1261_v14 = vmul.f32 0.044715, %v1212_v18  ;;  %v872_v25 = vadd.f32 %v871_v21, %v739_v19  ;;  %v1820_v19 = vld [vmem:[%s3404_s0 + $0x150] sm:$0xf]  ;;  %v2077_v21 = vld [vmem:[%s3404_s0 + $0x154] sm:$0xf] }
  0xea   :  { %v1553_v26 = vpack.c.bf16 %v1504_v22, %v1504_v22  ;;  %2024 = vmatmul.msk.bf16.gmra.mxu2 %vm631_vm0, %v1829_v17 }
  0xeb   :  { %v1310_v30 = vadd.f32 %v1261_v14, %v1003_v3  ;;  %v2775_v31 = vadd.f32 %v2708_v24, %v872_v25  ;;  %v2078_v3 = vld [vmem:[%s3404_s0 + $0x158] sm:$0xf0]  ;;  %v1822_v25 = vld [vmem:[%s3404_s0 + $0x15c] sm:$0xf0] }
  0xec   :  { %1603 = vst.msk [vmem:[%s3406_s3 + $0x18] sm:$0xf] %vm1596_vm1, %v1553_v26  ;;  %v1924_v26 = vld [vmem:[%s3404_s0 + $0x218] sm:$0xf]  ;;  %v1821_v35 = vor.u32 %v2078_v3, %v1820_v19 }
  0xed   :  { %v2159_v37 = vpop.eup %2158  ;;  %v1359_v24 = vmul.f32 0.7978846, %v1310_v30  ;;  %v1164_v34 = vmul.f32 %v2775_v31, %v2775_v31  ;;  %v2792_v27 = vpop.f32.mrf.mxu3  ;;  %v1115_v36 = vmul.f32 0.5, %v2775_v31 }
  0xee   :  { %v2794_v40 = vpop.f32.mrf.mxu2  ;;  %v1456_v44 = vadd.f32 1.0, %v2159_v37  ;;  %v741_v46 = vpop.f32.mrf.mxu0 }
  0xef   :  { %2160 = vtanh.f32 %v1359_v24  ;;  %v1213_v48 = vmul.f32 %v1164_v34, %v2775_v31  ;;  %v742_v53 = vadd.f32 %v2541_v58, %v741_v46  ;;  %v874_v45 = vpop.f32.mrf.mxu1  ;;  %v1825_v34 = vor.u32 %v2077_v21, %v1822_v25  ;;  %v1936_v21 = vld [vmem:[%s3404_s0 + $0x230] sm:$0xf] }
  0xf0   :  { %v1505_v54 = vmul.f32 %v1456_v44, %v1113_v43  ;;  %v814_v25 = vadd.f32 %v2541_v58, %v2591_v33 }
  0xf1   :  { %v1262_v55 = vmul.f32 0.044715, %v1213_v48  ;;  %v875_v57 = vadd.f32 %v874_v45, %v742_v53  ;;  %780 = vmatmul.bf16.gmra.mxu0 %v1809_v41  ;;  %v1925_v41 = vor.u32 %v2103_v28, %v1924_v26 }
  0xf2   :  { %v1554_v59 = vpack.c.bf16 %v1505_v54, %v1505_v54  ;;  %913 = vmatmul.bf16.gmra.mxu1 %v1813_v47  ;;  %2031 = vmatmul.msk.bf16.gmra.mxu3 %vm631_vm0, %v1913_v39  ;;  %v1852_v54 = vld [vmem:[%s3404_s0 + $0x188] sm:$0xf] }
  0xf3   :  { %v1311_v42 = vadd.f32 %v1262_v55, %v2775_v31  ;;  %v2802_v60 = vadd.f32 %v2741_v50, %v875_v57  ;;  %v2085_v55 = vld [vmem:[%s3404_s0 + $0x190] sm:$0xf0]  ;;  %v812_v57 = vadd.f32 %v2541_v58, %v2569_v13 }
  0xf4   :  { %1604 = vst.msk [vmem:[%s3406_s3 + $0x1c] sm:$0xf] %vm1596_vm1, %v1554_v59  ;;  %v1853_v13 = vor.u32 %v2085_v55, %v1852_v54  ;;  %v817_v54 = vadd.f32 %v2541_v58, %v2606_v51 }
  0xf5   :  { %v2161_v63 = vpop.eup %2160  ;;  %v1360_v0 = vmul.f32 0.7978846, %v1311_v42  ;;  %v1165_v1 = vmul.f32 %v2802_v60, %v2802_v60  ;;  %v2816_v50 = vpop.f32.mrf.mxu3 }
  0xf6   :  { %v2818_v2 = vpop.f32.mrf.mxu2  ;;  %v1457_v4 = vadd.f32 1.0, %v2161_v63  ;;  %v743_v6 = vpop.f32.mrf.mxu0  ;;  %v1116_v63 = vmul.f32 0.5, %v2802_v60 }
  0xf7   :  { %2162 = vtanh.f32 %v1360_v0  ;;  %v1214_v8 = vmul.f32 %v1165_v1, %v2802_v60  ;;  %v744_v9 = vadd.f32 %v2541_v58, %v743_v6  ;;  %v876_v62 = vpop.f32.mrf.mxu1 }
  0xf8   :  { %v1506_v15 = vmul.f32 %v1457_v4, %v1114_v56 }
  0xf9   :  { %v1263_v16 = vmul.f32 0.044715, %v1214_v8  ;;  %v877_v17 = vadd.f32 %v876_v62, %v744_v9 }
  0xfa   :  { %v1555_v18 = vpack.c.bf16 %v1506_v15, %v1506_v15  ;;  %2025 = vmatmul.msk.bf16.gmra.mxu2 %vm631_vm0, %v1841_v7  ;;  %v1832_v15 = vld [vmem:[%s3404_s0 + $0x168] sm:$0xf] }
  0xfb   :  { %v1312_v22 = vadd.f32 %v1263_v16, %v2802_v60  ;;  %v2834_v14 = vadd.f32 %v2761_v11, %v877_v17  ;;  %v2081_v60 = vld [vmem:[%s3404_s0 + $0x170] sm:$0xf0]  ;;  %v2080_v17 = vld [vmem:[%s3404_s0 + $0x16c] sm:$0xf] }
  0xfc   :  { %1605 = vst.msk [vmem:[%s3406_s3 + $0x20] sm:$0xf] %vm1596_vm1, %v1555_v18  ;;  %v1834_v18 = vld [vmem:[%s3404_s0 + $0x174] sm:$0xf0] }
  0xfd   :  { %v2163_v5 = vpop.eup %2162  ;;  %v1361_v11 = vmul.f32 0.7978846, %v1312_v22  ;;  %v1166_v29 = vmul.f32 %v2834_v14, %v2834_v14  ;;  %v838_v30 = vpop.f32.mrf.mxu3  ;;  %v2106_v22 = vld [vmem:[%s3404_s0 + $0x238] sm:$0xf0] }
  0xfe   :  { %v2851_v32 = vpop.f32.mrf.mxu2  ;;  %v1458_v37 = vadd.f32 1.0, %v2163_v5  ;;  %v746_v24 = vpop.f32.mrf.mxu0  ;;  %v1837_v30 = vor.u32 %v2080_v17, %v1834_v18  ;;  %v2083_v18 = vld [vmem:[%s3404_s0 + $0x184] sm:$0xf] }
  0xff   :  { %2164 = vtanh.f32 %v1361_v11  ;;  %v1215_v43 = vmul.f32 %v1166_v29, %v2834_v14  ;;  %v747_v44 = vadd.f32 %v2541_v58, %v746_v24  ;;  %v879_v46 = vpop.f32.mrf.mxu1  ;;  %v1833_v29 = vor.u32 %v2081_v60, %v1832_v15  ;;  %v1844_v15 = vld [vmem:[%s3404_s0 + $0x180] sm:$0xf] }
 0x100   :  { %v1507_v47 = vmul.f32 %v1458_v37, %v1115_v36  ;;  %v1937_v24 = vor.u32 %v2106_v22, %v1936_v21  ;;  %v819_v21 = vadd.f32 %v2541_v58, %v2640_v12 }
 0x101   :  { %v1264_v39 = vmul.f32 0.044715, %v1215_v43  ;;  %v880_v48 = vadd.f32 %v879_v46, %v747_v44  ;;  %785 = vmatmul.bf16.gmra.mxu0 %v1821_v35  ;;  %v1117_v35 = vmul.f32 0.5, %v2834_v14 }
 0x102   :  { %v1556_v53 = vpack.c.bf16 %v1507_v47, %v1507_v47  ;;  %918 = vmatmul.bf16.gmra.mxu1 %v1825_v34  ;;  %2032 = vmatmul.msk.bf16.gmra.mxu3 %vm631_vm0, %v1925_v41 }
 0x103   :  { %v1313_v31 = vadd.f32 %v1264_v39, %v2834_v14  ;;  %v2859_v45 = vadd.f32 %v2794_v40, %v880_v48 }
 0x104   :  { %1606 = vst.msk [vmem:[%s3406_s3 + $0x24] sm:$0xf] %vm1596_vm1, %v1556_v53  ;;  %v1864_v53 = vld [vmem:[%s3404_s0 + $0x1a0] sm:$0xf] }
 0x105   :  { %v2165_v59 = vpop.eup %2164  ;;  %v1362_v42 = vmul.f32 0.7978846, %v1313_v31  ;;  %v1167_v40 = vmul.f32 %v2859_v45, %v2859_v45  ;;  %v944_v61 = vpop.f32.mrf.mxu3  ;;  %v2088_v31 = vld [vmem:[%s3404_s0 + $0x1a8] sm:$0xf0] }
 0x106   :  { %v2875_v20 = vpop.f32.mrf.mxu2  ;;  %v1459_v0 = vadd.f32 1.0, %v2165_v59  ;;  %v2878_v1 = vadd.f32 %v944_v61, %v812_v57  ;;  %v748_v56 = vpop.f32.mrf.mxu0  ;;  %v1865_v51 = vor.u32 %v2088_v31, %v1864_v53  ;;  %v822_v53 = vadd.f32 %v2541_v58, %v2658_v38 }
 0x107   :  { %2166 = vtanh.f32 %v1362_v42  ;;  %v1216_v4 = vmul.f32 %v1167_v40, %v2859_v45  ;;  %v749_v6 = vadd.f32 %v2541_v58, %v748_v56  ;;  %v881_v7 = vpop.f32.mrf.mxu1  ;;  %v1118_v40 = vmul.f32 0.5, %v2859_v45  ;;  %v112_v56 = vld [vmem:[%s3404_s0 + $0x248] sm:$0xf] }
 0x108   :  { %v1508_v8 = vmul.f32 %v1459_v0, %v1116_v63 }
 0x109   :  { %v1265_v9 = vmul.f32 0.044715, %v1216_v4  ;;  %v882_v62 = vadd.f32 %v881_v7, %v749_v6 }
 0x10a   :  { %v1557_v16 = vpack.c.bf16 %v1508_v8, %v1508_v8  ;;  %2026 = vmatmul.msk.bf16.gmra.mxu2 %vm631_vm0, %v1853_v13 }
 0x10b   :  { %v1314_v19 = vadd.f32 %v1265_v9, %v2859_v45  ;;  %v2897_v3 = vadd.f32 %v2818_v2, %v882_v62  ;;  %v397_v62 = vunpack.c.l.b16 %v112_v56 }
 0x10c   :  { %1607 = vst.msk [vmem:[%s3406_s3 + $0x28] sm:$0xf] %vm1596_vm1, %v1557_v16  ;;  %v2084_v16 = vld [vmem:[%s3404_s0 + $0x188] sm:$0xf0] }
 0x10d   :  { %v2167_v26 = vpop.eup %2166  ;;  %v1363_v28 = vmul.f32 0.7978846, %v1314_v19  ;;  %v1168_v2 = vmul.f32 %v2897_v3, %v2897_v3  ;;  %v946_v5 = vpop.f32.mrf.mxu3  ;;  %v1846_v19 = vld [vmem:[%s3404_s0 + $0x18c] sm:$0xf0] }
 0x10e   :  { %v2913_v11 = vpop.f32.mrf.mxu2  ;;  %v1460_v36 = vadd.f32 1.0, %v2167_v26  ;;  %v2916_v37 = vadd.f32 %v946_v5, %v814_v25  ;;  %v751_v33 = vpop.f32.mrf.mxu0  ;;  %v472_v5 = vpack.c.b16 %v397_v62, %v397_v62 }
 0x10f   :  { %2168 = vtanh.f32 %v1363_v28  ;;  %v1217_v34 = vmul.f32 %v1168_v2, %v2897_v3  ;;  %v752_v41 = vadd.f32 %v2541_v58, %v751_v33  ;;  %v884_v43 = vpop.f32.mrf.mxu1  ;;  %v1845_v2 = vor.u32 %v2084_v16, %v1844_v15  ;;  %v1858_v15 = vld [vmem:[%s3404_s0 + $0x1a4] sm:$0xf0] }
 0x110   :  { %v1509_v44 = vmul.f32 %v1460_v36, %v1117_v35  ;;  %v1849_v36 = vor.u32 %v2083_v18, %v1846_v19  ;;  %v824_v16 = vadd.f32 %v2541_v58, %v2687_v52 }
 0x111   :  { %v1266_v46 = vmul.f32 0.044715, %v1217_v34  ;;  %v885_v47 = vadd.f32 %v884_v43, %v752_v41  ;;  %790 = vmatmul.bf16.gmra.mxu0 %v1833_v29  ;;  %v1119_v29 = vmul.f32 0.5, %v2897_v3 }
 0x112   :  { %v1558_v39 = vpack.c.bf16 %v1509_v44, %v1509_v44  ;;  %923 = vmatmul.bf16.gmra.mxu1 %v1837_v30  ;;  %2033 = vmatmul.msk.bf16.gmra.mxu3 %vm631_vm0, %v1937_v24 }
 0x113   :  { %v1315_v14 = vadd.f32 %v1266_v46, %v2897_v3  ;;  %v2923_v48 = vadd.f32 %v2851_v32, %v885_v47 }
 0x114   :  { %1608 = vst.msk [vmem:[%s3406_s3 + $0x2c] sm:$0xf] %vm1596_vm1, %v1558_v39  ;;  %v1876_v39 = vld [vmem:[%s3404_s0 + $0x1b8] sm:$0xf] }
 0x115   :  { %v2169_v55 = vpop.eup %2168  ;;  %v1364_v57 = vmul.f32 0.7978846, %v1315_v14  ;;  %v1169_v32 = vmul.f32 %v2923_v48, %v2923_v48  ;;  %v949_v59 = vpop.f32.mrf.mxu3  ;;  %v2091_v14 = vld [vmem:[%s3404_s0 + $0x1c0] sm:$0xf0] }
 0x116   :  { %v2939_v42 = vpop.f32.mrf.mxu2  ;;  %v1461_v61 = vadd.f32 1.0, %v2169_v55  ;;  %v2942_v63 = vadd.f32 %v949_v59, %v817_v54  ;;  %v753_v0 = vpop.f32.mrf.mxu0  ;;  %v1877_v38 = vor.u32 %v2091_v14, %v1876_v39 }
 0x117   :  { %2170 = vtanh.f32 %v1364_v57  ;;  %v1218_v13 = vmul.f32 %v1169_v32, %v2923_v48  ;;  %v754_v4 = vadd.f32 %v2541_v58, %v753_v0  ;;  %v886_v6 = vpop.f32.mrf.mxu1  ;;  %v1120_v32 = vmul.f32 0.5, %v2923_v48 }
 0x118   :  { %v1510_v7 = vmul.f32 %v1461_v61, %v1118_v40 }
 0x119   :  { %v1267_v8 = vmul.f32 0.044715, %v1218_v13  ;;  %v887_v9 = vadd.f32 %v886_v6, %v754_v4 }
 0x11a   :  { %v1559_v45 = vpack.c.bf16 %v1510_v7, %v1510_v7  ;;  %2027 = vmatmul.msk.bf16.gmra.mxu2 %vm631_vm0, %v1865_v51 }
 0x11b   :  { %v1316_v60 = vadd.f32 %v1267_v8, %v2923_v48  ;;  %v2958_v17 = vadd.f32 %v2875_v20, %v887_v9  ;;  %v1856_v48 = vld [vmem:[%s3404_s0 + $0x198] sm:$0xf]  ;;  %v2087_v8 = vld [vmem:[%s3404_s0 + $0x1a0] sm:$0xf0] }
 0x11c   :  { %1609 = vst.msk [vmem:[%s3406_s3 + $0x30] sm:$0xf] %vm1596_vm1, %v1559_v45  ;;  %v2086_v45 = vld [vmem:[%s3404_s0 + $0x19c] sm:$0xf] }
 0x11d   :  { %v2171_v22 = vpop.eup %2170  ;;  %v1365_v25 = vmul.f32 0.7978846, %v1316_v60  ;;  %v1170_v20 = vmul.f32 %v2958_v17, %v2958_v17  ;;  %v951_v26 = vpop.f32.mrf.mxu3 }
 0x11e   :  { %v2974_v28 = vpop.f32.mrf.mxu2  ;;  %v1462_v30 = vadd.f32 1.0, %v2171_v22  ;;  %v2977_v35 = vadd.f32 %v951_v26, %v819_v21  ;;  %v756_v12 = vpop.f32.mrf.mxu0  ;;  %v1857_v22 = vor.u32 %v2087_v8, %v1856_v48 }
 0x11f   :  { %2172 = vtanh.f32 %v1365_v25  ;;  %v1219_v33 = vmul.f32 %v1170_v20, %v2958_v17  ;;  %v757_v24 = vadd.f32 %v2541_v58, %v756_v12  ;;  %v889_v34 = vpop.f32.mrf.mxu1  ;;  %v1121_v25 = vmul.f32 0.5, %v2958_v17 }
 0x120   :  { %v1511_v41 = vmul.f32 %v1462_v30, %v1119_v29 }
 0x121   :  { %v1268_v43 = vmul.f32 0.044715, %v1219_v33  ;;  %v890_v44 = vadd.f32 %v889_v34, %v757_v24  ;;  %795 = vmatmul.bf16.gmra.mxu0 %v1845_v2  ;;  %v1861_v2 = vor.u32 %v2086_v45, %v1858_v15 }
 0x122   :  { %v1560_v46 = vpack.c.bf16 %v1511_v41, %v1511_v41  ;;  %928 = vmatmul.bf16.gmra.mxu1 %v1849_v36  ;;  %2034 = vmatmul.msk.bf16.gmra.mxu3 %vm631_vm0, %v472_v5  ;;  %v1888_v41 = vld [vmem:[%s3404_s0 + $0x1d0] sm:$0xf] }
 0x123   :  { %v1317_v3 = vadd.f32 %v1268_v43, %v2958_v17  ;;  %v2984_v47 = vadd.f32 %v2913_v11, %v890_v44  ;;  %v2094_v43 = vld [vmem:[%s3404_s0 + $0x1d8] sm:$0xf0]  ;;  %v827_v44 = vadd.f32 %v2541_v58, %v2706_v23  ;;  %v3061_v23 = vld [vmem:[%s3405_s2] ss:$0 sm:$0xff] }
 0x124   :  { %1610 = vst.msk [vmem:[%s3406_s3 + $0x34] sm:$0xf] %vm1596_vm1, %v1560_v46  ;;  %v829_v48 = vadd.f32 %v3061_v23, %v2739_v49 }
 0x125   :  { %v2173_v31 = vpop.eup %2172  ;;  %v1366_v54 = vmul.f32 0.7978846, %v1317_v3  ;;  %v1171_v11 = vmul.f32 %v2984_v47, %v2984_v47  ;;  %v954_v55 = vpop.f32.mrf.mxu3 }
 0x126   :  { %v3000_v57 = vpop.f32.mrf.mxu2  ;;  %v1463_v59 = vadd.f32 1.0, %v2173_v31  ;;  %v3003_v40 = vadd.f32 %v954_v55, %v822_v53  ;;  %v758_v61 = vpop.f32.mrf.mxu0  ;;  %v1122_v53 = vmul.f32 0.5, %v2984_v47  ;;  %v1889_v55 = vor.u32 %v2094_v43, %v1888_v41 }
 0x127   :  { %2174 = vtanh.f32 %v1366_v54  ;;  %v1220_v0 = vmul.f32 %v1171_v11, %v2984_v47  ;;  %v759_v51 = vadd.f32 %v2541_v58, %v758_v61  ;;  %v891_v56 = vpop.f32.mrf.mxu1 }
 0x128   :  { %v1512_v13 = vmul.f32 %v1463_v59, %v1120_v32 }
 0x129   :  { %v1269_v4 = vmul.f32 0.044715, %v1220_v0  ;;  %v892_v6 = vadd.f32 %v891_v56, %v759_v51  ;;  %v2090_v56 = vld [vmem:[%s3404_s0 + $0x1b8] sm:$0xf0] }
 0x12a   :  { %v1561_v7 = vpack.c.bf16 %v1512_v13, %v1512_v13  ;;  %2028 = vmatmul.msk.bf16.gmra.mxu2 %vm631_vm0, %v1877_v38 }
 0x12b   :  { %v1318_v9 = vadd.f32 %v1269_v4, %v2984_v47  ;;  %v3016_v62 = vadd.f32 %v2939_v42, %v892_v6  ;;  %v1868_v47 = vld [vmem:[%s3404_s0 + $0x1b0] sm:$0xf]  ;;  %v2089_v6 = vld [vmem:[%s3404_s0 + $0x1b4] sm:$0xf] }
 0x12c   :  { %1611 = vst.msk [vmem:[%s3406_s3 + $0x38] sm:$0xf] %vm1596_vm1, %v1561_v7  ;;  %v1870_v7 = vld [vmem:[%s3404_s0 + $0x1bc] sm:$0xf0] }
 0x12d   :  { %v2175_v60 = vpop.eup %2174  ;;  %v1367_v18 = vmul.f32 0.7978846, %v1318_v9  ;;  %v1172_v42 = vmul.f32 %v3016_v62, %v3016_v62  ;;  %v956_v19 = vpop.f32.mrf.mxu3 }
 0x12e   :  { %v3032_v21 = vpop.f32.mrf.mxu2  ;;  %v1464_v20 = vadd.f32 1.0, %v2175_v60  ;;  %v3035_v26 = vadd.f32 %v956_v19, %v824_v16  ;;  %v761_v52 = vpop.f32.mrf.mxu0  ;;  %v1869_v16 = vor.u32 %v2090_v56, %v1868_v47  ;;  %v1123_v60 = vmul.f32 0.5, %v3016_v62 }
 0x12f   :  { %2176 = vtanh.f32 %v1367_v18  ;;  %v1221_v5 = vmul.f32 %v1172_v42, %v3016_v62  ;;  %v762_v29 = vadd.f32 %v2541_v58, %v761_v52  ;;  %v894_v30 = vpop.f32.mrf.mxu1 }
 0x130   :  { %v1513_v12 = vmul.f32 %v1464_v20, %v1121_v25 }
 0x131   :  { %v1270_v36 = vmul.f32 0.044715, %v1221_v5  ;;  %v895_v33 = vadd.f32 %v894_v30, %v762_v29  ;;  %800 = vmatmul.bf16.gmra.mxu0 %v1857_v22  ;;  %v1873_v22 = vor.u32 %v2089_v6, %v1870_v7 }
 0x132   :  { %v1562_v24 = vpack.c.bf16 %v1513_v12, %v1513_v12  ;;  %933 = vmatmul.bf16.gmra.mxu1 %v1861_v2 }
 0x133   :  { %v1319_v34 = vadd.f32 %v1270_v36, %v3016_v62  ;;  %v1028_v17 = vadd.f32 %v2974_v28, %v895_v33  ;;  %v832_v62 = vadd.f32 %v3061_v23, %v2759_v10 }
 0x134   :  { %1612 = vst.msk [vmem:[%s3406_s3 + $0x3c] sm:$0xf] %vm1596_vm1, %v1562_v24 }
 0x135   :  { %v2177_v46 = vpop.eup %2176  ;;  %v1368_v3 = vmul.f32 0.7978846, %v1319_v34  ;;  %v1173_v39 = vmul.f32 %v1028_v17, %v1028_v17  ;;  %v959_v28 = vpop.f32.mrf.mxu3  ;;  %v1124_v43 = vmul.f32 0.5, %v1028_v17 }
 0x136   :  { %v3053_v14 = vpop.f32.mrf.mxu2  ;;  %v1465_v31 = vadd.f32 1.0, %v2177_v46  ;;  %v3056_v54 = vadd.f32 %v959_v28, %v827_v44  ;;  %v763_v11 = vpop.f32.mrf.mxu0 }
 0x137   :  { %2178 = vtanh.f32 %v1368_v3  ;;  %v1222_v58 = vmul.f32 %v1173_v39, %v1028_v17  ;;  %v764_v32 = vadd.f32 %v3061_v23, %v763_v11  ;;  %v896_v59 = vpop.f32.mrf.mxu1 }
 0x138   :  { %v1514_v61 = vmul.f32 %v1465_v31, %v1122_v53 }
 0x139   :  { %v1271_v38 = vmul.f32 0.044715, %v1222_v58  ;;  %v897_v0 = vadd.f32 %v896_v59, %v764_v32  ;;  %v834_v32 = vadd.f32 %v3061_v23, %v2792_v27 }
 0x13a   :  { %v1563_v51 = vpack.c.bf16 %v1514_v61, %v1514_v61  ;;  %2029 = vmatmul.msk.bf16.gmra.mxu2 %vm631_vm0, %v1889_v55 }
 0x13b   :  { %v1320_v13 = vadd.f32 %v1271_v38, %v1028_v17  ;;  %v1030_v4 = vadd.f32 %v3000_v57, %v897_v0 }
 0x13c   :  { %1613 = vst.msk [vmem:[%s3406_s3 + $0x40] sm:$0xf] %vm1596_vm1, %v1563_v51 }
 0x13d   :  { %v2179_v8 = vpop.eup %2178  ;;  %v1369_v9 = vmul.f32 0.7978846, %v1320_v13  ;;  %v1174_v45 = vmul.f32 %v1030_v4, %v1030_v4  ;;  %v961_v57 = vpop.f32.mrf.mxu3  ;;  %v1125_v51 = vmul.f32 0.5, %v1030_v4 }
 0x13e   :  { %v1037_v15 = vpop.f32.mrf.mxu2  ;;  %v1466_v18 = vadd.f32 1.0, %v2179_v8  ;;  %v3085_v42 = vadd.f32 %v961_v57, %v829_v48  ;;  %v766_v19 = vpop.f32.mrf.mxu0 }
 0x13f   :  { %2180 = vtanh.f32 %v1369_v9  ;;  %v1223_v49 = vmul.f32 %v1174_v45, %v1030_v4  ;;  %v767_v25 = vadd.f32 %v3061_v23, %v766_v19  ;;  %v899_v20 = vpop.f32.mrf.mxu1 }
 0x140   :  { %v1515_v52 = vmul.f32 %v1466_v18, %v1123_v60 }
 0x141   :  { %v1272_v2 = vmul.f32 0.044715, %v1223_v49  ;;  %v900_v5 = vadd.f32 %v899_v20, %v767_v25  ;;  %805 = vmatmul.bf16.gmra.mxu0 %v1869_v16  ;;  %v837_v16 = vadd.f32 %v3061_v23, %v2816_v50 }
 0x142   :  { %v1564_v29 = vpack.c.bf16 %v1515_v52, %v1515_v52  ;;  %938 = vmatmul.bf16.gmra.mxu1 %v1873_v22 }
 0x143   :  { %v1321_v30 = vadd.f32 %v1272_v2, %v1030_v4  ;;  %v1033_v12 = vadd.f32 %v3032_v21, %v900_v5 }
 0x144   :  { %1614 = vst.msk [vmem:[%s3406_s3 + $0x44] sm:$0xf] %vm1596_vm1, %v1564_v29 }
 0x145   :  { %v2181_v36 = vpop.eup %2180  ;;  %v1370_v33 = vmul.f32 0.7978846, %v1321_v30  ;;  %v1175_v24 = vmul.f32 %v1033_v12, %v1033_v12  ;;  %v964_v34 = vpop.f32.mrf.mxu3  ;;  %v1126_v49 = vmul.f32 0.5, %v1033_v12 }
 0x146   :  { %v1039_v41 = vpop.f32.mrf.mxu2  ;;  %v1467_v44 = vadd.f32 1.0, %v2181_v36  ;;  %v3095_v46 = vadd.f32 %v964_v34, %v832_v62  ;;  %v768_v3 = vpop.f32.mrf.mxu0 }
 0x147   :  { %2182 = vtanh.f32 %v1370_v33  ;;  %v1224_v21 = vmul.f32 %v1175_v24, %v1033_v12  ;;  %v769_v39 = vadd.f32 %v3061_v23, %v768_v3  ;;  %v901_v10 = vpop.f32.mrf.mxu1 }
 0x148   :  { %v1516_v28 = vmul.f32 %v1467_v44, %v1124_v43 }
 0x149   :  { %v1273_v53 = vmul.f32 0.044715, %v1224_v21  ;;  %v902_v31 = vadd.f32 %v901_v10, %v769_v39 }
 0x14a   :  { %v1565_v11 = vpack.c.bf16 %v1516_v28, %v1516_v28 }
 0x14b   :  { %v1322_v55 = vadd.f32 %v1273_v53, %v1033_v12  ;;  %v1035_v58 = vadd.f32 %v3053_v14, %v902_v31 }
 0x14c   :  { %1615 = vst.msk [vmem:[%s3406_s3 + $0x48] sm:$0xf] %vm1596_vm1, %v1565_v11 }
 0x14d   :  { %v2183_v17 = vpop.eup %2182  ;;  %v1371_v59 = vmul.f32 0.7978846, %v1322_v55  ;;  %v1176_v61 = vmul.f32 %v1035_v58, %v1035_v58  ;;  %v966_v38 = vpop.f32.mrf.mxu3  ;;  %v1127_v3 = vmul.f32 0.5, %v1035_v58 }
 0x14e   :  { %v1042_v0 = vpop.f32.mrf.mxu2  ;;  %v1468_v47 = vadd.f32 1.0, %v2183_v17  ;;  %v3105_v56 = vadd.f32 %v966_v38, %v834_v32  ;;  %v771_v13 = vpop.f32.mrf.mxu0 }
 0x14f   :  { %2184 = vtanh.f32 %v1371_v59  ;;  %v1225_v14 = vmul.f32 %v1176_v61, %v1035_v58  ;;  %v772_v6 = vadd.f32 %v3061_v23, %v771_v13  ;;  %v904_v27 = vpop.f32.mrf.mxu1 }
 0x150   :  { %v1517_v7 = vmul.f32 %v1468_v47, %v1125_v51 }
 0x151   :  { %v1274_v48 = vmul.f32 0.044715, %v1225_v14  ;;  %v905_v8 = vadd.f32 %v904_v27, %v772_v6 }
 0x152   :  { %v1566_v9 = vpack.c.bf16 %v1517_v7, %v1517_v7 }
 0x153   :  { %v1323_v45 = vadd.f32 %v1274_v48, %v1035_v58  ;;  %v1038_v57 = vadd.f32 %v1037_v15, %v905_v8 }
 0x154   :  { %1616 = vst.msk [vmem:[%s3406_s3 + $0x4c] sm:$0xf] %vm1596_vm1, %v1566_v9 }
 0x155   :  { %v2185_v4 = vpop.eup %2184  ;;  %v1372_v60 = vmul.f32 0.7978846, %v1323_v45  ;;  %v1177_v18 = vmul.f32 %v1038_v57, %v1038_v57  ;;  %v969_v19 = vpop.f32.mrf.mxu3  ;;  %v1128_v47 = vmul.f32 0.5, %v1038_v57 }
 0x156   :  { %v1044_v22 = vpop.f32.mrf.mxu2  ;;  %v1469_v25 = vadd.f32 1.0, %v2185_v4  ;;  %v3114_v20 = vadd.f32 %v969_v19, %v837_v16  ;;  %v773_v52 = vpop.f32.mrf.mxu0 }
 0x157   :  { %2186 = vtanh.f32 %v1372_v60  ;;  %v1226_v15 = vmul.f32 %v1177_v18, %v1038_v57  ;;  %v774_v2 = vadd.f32 %v3061_v23, %v773_v52  ;;  %v906_v50 = vpop.f32.mrf.mxu1 }
 0x158   :  { %v1518_v5 = vmul.f32 %v1469_v25, %v1126_v49 }
 0x159   :  { %v1275_v29 = vmul.f32 0.044715, %v1226_v15  ;;  %v907_v30 = vadd.f32 %v906_v50, %v774_v2 }
 0x15a   :  { %v1567_v62 = vpack.c.bf16 %v1518_v5, %v1518_v5 }
 0x15b   :  { %v1324_v36 = vadd.f32 %v1275_v29, %v1038_v57  ;;  %v1040_v33 = vadd.f32 %v1039_v41, %v907_v30 }
 0x15c   :  { %1617 = vst.msk [vmem:[%s3406_s3 + $0x50] sm:$0xf] %vm1596_vm1, %v1567_v62 }
 0x15d   :  { %v2187_v12 = vpop.eup %2186  ;;  %v1373_v24 = vmul.f32 0.7978846, %v1324_v36  ;;  %v1178_v34 = vmul.f32 %v1040_v33, %v1040_v33  ;;  %v971_v43 = vpop.f32.mrf.mxu3  ;;  %v1129_v15 = vmul.f32 0.5, %v1040_v33 }
 0x15e   :  { %v1047_v44 = vpop.f32.mrf.mxu2  ;;  %v1470_v21 = vadd.f32 1.0, %v2187_v12  ;;  %v776_v39 = vpop.f32.mrf.mxu0 }
 0x15f   :  { %2188 = vtanh.f32 %v1373_v24  ;;  %v1227_v10 = vmul.f32 %v1178_v34, %v1040_v33  ;;  %v777_v28 = vadd.f32 %v3061_v23, %v776_v39  ;;  %v909_v53 = vpop.f32.mrf.mxu1 }
 0x160   :  { %v1519_v31 = vmul.f32 %v1470_v21, %v1127_v3 }
 0x161   :  { %v1276_v41 = vmul.f32 0.044715, %v1227_v10  ;;  %v910_v11 = vadd.f32 %v909_v53, %v777_v28 }
 0x162   :  { %v1568_v55 = vpack.c.bf16 %v1519_v31, %v1519_v31 }
 0x163   :  { %v1325_v32 = vadd.f32 %v1276_v41, %v1040_v33  ;;  %v1043_v17 = vadd.f32 %v1042_v0, %v910_v11 }
 0x164   :  { %1618 = vst.msk [vmem:[%s3406_s3 + $0x54] sm:$0xf] %vm1596_vm1, %v1568_v55 }
 0x165   :  { %v2189_v59 = vpop.eup %2188  ;;  %v1374_v58 = vmul.f32 0.7978846, %v1325_v32  ;;  %v1179_v61 = vmul.f32 %v1043_v17, %v1043_v17  ;;  %v1082_v51 = vpop.f32.mrf.mxu3  ;;  %v1130_v11 = vmul.f32 0.5, %v1043_v17 }
 0x166   :  { %v3126_v38 = vpop.f32.mrf.mxu2  ;;  %v1471_v13 = vadd.f32 1.0, %v2189_v59  ;;  %v1083_v14 = vadd.f32 %v1082_v51, %v2942_v63  ;;  %v778_v6 = vpop.f32.mrf.mxu0 }
 0x167   :  { %2190 = vtanh.f32 %v1374_v58  ;;  %v1228_v27 = vmul.f32 %v1179_v61, %v1043_v17  ;;  %v779_v0 = vadd.f32 %v3061_v23, %v778_v6  ;;  %v911_v7 = vpop.f32.mrf.mxu1 }
 0x168   :  { %v1520_v48 = vmul.f32 %v1471_v13, %v1128_v47  ;;  %v1195_v8 = vmul.f32 %v1083_v14, %v1083_v14 }
 0x169   :  { %v1277_v9 = vmul.f32 0.044715, %v1228_v27  ;;  %v912_v45 = vadd.f32 %v911_v7, %v779_v0 }
 0x16a   :  { %v1569_v16 = vpack.c.bf16 %v1520_v48, %v1520_v48  ;;  %v1244_v4 = vmul.f32 %v1195_v8, %v1083_v14 }
 0x16b   :  { %v1326_v60 = vadd.f32 %v1277_v9, %v1043_v17  ;;  %v3130_v18 = vadd.f32 %v1044_v22, %v912_v45  ;;  %v1146_v17 = vmul.f32 0.5, %v1083_v14 }
 0x16c   :  { %1619 = vst.msk [vmem:[%s3406_s3 + $0x58] sm:$0xf] %vm1596_vm1, %v1569_v16  ;;  %v1293_v63 = vmul.f32 0.044715, %v1244_v4 }
 0x16d   :  { %v2191_v57 = vpop.eup %2190  ;;  %v1375_v19 = vmul.f32 0.7978846, %v1326_v60  ;;  %v1180_v49 = vmul.f32 %v3130_v18, %v3130_v18  ;;  %v1084_v52 = vpop.f32.mrf.mxu3 }
 0x16e   :  { %v3138_v25 = vpop.f32.mrf.mxu2  ;;  %v1472_v2 = vadd.f32 1.0, %v2191_v57  ;;  %v1342_v50 = vadd.f32 %v1293_v63, %v1083_v14  ;;  %v3141_v22 = vadd.f32 %v1084_v52, %v2977_v35  ;;  %v781_v5 = vpop.f32.mrf.mxu0  ;;  %v1131_v52 = vmul.f32 0.5, %v3130_v18 }
 0x16f   :  { %2192 = vtanh.f32 %v1375_v19  ;;  %v1229_v29 = vmul.f32 %v1180_v49, %v3130_v18  ;;  %v782_v30 = vadd.f32 %v3061_v23, %v781_v5  ;;  %v914_v62 = vpop.f32.mrf.mxu1 }
 0x170   :  { %v1521_v36 = vmul.f32 %v1472_v2, %v1129_v15  ;;  %v1391_v12 = vmul.f32 0.7978846, %v1342_v50  ;;  %v1196_v24 = vmul.f32 %v3141_v22, %v3141_v22 }
 0x171   :  { %v1278_v34 = vmul.f32 0.044715, %v1229_v29  ;;  %v915_v43 = vadd.f32 %v914_v62, %v782_v30 }
 0x172   :  { %v1570_v33 = vpack.c.bf16 %v1521_v36, %v1521_v36  ;;  %2194 = vtanh.f32 %v1391_v12  ;;  %v1245_v3 = vmul.f32 %v1196_v24, %v3141_v22 }
 0x173   :  { %v1327_v35 = vadd.f32 %v1278_v34, %v3130_v18  ;;  %v3149_v21 = vadd.f32 %v1047_v44, %v915_v43 }
 0x174   :  { %1620 = vst.msk [vmem:[%s3406_s3 + $0x5c] sm:$0xf] %vm1596_vm1, %v1570_v33  ;;  %v1294_v39 = vmul.f32 0.044715, %v1245_v3 }
 0x175   :  { %v2193_v10 = vpop.eup %2192  ;;  %v1376_v28 = vmul.f32 0.7978846, %v1327_v35  ;;  %v1181_v53 = vmul.f32 %v3149_v21, %v3149_v21  ;;  %v1087_v41 = vpop.f32.mrf.mxu3 }
 0x176   :  { %v3157_v31 = vpop.f32.mrf.mxu2  ;;  %v1473_v55 = vadd.f32 1.0, %v2193_v10  ;;  %v1343_v32 = vadd.f32 %v1294_v39, %v3141_v22  ;;  %v3161_v44 = vadd.f32 %v1087_v41, %v3003_v40  ;;  %v783_v59 = vpop.f32.mrf.mxu0 }
 0x177   :  { %2196 = vtanh.f32 %v1376_v28  ;;  %v1230_v58 = vmul.f32 %v1181_v53, %v3149_v21  ;;  %v784_v61 = vadd.f32 %v3061_v23, %v783_v59  ;;  %v916_v51 = vpop.f32.mrf.mxu1  ;;  %v1132_v59 = vmul.f32 0.5, %v3149_v21 }
 0x178   :  { %v2195_v47 = vpop.eup %2194  ;;  %v1522_v13 = vmul.f32 %v1473_v55, %v1130_v11  ;;  %v1392_v6 = vmul.f32 0.7978846, %v1343_v32  ;;  %v1197_v27 = vmul.f32 %v3161_v44, %v3161_v44 }
 0x179   :  { %v1489_v0 = vadd.f32 1.0, %v2195_v47  ;;  %v1279_v7 = vmul.f32 0.044715, %v1230_v58  ;;  %v917_v48 = vadd.f32 %v916_v51, %v784_v61 }
 0x17a   :  { %v1571_v8 = vpack.c.bf16 %v1522_v13, %v1522_v13  ;;  %2198 = vtanh.f32 %v1392_v6  ;;  %v1246_v40 = vmul.f32 %v1197_v27, %v3161_v44 }
 0x17b   :  { %v1538_v9 = vmul.f32 %v1489_v0, %v1146_v17  ;;  %v1328_v45 = vadd.f32 %v1279_v7, %v3149_v21  ;;  %v3170_v16 = vadd.f32 %v3126_v38, %v917_v48 }
 0x17c   :  { %1621 = vst.msk [vmem:[%s3406_s3 + $0x60] sm:$0xf] %vm1596_vm1, %v1571_v8  ;;  %v1295_v4 = vmul.f32 0.044715, %v1246_v40 }
 0x17d   :  { %v2197_v14 = vpop.eup %2196  ;;  %v1587_v60 = vpack.c.bf16 %v1538_v9, %v1538_v9  ;;  %v1377_v63 = vmul.f32 0.7978846, %v1328_v45  ;;  %v1182_v57 = vmul.f32 %v3170_v16, %v3170_v16  ;;  %v1089_v49 = vpop.f32.mrf.mxu3 }
 0x17e   :  { %v3178_v19 = vpop.f32.mrf.mxu2  ;;  %v1474_v15 = vadd.f32 1.0, %v2197_v14  ;;  %v1344_v38 = vadd.f32 %v1295_v4, %v3161_v44  ;;  %v3183_v2 = vadd.f32 %v1089_v49, %v3035_v26  ;;  %v786_v50 = vpop.f32.mrf.mxu0  ;;  %v1147_v26 = vmul.f32 0.5, %v3141_v22 }
 0x17f   :  { %1637 = vst.msk [vmem:[%s3406_s3 + $0xa0] sm:$0xf] %vm1596_vm1, %v1587_v60  ;;  %2200 = vtanh.f32 %v1377_v63  ;;  %v1231_v5 = vmul.f32 %v1182_v57, %v3170_v16  ;;  %v787_v29 = vadd.f32 %v3061_v23, %v786_v50  ;;  %v919_v30 = vpop.f32.mrf.mxu1 }
 0x180   :  { %v2199_v62 = vpop.eup %2198  ;;  %v1523_v18 = vmul.f32 %v1474_v15, %v1131_v52  ;;  %v1393_v36 = vmul.f32 0.7978846, %v1344_v38  ;;  %v1198_v12 = vmul.f32 %v3183_v2, %v3183_v2  ;;  %v1133_v38 = vmul.f32 0.5, %v3170_v16 }
 0x181   :  { %v1490_v24 = vadd.f32 1.0, %v2199_v62  ;;  %v1280_v34 = vmul.f32 0.044715, %v1231_v5  ;;  %v920_v43 = vadd.f32 %v919_v30, %v787_v29 }
 0x182   :  { %v1572_v33 = vpack.c.bf16 %v1523_v18, %v1523_v18  ;;  %2202 = vtanh.f32 %v1393_v36  ;;  %v1247_v3 = vmul.f32 %v1198_v12, %v3183_v2 }
 0x183   :  { %v1539_v35 = vmul.f32 %v1490_v24, %v1147_v26  ;;  %v1329_v39 = vadd.f32 %v1280_v34, %v3170_v16  ;;  %v3197_v10 = vadd.f32 %v3138_v25, %v920_v43 }
 0x184   :  { %1622 = vst.msk [vmem:[%s3406_s3 + $0x64] sm:$0xf] %vm1596_vm1, %v1572_v33  ;;  %v1296_v28 = vmul.f32 0.044715, %v1247_v3 }
 0x185   :  { %v2201_v22 = vpop.eup %2200  ;;  %v1588_v53 = vpack.c.bf16 %v1539_v35, %v1539_v35  ;;  %v1378_v41 = vmul.f32 0.7978846, %v1329_v39  ;;  %v1183_v11 = vmul.f32 %v3197_v10, %v3197_v10  ;;  %v1092_v32 = vpop.f32.mrf.mxu3 }
 0x186   :  { %v3205_v55 = vpop.f32.mrf.mxu2  ;;  %v1475_v58 = vadd.f32 1.0, %v2201_v22  ;;  %v1345_v25 = vadd.f32 %v1296_v28, %v3183_v2  ;;  %v3210_v61 = vadd.f32 %v1092_v32, %v3056_v54  ;;  %v788_v51 = vpop.f32.mrf.mxu0  ;;  %v1148_v54 = vmul.f32 0.5, %v3161_v44 }
 0x187   :  { %1638 = vst.msk [vmem:[%s3406_s3 + $0xa4] sm:$0xf] %vm1596_vm1, %v1588_v53  ;;  %2204 = vtanh.f32 %v1378_v41  ;;  %v1232_v47 = vmul.f32 %v1183_v11, %v3197_v10  ;;  %v789_v13 = vadd.f32 %v3061_v23, %v788_v51  ;;  %v921_v6 = vpop.f32.mrf.mxu1 }
 0x188   :  { %v2203_v27 = vpop.eup %2202  ;;  %v1524_v21 = vmul.f32 %v1475_v58, %v1132_v59  ;;  %v1394_v17 = vmul.f32 0.7978846, %v1345_v25  ;;  %v1199_v0 = vmul.f32 %v3210_v61, %v3210_v61  ;;  %v1134_v58 = vmul.f32 0.5, %v3197_v10 }
 0x189   :  { %v1491_v7 = vadd.f32 1.0, %v2203_v27  ;;  %v1281_v48 = vmul.f32 0.044715, %v1232_v47  ;;  %v922_v8 = vadd.f32 %v921_v6, %v789_v13 }
 0x18a   :  { %v1573_v40 = vpack.c.bf16 %v1524_v21, %v1524_v21  ;;  %2206 = vtanh.f32 %v1394_v17  ;;  %v1248_v9 = vmul.f32 %v1199_v0, %v3210_v61 }
 0x18b   :  { %v1540_v45 = vmul.f32 %v1491_v7, %v1148_v54  ;;  %v1330_v4 = vadd.f32 %v1281_v48, %v3197_v10  ;;  %v3224_v14 = vadd.f32 %v3157_v31, %v922_v8 }
 0x18c   :  { %1623 = vst.msk [vmem:[%s3406_s3 + $0x68] sm:$0xf] %vm1596_vm1, %v1573_v40  ;;  %v1297_v60 = vmul.f32 0.044715, %v1248_v9 }
 0x18d   :  { %v2205_v44 = vpop.eup %2204  ;;  %v1589_v63 = vpack.c.bf16 %v1540_v45, %v1540_v45  ;;  %v1379_v57 = vmul.f32 0.7978846, %v1330_v4  ;;  %v1184_v49 = vmul.f32 %v3224_v14, %v3224_v14  ;;  %v1094_v15 = vpop.f32.mrf.mxu3 }
 0x18e   :  { %v3232_v52 = vpop.f32.mrf.mxu2  ;;  %v1476_v50 = vadd.f32 1.0, %v2205_v44  ;;  %v1346_v31 = vadd.f32 %v1297_v60, %v3210_v61  ;;  %v3237_v5 = vadd.f32 %v1094_v15, %v3085_v42  ;;  %v791_v29 = vpop.f32.mrf.mxu0  ;;  %v1149_v42 = vmul.f32 0.5, %v3183_v2 }
 0x18f   :  { %1639 = vst.msk [vmem:[%s3406_s3 + $0xa8] sm:$0xf] %vm1596_vm1, %v1589_v63  ;;  %2208 = vtanh.f32 %v1379_v57  ;;  %v1233_v30 = vmul.f32 %v1184_v49, %v3224_v14  ;;  %v792_v62 = vadd.f32 %v3061_v23, %v791_v29  ;;  %v924_v18 = vpop.f32.mrf.mxu1 }
 0x190   :  { %v2207_v36 = vpop.eup %2206  ;;  %v1525_v16 = vmul.f32 %v1476_v50, %v1133_v38  ;;  %v1395_v12 = vmul.f32 0.7978846, %v1346_v31  ;;  %v1200_v26 = vmul.f32 %v3237_v5, %v3237_v5  ;;  %v1135_v38 = vmul.f32 0.5, %v3224_v14 }
 0x191   :  { %v1492_v24 = vadd.f32 1.0, %v2207_v36  ;;  %v1282_v34 = vmul.f32 0.044715, %v1233_v30  ;;  %v925_v43 = vadd.f32 %v924_v18, %v792_v62 }
 0x192   :  { %v1574_v33 = vpack.c.bf16 %v1525_v16, %v1525_v16  ;;  %2210 = vtanh.f32 %v1395_v12  ;;  %v1249_v3 = vmul.f32 %v1200_v26, %v3237_v5 }
 0x193   :  { %v1541_v35 = vmul.f32 %v1492_v24, %v1149_v42  ;;  %v1331_v39 = vadd.f32 %v1282_v34, %v3224_v14  ;;  %v3251_v28 = vadd.f32 %v3178_v19, %v925_v43 }
 0x194   :  { %1624 = vst.msk [vmem:[%s3406_s3 + $0x6c] sm:$0xf] %vm1596_vm1, %v1574_v33  ;;  %v1298_v22 = vmul.f32 0.044715, %v1249_v3 }
 0x195   :  { %v2209_v2 = vpop.eup %2208  ;;  %v1590_v53 = vpack.c.bf16 %v1541_v35, %v1541_v35  ;;  %v1380_v41 = vmul.f32 0.7978846, %v1331_v39  ;;  %v1185_v11 = vmul.f32 %v3251_v28, %v3251_v28  ;;  %v1097_v59 = vpop.f32.mrf.mxu3 }
 0x196   :  { %v3259_v32 = vpop.f32.mrf.mxu2  ;;  %v1477_v25 = vadd.f32 1.0, %v2209_v2  ;;  %v1347_v19 = vadd.f32 %v1298_v22, %v3237_v5  ;;  %v3264_v51 = vadd.f32 %v1097_v59, %v3095_v46  ;;  %v793_v47 = vpop.f32.mrf.mxu0  ;;  %v1150_v46 = vmul.f32 0.5, %v3210_v61 }
 0x197   :  { %1640 = vst.msk [vmem:[%s3406_s3 + $0xac] sm:$0xf] %vm1596_vm1, %v1590_v53  ;;  %2212 = vtanh.f32 %v1380_v41  ;;  %v1234_v13 = vmul.f32 %v1185_v11, %v3251_v28  ;;  %v794_v6 = vadd.f32 %v3061_v23, %v793_v47  ;;  %v926_v27 = vpop.f32.mrf.mxu1  ;;  %v1136_v59 = vmul.f32 0.5, %v3251_v28 }
 0x198   :  { %v2211_v21 = vpop.eup %2210  ;;  %v1526_v10 = vmul.f32 %v1477_v25, %v1134_v58  ;;  %v1396_v17 = vmul.f32 0.7978846, %v1347_v19  ;;  %v1201_v0 = vmul.f32 %v3264_v51, %v3264_v51 }
 0x199   :  { %v1493_v54 = vadd.f32 1.0, %v2211_v21  ;;  %v1283_v7 = vmul.f32 0.044715, %v1234_v13  ;;  %v927_v48 = vadd.f32 %v926_v27, %v794_v6 }
 0x19a   :  { %v1575_v8 = vpack.c.bf16 %v1526_v10, %v1526_v10  ;;  %2214 = vtanh.f32 %v1396_v17  ;;  %v1250_v40 = vmul.f32 %v1201_v0, %v3264_v51 }
 0x19b   :  { %v1542_v9 = vmul.f32 %v1493_v54, %v1150_v46  ;;  %v1332_v45 = vadd.f32 %v1283_v7, %v3251_v28  ;;  %v3278_v4 = vadd.f32 %v3205_v55, %v927_v48 }
 0x19c   :  { %1625 = vst.msk [vmem:[%s3406_s3 + $0x70] sm:$0xf] %vm1596_vm1, %v1575_v8  ;;  %v1299_v60 = vmul.f32 0.044715, %v1250_v40 }
 0x19d   :  { %v2213_v61 = vpop.eup %2212  ;;  %v1591_v44 = vpack.c.bf16 %v1542_v9, %v1542_v9  ;;  %v1381_v63 = vmul.f32 0.7978846, %v1332_v45  ;;  %v1186_v57 = vmul.f32 %v3278_v4, %v3278_v4  ;;  %v1099_v15 = vpop.f32.mrf.mxu3 }
 0x19e   :  { %v3286_v49 = vpop.f32.mrf.mxu2  ;;  %v1478_v50 = vadd.f32 1.0, %v2213_v61  ;;  %v1348_v55 = vadd.f32 %v1299_v60, %v3264_v51  ;;  %v3291_v31 = vadd.f32 %v1099_v15, %v3105_v56  ;;  %v796_v29 = vpop.f32.mrf.mxu0  ;;  %v1151_v56 = vmul.f32 0.5, %v3237_v5 }
 0x19f   :  { %1641 = vst.msk [vmem:[%s3406_s3 + $0xb0] sm:$0xf] %vm1596_vm1, %v1591_v44  ;;  %2216 = vtanh.f32 %v1381_v63  ;;  %v1235_v30 = vmul.f32 %v1186_v57, %v3278_v4  ;;  %v797_v62 = vadd.f32 %v3061_v23, %v796_v29  ;;  %v929_v18 = vpop.f32.mrf.mxu1  ;;  %v1137_v57 = vmul.f32 0.5, %v3278_v4 }
 0x1a0   :  { %v2215_v36 = vpop.eup %2214  ;;  %v1527_v14 = vmul.f32 %v1478_v50, %v1135_v38  ;;  %v1397_v16 = vmul.f32 0.7978846, %v1348_v55  ;;  %v1202_v12 = vmul.f32 %v3291_v31, %v3291_v31 }
 0x1a1   :  { %v1494_v26 = vadd.f32 1.0, %v2215_v36  ;;  %v1284_v42 = vmul.f32 0.044715, %v1235_v30  ;;  %v930_v24 = vadd.f32 %v929_v18, %v797_v62  ;;  %v1153_v36 = vmul.f32 0.5, %v3291_v31 }
 0x1a2   :  { %v1576_v34 = vpack.c.bf16 %v1527_v14, %v1527_v14  ;;  %2218 = vtanh.f32 %v1397_v16  ;;  %v1251_v43 = vmul.f32 %v1202_v12, %v3291_v31 }
 0x1a3   :  { %v1543_v33 = vmul.f32 %v1494_v26, %v1151_v56  ;;  %v1333_v3 = vadd.f32 %v1284_v42, %v3278_v4  ;;  %v3305_v35 = vadd.f32 %v3232_v52, %v930_v24 }
 0x1a4   :  { %1626 = vst.msk [vmem:[%s3406_s3 + $0x74] sm:$0xf] %vm1596_vm1, %v1576_v34  ;;  %v1300_v39 = vmul.f32 0.044715, %v1251_v43 }
 0x1a5   :  { %v2217_v5 = vpop.eup %2216  ;;  %v1592_v22 = vpack.c.bf16 %v1543_v33, %v1543_v33  ;;  %v1382_v2 = vmul.f32 0.7978846, %v1333_v3  ;;  %v1187_v53 = vmul.f32 %v3305_v35, %v3305_v35  ;;  %v1102_v11 = vpop.f32.mrf.mxu3 }
 0x1a6   :  { %v3313_v41 = vpop.f32.mrf.mxu2  ;;  %v1479_v58 = vadd.f32 1.0, %v2217_v5  ;;  %v1349_v52 = vadd.f32 %v1300_v39, %v3291_v31  ;;  %v3318_v25 = vadd.f32 %v1102_v11, %v3114_v20  ;;  %v798_v19 = vpop.f32.mrf.mxu0  ;;  %v1152_v20 = vmul.f32 0.5, %v3264_v51 }
 0x1a7   :  { %1642 = vst.msk [vmem:[%s3406_s3 + $0xb4] sm:$0xf] %vm1596_vm1, %v1592_v22  ;;  %2220 = vtanh.f32 %v1382_v2  ;;  %v1236_v47 = vmul.f32 %v1187_v53, %v3305_v35  ;;  %v799_v13 = vadd.f32 %v3061_v23, %v798_v19  ;;  %v931_v6 = vpop.f32.mrf.mxu1  ;;  %v1138_v31 = vmul.f32 0.5, %v3305_v35 }
 0x1a8   :  { %v2219_v27 = vpop.eup %2218  ;;  %v1528_v28 = vmul.f32 %v1479_v58, %v1136_v59  ;;  %v1398_v21 = vmul.f32 0.7978846, %v1349_v52  ;;  %v1203_v10 = vmul.f32 %v3318_v25, %v3318_v25  ;;  %v1154_v59 = vmul.f32 0.5, %v3318_v25 }
 0x1a9   :  { %v1495_v17 = vadd.f32 1.0, %v2219_v27  ;;  %v1285_v0 = vmul.f32 0.044715, %v1236_v47  ;;  %v932_v46 = vadd.f32 %v931_v6, %v799_v13 }
 0x1aa   :  { %v1577_v54 = vpack.c.bf16 %v1528_v28, %v1528_v28  ;;  %2222 = vtanh.f32 %v1398_v21  ;;  %v1252_v7 = vmul.f32 %v1203_v10, %v3318_v25 }
 0x1ab   :  { %v1544_v48 = vmul.f32 %v1495_v17, %v1152_v20  ;;  %v1334_v8 = vadd.f32 %v1285_v0, %v3305_v35  ;;  %v1065_v40 = vadd.f32 %v3259_v32, %v932_v46 }
 0x1ac   :  { %1627 = vst.msk [vmem:[%s3406_s3 + $0x78] sm:$0xf] %vm1596_vm1, %v1577_v54  ;;  %v1301_v9 = vmul.f32 0.044715, %v1252_v7 }
 0x1ad   :  { %v2221_v45 = vpop.eup %2220  ;;  %v1593_v51 = vpack.c.bf16 %v1544_v48, %v1544_v48  ;;  %v1383_v60 = vmul.f32 0.7978846, %v1334_v8  ;;  %v1188_v61 = vmul.f32 %v1065_v40, %v1065_v40  ;;  %v1104_v63 = vpop.f32.mrf.mxu3  ;;  %v1139_v17 = vmul.f32 0.5, %v1065_v40 }
 0x1ae   :  { %v3336_v44 = vpop.f32.mrf.mxu2  ;;  %v1480_v15 = vadd.f32 1.0, %v2221_v45  ;;  %v1350_v38 = vadd.f32 %v1301_v9, %v3318_v25  ;;  %v801_v50 = vpop.f32.mrf.mxu0 }
 0x1af   :  { %1643 = vst.msk [vmem:[%s3406_s3 + $0xb8] sm:$0xf] %vm1596_vm1, %v1593_v51  ;;  %2224 = vtanh.f32 %v1383_v60  ;;  %v1237_v32 = vmul.f32 %v1188_v61, %v1065_v40  ;;  %v802_v55 = vadd.f32 %v3061_v23, %v801_v50  ;;  %v934_v29 = vpop.f32.mrf.mxu1 }
 0x1b0   :  { %v2223_v30 = vpop.eup %2222  ;;  %v1529_v62 = vmul.f32 %v1480_v15, %v1137_v57  ;;  %v1399_v18 = vmul.f32 0.7978846, %v1350_v38 }
 0x1b1   :  { %v1496_v4 = vadd.f32 1.0, %v2223_v30  ;;  %v1286_v14 = vmul.f32 0.044715, %v1237_v32  ;;  %v935_v16 = vadd.f32 %v934_v29, %v802_v55 }
 0x1b2   :  { %v1578_v12 = vpack.c.bf16 %v1529_v62, %v1529_v62  ;;  %2226 = vtanh.f32 %v1399_v18 }
 0x1b3   :  { %v1545_v56 = vmul.f32 %v1496_v4, %v1153_v36  ;;  %v1335_v26 = vadd.f32 %v1286_v14, %v1065_v40  ;;  %v1068_v42 = vadd.f32 %v3286_v49, %v935_v16 }
 0x1b4   :  { %1628 = vst.msk [vmem:[%s3406_s3 + $0x7c] sm:$0xf] %vm1596_vm1, %v1578_v12 }
 0x1b5   :  { %v2225_v24 = vpop.eup %2224  ;;  %v1594_v34 = vpack.c.bf16 %v1545_v56, %v1545_v56  ;;  %v1384_v43 = vmul.f32 0.7978846, %v1335_v26  ;;  %v1189_v33 = vmul.f32 %v1068_v42, %v1068_v42  ;;  %v1140_v50 = vmul.f32 0.5, %v1068_v42 }
 0x1b6   :  { %v3351_v3 = vpop.f32.mrf.mxu2  ;;  %v1481_v39 = vadd.f32 1.0, %v2225_v24  ;;  %v803_v5 = vpop.f32.mrf.mxu0 }
 0x1b7   :  { %1644 = vst.msk [vmem:[%s3406_s3 + $0xbc] sm:$0xf] %vm1596_vm1, %v1594_v34  ;;  %2228 = vtanh.f32 %v1384_v43  ;;  %v1238_v49 = vmul.f32 %v1189_v33, %v1068_v42  ;;  %v804_v22 = vadd.f32 %v3061_v23, %v803_v5  ;;  %v936_v2 = vpop.f32.mrf.mxu1 }
 0x1b8   :  { %v2227_v53 = vpop.eup %2226  ;;  %v1530_v11 = vmul.f32 %v1481_v39, %v1138_v31 }
 0x1b9   :  { %v1497_v58 = vadd.f32 1.0, %v2227_v53  ;;  %v1287_v52 = vmul.f32 0.044715, %v1238_v49  ;;  %v937_v19 = vadd.f32 %v936_v2, %v804_v22 }
 0x1ba   :  { %v1579_v35 = vpack.c.bf16 %v1530_v11, %v1530_v11 }
 0x1bb   :  { %v1546_v47 = vmul.f32 %v1497_v58, %v1154_v59  ;;  %v1336_v13 = vadd.f32 %v1287_v52, %v1068_v42  ;;  %v1070_v6 = vadd.f32 %v3313_v41, %v937_v19 }
 0x1bc   :  { %1629 = vst.msk [vmem:[%s3406_s3 + $0x80] sm:$0xf] %vm1596_vm1, %v1579_v35 }
 0x1bd   :  { %v2229_v27 = vpop.eup %2228  ;;  %v1595_v28 = vpack.c.bf16 %v1546_v47, %v1546_v47  ;;  %v1385_v21 = vmul.f32 0.7978846, %v1336_v13  ;;  %v1190_v10 = vmul.f32 %v1070_v6, %v1070_v6  ;;  %v1141_v33 = vmul.f32 0.5, %v1070_v6 }
 0x1be   :  { %v1077_v20 = vpop.f32.mrf.mxu2  ;;  %v1482_v25 = vadd.f32 1.0, %v2229_v27  ;;  %v806_v46 = vpop.f32.mrf.mxu0 }
 0x1bf   :  { %v1078_v0 = vadd.f32 %v1077_v20, %v2878_v1  ;;  %1645 = vst.msk [vmem:[%s3406_s3 + $0xc0] sm:$0xf] %vm1596_vm1, %v1595_v28  ;;  %2230 = vtanh.f32 %v1385_v21  ;;  %v1239_v41 = vmul.f32 %v1190_v10, %v1070_v6  ;;  %v807_v54 = vadd.f32 %v3061_v23, %v806_v46  ;;  %v939_v7 = vpop.f32.mrf.mxu1 }
 0x1c0   :  { %v1531_v48 = vmul.f32 %v1482_v25, %v1139_v17 }
 0x1c1   :  { %v1193_v8 = vmul.f32 %v1078_v0, %v1078_v0  ;;  %v1288_v9 = vmul.f32 0.044715, %v1239_v41  ;;  %v940_v45 = vadd.f32 %v939_v7, %v807_v54  ;;  %v1144_v53 = vmul.f32 0.5, %v1078_v0 }
 0x1c2   :  { %v1580_v51 = vpack.c.bf16 %v1531_v48, %v1531_v48 }
 0x1c3   :  { %v1242_v40 = vmul.f32 %v1193_v8, %v1078_v0  ;;  %v1337_v60 = vadd.f32 %v1288_v9, %v1070_v6  ;;  %v1073_v1 = vadd.f32 %v3336_v44, %v940_v45 }
 0x1c4   :  { %1630 = vst.msk [vmem:[%s3406_s3 + $0x84] sm:$0xf] %vm1596_vm1, %v1580_v51 }
 0x1c5   :  { %v1291_v61 = vmul.f32 0.044715, %v1242_v40  ;;  %v2231_v63 = vpop.eup %2230  ;;  %v1386_v57 = vmul.f32 0.7978846, %v1337_v60  ;;  %v1191_v15 = vmul.f32 %v1073_v1, %v1073_v1  ;;  %v1142_v13 = vmul.f32 0.5, %v1073_v1 }
 0x1c6   :  { %v1079_v38 = vpop.f32.mrf.mxu2  ;;  %v1483_v32 = vadd.f32 1.0, %v2231_v63  ;;  %v808_v30 = vpop.f32.mrf.mxu0 }
 0x1c7   :  { %v1340_v55 = vadd.f32 %v1291_v61, %v1078_v0  ;;  %v1080_v29 = vadd.f32 %v1079_v38, %v2916_v37  ;;  %2232 = vtanh.f32 %v1386_v57  ;;  %v1240_v62 = vmul.f32 %v1191_v15, %v1073_v1  ;;  %v941_v14 = vpop.f32.mrf.mxu1 }
 0x1c8   :  { %v809_v44 = vadd.f32 %v3061_v23, %v808_v30  ;;  %v1532_v18 = vmul.f32 %v1483_v32, %v1140_v50 }
 0x1c9   :  { %v1389_v36 = vmul.f32 0.7978846, %v1340_v55  ;;  %v1194_v4 = vmul.f32 %v1080_v29, %v1080_v29  ;;  %v1289_v16 = vmul.f32 0.044715, %v1240_v62  ;;  %v1145_v21 = vmul.f32 0.5, %v1080_v29 }
 0x1ca   :  { %v942_v12 = vadd.f32 %v941_v14, %v809_v44  ;;  %v1581_v56 = vpack.c.bf16 %v1532_v18, %v1532_v18 }
 0x1cb   :  { %2234 = vtanh.f32 %v1389_v36  ;;  %v1243_v26 = vmul.f32 %v1194_v4, %v1080_v29  ;;  %v1338_v24 = vadd.f32 %v1289_v16, %v1073_v1 }
 0x1cc   :  { %v1075_v42 = vadd.f32 %v3351_v3, %v942_v12  ;;  %1631 = vst.msk [vmem:[%s3406_s3 + $0x88] sm:$0xf] %vm1596_vm1, %v1581_v56 }
 0x1cd   :  { %v1292_v37 = vmul.f32 0.044715, %v1243_v26  ;;  %v2233_v34 = vpop.eup %2232  ;;  %v1387_v23 = vmul.f32 0.7978846, %v1338_v24 }
 0x1ce   :  { %v1192_v43 = vmul.f32 %v1075_v42, %v1075_v42  ;;  %v1484_v31 = vadd.f32 1.0, %v2233_v34  ;;  %v1143_v46 = vmul.f32 0.5, %v1075_v42 }
 0x1cf   :  { %v1341_v39 = vadd.f32 %v1292_v37, %v1080_v29  ;;  %2236 = vtanh.f32 %v1387_v23 }
 0x1d0   :  { %v1241_v5 = vmul.f32 %v1192_v43, %v1075_v42  ;;  %v1533_v22 = vmul.f32 %v1484_v31, %v1141_v33 }
 0x1d1   :  { %v2235_v49 = vpop.eup %2234  ;;  %v1390_v2 = vmul.f32 0.7978846, %v1341_v39 }
 0x1d2   :  { %v1487_v11 = vadd.f32 1.0, %v2235_v49  ;;  %v1290_v3 = vmul.f32 0.044715, %v1241_v5  ;;  %v1582_v59 = vpack.c.bf16 %v1533_v22, %v1533_v22 }
 0x1d3   :  { %2238 = vtanh.f32 %v1390_v2 }
 0x1d4   :  { %v1536_v58 = vmul.f32 %v1487_v11, %v1144_v53  ;;  %v1339_v52 = vadd.f32 %v1290_v3, %v1075_v42  ;;  %1632 = vst.msk [vmem:[%s3406_s3 + $0x8c] sm:$0xf] %vm1596_vm1, %v1582_v59 }
 0x1d5   :  { %v2237_v19 = vpop.eup %2236 }
 0x1d6   :  { %v1585_v35 = vpack.c.bf16 %v1536_v58, %v1536_v58  ;;  %v1388_v47 = vmul.f32 0.7978846, %v1339_v52  ;;  %v1485_v6 = vadd.f32 1.0, %v2237_v19 }
 0x1d8   :  { %1635 = vst.msk [vmem:[%s3406_s3 + $0x98] sm:$0xf] %vm1596_vm1, %v1585_v35  ;;  %2240 = vtanh.f32 %v1388_v47  ;;  %v1534_v28 = vmul.f32 %v1485_v6, %v1142_v13 }
 0x1d9   :  { %v2239_v27 = vpop.eup %2238 }
 0x1da   :  { %v1488_v10 = vadd.f32 1.0, %v2239_v27  ;;  %v1583_v20 = vpack.c.bf16 %v1534_v28, %v1534_v28 }
 0x1dc   :  { %v1537_v17 = vmul.f32 %v1488_v10, %v1145_v21  ;;  %1633 = vst.msk [vmem:[%s3406_s3 + $0x90] sm:$0xf] %vm1596_vm1, %v1583_v20 }
 0x1de   :  { %v2241_v25 = vpop.eup %2240  ;;  %v1586_v0 = vpack.c.bf16 %v1537_v17, %v1537_v17 }
 0x1df   :  { %v1486_v41 = vadd.f32 1.0, %v2241_v25 }
 0x1e0   :  { %1636 = vst.msk [vmem:[%s3406_s3 + $0x9c] sm:$0xf] %vm1596_vm1, %v1586_v0 }
 0x1e1   :  { %v1535_v54 = vmul.f32 %v1486_v41, %v1143_v46 }
 0x1e3   :  { %v1584_v7 = vpack.c.bf16 %v1535_v54, %v1535_v54 }
 0x1e5   :  { %1634 = vst.msk [vmem:[%s3406_s3 + $0x94] sm:$0xf] %vm1596_vm1, %v1584_v7 }

// kernel: conv_encoder_forward.8
= control target key start
LH: loop header
LB: loop body
LE: loop exit
PB: predicated region body
PF: predicated region fallthrough
CT: control target
= control target key end

     0   :  { %vm289_vm0 = vcmask 261120   ;;  %vm570_vm1 = vcmask 519168   ;;  %vm583_vm2 = vcmask 516096   ;;  %s1098_s1 = inlined_call_operand.vmem [shape: bf16[288,64], index: 1, kind: input, shape index: {}]   ;;  %s1099_s0 = inlined_call_operand.vmem [shape: bf16[98,288], index: 0, kind: input, shape index: {}]   ;;  %s1100_s2 = inlined_call_operand.vmem [shape: f32[1,64], index: 2, kind: input, shape index: {}]   ;;  %s1101_s3 = inlined_call_operand.vmem [shape: bf16[98,64], index: 3, kind: output, shape index: {}]  }
   0x1   :  { %v765_v0 = vld [vmem:[%s1098_s1 + $0x38] sm:$0xff]  ;;  %v775_v2 = vld [vmem:[%s1098_s1 + $0x88] sm:$0xff]  ;;  %v764_v3 = vld [vmem:[%s1098_s1 + $0x30] sm:$0xff] }
   0x2   :  { %v773_v1 = vld [vmem:[%s1098_s1 + $0x78] sm:$0xff]  ;;  %311 = vmatpush.bf16.msra.mxu0 %v765_v0  ;;  %776 = vmatpush.bf16.msra.mxu3 %v765_v0  ;;  %v772_v4 = vld [vmem:[%s1098_s1 + $0x70] sm:$0xff]  ;;  %v774_v5 = vld [vmem:[%s1098_s1 + $0x80] sm:$0xff] }
   0x3   :  { %354 = vmatpush.bf16.msra.mxu1 %v773_v1  ;;  %403 = vmatpush.bf16.msra.mxu2 %v775_v2  ;;  %v599_v6 = vld [vmem:[%s1099_s0 + $0x8] sm:$0xf]  ;;  %v742_v7 = vld [vmem:[%s1099_s0 + $0x10] sm:$0xf0]  ;;  %v762_v11 = vld [vmem:[%s1098_s1 + $0x20] sm:$0xff] }
   0x4   :  { %v600_v8 = vor.u32 %v742_v7, %v599_v6  ;;  %v763_v9 = vld [vmem:[%s1098_s1 + $0x28] sm:$0xff]  ;;  %v770_v12 = vld [vmem:[%s1098_s1 + $0x60] sm:$0xff]  ;;  %v761_v13 = vld [vmem:[%s1098_s1 + $0x18] sm:$0xff] }
   0x5   :  { %v771_v10 = vld [vmem:[%s1098_s1 + $0x68] sm:$0xff]  ;;  %v769_v14 = vld [vmem:[%s1098_s1 + $0x58] sm:$0xff]  ;;  %v760_v15 = vld [vmem:[%s1098_s1 + $0x10] sm:$0xff] }
   0x6   :  { %312 = vmatpush.bf16.msra.mxu0 %v764_v3  ;;  %777 = vmatpush.bf16.msra.mxu3 %v764_v3  ;;  %v768_v16 = vld [vmem:[%s1098_s1 + $0x50] sm:$0xff]  ;;  %v611_v17 = vld [vmem:[%s1099_s0 + $0x20] sm:$0xf]  ;;  %v745_v18 = vld [vmem:[%s1099_s0 + $0x28] sm:$0xf0] }
   0x7   :  { %355 = vmatpush.bf16.msra.mxu1 %v772_v4  ;;  %404 = vmatpush.bf16.msra.mxu2 %v774_v5  ;;  %v612_v19 = vor.u32 %v745_v18, %v611_v17  ;;  %v759_v20 = vld [vmem:[%s1098_s1 + $0x8] sm:$0xff]  ;;  %v758_v22 = vld [vmem:[%s1098_s1] sm:$0xff]  ;;  %v651_v26 = vld [vmem:[%s1099_s0 + $0x78] sm:$0xf] }
   0x8   :  { %v767_v21 = vld [vmem:[%s1098_s1 + $0x48] sm:$0xff]  ;;  %v766_v23 = vld [vmem:[%s1098_s1 + $0x40] sm:$0xff]  ;;  %v593_v29 = vld [vmem:[%s1099_s0 + $0xc] sm:$0xf0] }
   0x9   :  { %v591_v24 = vld [vmem:[%s1099_s0] sm:$0xf]  ;;  %v741_v25 = vld [vmem:[%s1099_s0 + $0x8] sm:$0xf0]  ;;  %v756_v27 = vld [vmem:[%s1099_s0 + $0x80] sm:$0xf0] }
   0xa   :  { %733 = vmatmul.msk.bf16.vlgmr.msra.gmra.mxu2 %vm289_vm0, %v600_v8  ;;  %313 = vmatpush.bf16.msra.mxu0 %v763_v9  ;;  %v740_v28 = vld [vmem:[%s1099_s0 + $0x4] sm:$0xf]  ;;  %v592_v30 = vor.u32 %v741_v25, %v591_v24  ;;  %v652_v31 = vor.u32 %v756_v27, %v651_v26  ;;  %v623_v33 = vld [vmem:[%s1099_s0 + $0x38] sm:$0xf]  ;;  %v39_v36 = vld [vmem:[%s1099_s0 + $0x90] sm:$0x11] }
   0xb   :  { %778 = vmatpush.bf16.msra.mxu3 %v763_v9  ;;  %356 = vmatpush.bf16.msra.mxu1 %v771_v10  ;;  %v596_v32 = vor.u32 %v740_v28, %v593_v29  ;;  %v748_v34 = vld [vmem:[%s1099_s0 + $0x40] sm:$0xf0]  ;;  %v603_v37 = vld [vmem:[%s1099_s0 + $0x18] sm:$0xf]  ;;  %v143_v39 = vunpack.c.l.b16 %v39_v36  ;;  %v743_v40 = vld [vmem:[%s1099_s0 + $0x1c] sm:$0xf]  ;;  %v144_v62 = vunpack.c.h.b16 %v39_v36 }
   0xc   :  { %v624_v35 = vor.u32 %v748_v34, %v623_v33  ;;  %v744_v38 = vld [vmem:[%s1099_s0 + $0x20] sm:$0xf0]  ;;  %v605_v41 = vld [vmem:[%s1099_s0 + $0x24] sm:$0xf0]  ;;  %v635_v45 = vld [vmem:[%s1099_s0 + $0x50] sm:$0xf] }
   0xd   :  { %v604_v42 = vor.u32 %v744_v38, %v603_v37  ;;  %v164_v43 = vpack.c.b16 %v143_v39, %v143_v39  ;;  %v608_v44 = vor.u32 %v743_v40, %v605_v41  ;;  %v751_v46 = vld [vmem:[%s1099_s0 + $0x58] sm:$0xf0]  ;;  %v615_v48 = vld [vmem:[%s1099_s0 + $0x30] sm:$0xf]  ;;  %v746_v50 = vld [vmem:[%s1099_s0 + $0x34] sm:$0xf]  ;;  %v165_v3 = vpack.c.b16 %v144_v62, %v144_v62 }
   0xe   :  { %314 = vmatpush.bf16.msra.mxu0 %v762_v11  ;;  %v636_v47 = vor.u32 %v751_v46, %v635_v45  ;;  %v747_v49 = vld [vmem:[%s1099_s0 + $0x38] sm:$0xf0]  ;;  %v617_v51 = vld [vmem:[%s1099_s0 + $0x3c] sm:$0xf0]  ;;  %v653_v53 = vld [vmem:[%s1099_s0 + $0x84] sm:$0xf0] }
   0xf   :  { %779 = vmatpush.bf16.msra.mxu3 %v762_v11  ;;  %357 = vmatpush.bf16.msra.mxu1 %v770_v12  ;;  %v755_v52 = vld [vmem:[%s1099_s0 + $0x7c] sm:$0xf]  ;;  %v616_v54 = vor.u32 %v747_v49, %v615_v48  ;;  %v620_v55 = vor.u32 %v746_v50, %v617_v51  ;;  %v647_v57 = vld [vmem:[%s1099_s0 + $0x68] sm:$0xf]  ;;  %v754_v58 = vld [vmem:[%s1099_s0 + $0x70] sm:$0xf0] }
  0x10   :  { %v656_v56 = vor.u32 %v755_v52, %v653_v53  ;;  %v648_v59 = vor.u32 %v754_v58, %v647_v57  ;;  %v627_v60 = vld [vmem:[%s1099_s0 + $0x48] sm:$0xf]  ;;  %v750_v61 = vld [vmem:[%s1099_s0 + $0x50] sm:$0xf0]  ;;  %v749_v63 = vld [vmem:[%s1099_s0 + $0x4c] sm:$0xf] }
  0x11   :  { %v629_v0 = vld [vmem:[%s1099_s0 + $0x54] sm:$0xf0]  ;;  %v757_v5 = vld [vmem:[%s1099_s0 + $0x88] sm:$0xf0]  ;;  %v639_v7 = vld [vmem:[%s1099_s0 + $0x60] sm:$0xf] }
  0x12   :  { %315 = vmatpush.bf16.msra.mxu0 %v761_v13  ;;  %v632_v2 = vor.u32 %v749_v63, %v629_v0  ;;  %v753_v8 = vld [vmem:[%s1099_s0 + $0x68] sm:$0xf0]  ;;  %v752_v9 = vld [vmem:[%s1099_s0 + $0x64] sm:$0xf]  ;;  %v1017_v18 = vld [vmem:[%s1100_s2] ss:$0 sm:$0xff] }
  0x13   :  { %780 = vmatpush.bf16.msra.mxu3 %v761_v13  ;;  %358 = vmatpush.bf16.msra.mxu1 %v769_v14  ;;  %v640_v11 = vor.u32 %v753_v8, %v639_v7  ;;  %v40_v13 = vld [vmem:[%s1099_s0 + $0x98] sm:$0x1] }
  0x16   :  { %316 = vmatpush.bf16.msra.mxu0 %v760_v15 }
  0x17   :  { %781 = vmatpush.bf16.msra.mxu3 %v760_v15  ;;  %359 = vmatpush.bf16.msra.mxu1 %v768_v16 }
  0x1a   :  { %734 = vmatmul.msk.bf16.gmra.mxu2 %vm289_vm0, %v612_v19  ;;  %317 = vmatpush.bf16.msra.mxu0 %v759_v20 }
  0x1b   :  { %782 = vmatpush.bf16.msra.mxu3 %v759_v20  ;;  %360 = vmatpush.bf16.msra.mxu1 %v767_v21 }
  0x1e   :  { %318 = vmatpush.bf16.msra.mxu0 %v758_v22 }
  0x1f   :  { %783 = vmatpush.bf16.msra.mxu3 %v758_v22  ;;  %361 = vmatpush.bf16.msra.mxu1 %v766_v23 }
  0x21   :  { %319 = vmatmul.bf16.vlgmr.msra.gmra.mxu0 %v592_v30 }
  0x22   :  { %344 = vmatmul.bf16.vlgmr.msra.gmra.mxu3 %v652_v31  ;;  %362 = vmatmul.bf16.vlgmr.msra.gmra.mxu1 %v596_v32 }
  0x23   :  { %784 = vmatpush.bf16.msrb.mxu3 %v773_v1  ;;  %v628_v1 = vor.u32 %v750_v61, %v627_v60 }
  0x27   :  { %785 = vmatpush.bf16.msrb.mxu3 %v772_v4  ;;  %v659_v4 = vld [vmem:[%s1099_s0 + $0x80] sm:$0xf] }
  0x28   :  { %v660_v6 = vor.u32 %v757_v5, %v659_v4 }
  0x2a   :  { %735 = vmatmul.msk.bf16.gmra.mxu2 %vm289_vm0, %v624_v35 }
  0x2b   :  { %786 = vmatpush.bf16.msrb.mxu3 %v771_v10  ;;  %v641_v10 = vld [vmem:[%s1099_s0 + $0x6c] sm:$0xf0] }
  0x2f   :  { %787 = vmatpush.bf16.msrb.mxu3 %v770_v12  ;;  %v644_v12 = vor.u32 %v752_v9, %v641_v10 }
  0x31   :  { %324 = vmatmul.bf16.gmra.mxu0 %v604_v42 }
  0x32   :  { %349 = vmatmul.bf16.gmra.mxu3 %v164_v43  ;;  %367 = vmatmul.bf16.gmra.mxu1 %v608_v44 }
  0x33   :  { %788 = vmatpush.bf16.msrb.mxu3 %v769_v14  ;;  %v145_v14 = vunpack.c.l.b16 %v40_v13 }
  0x35   :  { %v166_v15 = vpack.c.b16 %v145_v14, %v145_v14 }
  0x37   :  { %789 = vmatpush.bf16.msrb.mxu3 %v768_v16 }
  0x3a   :  { %736 = vmatmul.msk.bf16.gmra.mxu2 %vm289_vm0, %v636_v47 }
  0x3b   :  { %790 = vmatpush.bf16.msrb.mxu3 %v767_v21 }
  0x3f   :  { %791 = vmatpush.bf16.msrb.mxu3 %v766_v23 }
  0x41   :  { %329 = vmatmul.bf16.gmra.mxu0 %v616_v54 }
  0x42   :  { %372 = vmatmul.bf16.gmra.mxu1 %v620_v55  ;;  %387 = vmatmul.bf16.vlgmr.msrb.gmra.mxu3 %v656_v56 }
  0x4a   :  { %737 = vmatmul.msk.bf16.gmra.mxu2 %vm289_vm0, %v648_v59 }
  0x51   :  { %334 = vmatmul.bf16.gmra.mxu0 %v628_v1 }
  0x52   :  { %377 = vmatmul.bf16.gmra.mxu1 %v632_v2  ;;  %392 = vmatmul.bf16.gmra.mxu3 %v165_v3 }
  0x5a   :  { %738 = vmatmul.msk.bf16.gmra.mxu2 %vm289_vm0, %v660_v6 }
  0x61   :  { %339 = vmatmul.bf16.gmra.mxu0 %v640_v11 }
  0x62   :  { %382 = vmatmul.bf16.gmra.mxu1 %v644_v12 }
  0x6a   :  { %739 = vmatmul.msk.bf16.gmra.mxu2 %vm289_vm0, %v166_v15 }
  0x8d   :  { %v406_v16 = vpop.f32.mrf.mxu2 }
  0x95   :  { %v408_v17 = vpop.f32.mrf.mxu2 }
  0x9d   :  { %v411_v19 = vpop.f32.mrf.mxu2 }
  0x9e   :  { %v320_v20 = vpop.f32.mrf.mxu0 }
  0x9f   :  { %v321_v21 = vadd.f32 %v1017_v18, %v320_v20  ;;  %v363_v22 = vpop.f32.mrf.mxu1 }
  0xa1   :  { %v364_v23 = vadd.f32 %v363_v22, %v321_v21 }
  0xa3   :  { %v407_v24 = vadd.f32 %v406_v16, %v364_v23 }
  0xa5   :  { %v453_v25 = vmul.f32 %v407_v24, %v407_v24  ;;  %v1020_v26 = vpop.f32.mrf.mxu3  ;;  %v413_v27 = vpop.f32.mrf.mxu2  ;;  %v440_v53 = vmul.f32 0.5, %v407_v24 }
  0xa6   :  { %v322_v28 = vpop.f32.mrf.mxu0 }
  0xa7   :  { %v466_v29 = vmul.f32 %v453_v25, %v407_v24  ;;  %v323_v30 = vadd.f32 %v1017_v18, %v322_v28  ;;  %v365_v31 = vpop.f32.mrf.mxu1 }
  0xa9   :  { %v479_v32 = vmul.f32 0.044715, %v466_v29  ;;  %v366_v33 = vadd.f32 %v365_v31, %v323_v30 }
  0xab   :  { %v492_v34 = vadd.f32 %v479_v32, %v407_v24  ;;  %v409_v35 = vadd.f32 %v408_v17, %v366_v33 }
  0xad   :  { %v505_v36 = vmul.f32 0.7978846, %v492_v34  ;;  %v454_v37 = vmul.f32 %v409_v35, %v409_v35  ;;  %v1023_v38 = vpop.f32.mrf.mxu3  ;;  %v416_v39 = vpop.f32.mrf.mxu2  ;;  %v441_v6 = vmul.f32 0.5, %v409_v35 }
  0xae   :  { %v325_v40 = vpop.f32.mrf.mxu0 }
  0xaf   :  { %793 = vtanh.f32 %v505_v36  ;;  %v467_v41 = vmul.f32 %v454_v37, %v409_v35  ;;  %v326_v42 = vadd.f32 %v1017_v18, %v325_v40  ;;  %v368_v43 = vpop.f32.mrf.mxu1 }
  0xb1   :  { %v480_v44 = vmul.f32 0.044715, %v467_v41  ;;  %v369_v45 = vadd.f32 %v368_v43, %v326_v42 }
  0xb3   :  { %v493_v46 = vadd.f32 %v480_v44, %v409_v35  ;;  %v412_v47 = vadd.f32 %v411_v19, %v369_v45 }
  0xb5   :  { %v794_v48 = vpop.eup %793  ;;  %v506_v49 = vmul.f32 0.7978846, %v493_v46  ;;  %v455_v50 = vmul.f32 %v412_v47, %v412_v47  ;;  %v1026_v51 = vpop.f32.mrf.mxu3  ;;  %v442_v24 = vmul.f32 0.5, %v412_v47 }
  0xb6   :  { %v418_v52 = vpop.f32.mrf.mxu2  ;;  %v531_v54 = vadd.f32 1.0, %v794_v48  ;;  %v327_v55 = vpop.f32.mrf.mxu0 }
  0xb7   :  { %795 = vtanh.f32 %v506_v49  ;;  %v468_v56 = vmul.f32 %v455_v50, %v412_v47  ;;  %v328_v57 = vadd.f32 %v1017_v18, %v327_v55  ;;  %v370_v58 = vpop.f32.mrf.mxu1 }
  0xb8   :  { %v544_v59 = vmul.f32 %v531_v54, %v440_v53 }
  0xb9   :  { %v481_v60 = vmul.f32 0.044715, %v468_v56  ;;  %v371_v61 = vadd.f32 %v370_v58, %v328_v57 }
  0xba   :  { %v557_v62 = vpack.c.bf16 %v544_v59, %v544_v59 }
  0xbb   :  { %v494_v63 = vadd.f32 %v481_v60, %v412_v47  ;;  %v414_v0 = vadd.f32 %v413_v27, %v371_v61 }
  0xbc   :  { %571 = vst.msk [vmem:[%s1101_s3] sm:$0xf] %vm570_vm1, %v557_v62 }
  0xbd   :  { %v796_v1 = vpop.eup %795  ;;  %v507_v2 = vmul.f32 0.7978846, %v494_v63  ;;  %v456_v3 = vmul.f32 %v414_v0, %v414_v0  ;;  %v352_v4 = vpop.f32.mrf.mxu3  ;;  %v443_v43 = vmul.f32 0.5, %v414_v0 }
  0xbe   :  { %v421_v5 = vpop.f32.mrf.mxu2  ;;  %v532_v7 = vadd.f32 1.0, %v796_v1  ;;  %v330_v8 = vpop.f32.mrf.mxu0 }
  0xbf   :  { %797 = vtanh.f32 %v507_v2  ;;  %v469_v9 = vmul.f32 %v456_v3, %v414_v0  ;;  %v331_v10 = vadd.f32 %v1017_v18, %v330_v8  ;;  %v373_v11 = vpop.f32.mrf.mxu1 }
  0xc0   :  { %v545_v12 = vmul.f32 %v532_v7, %v441_v6  ;;  %v346_v6 = vadd.f32 %v1017_v18, %v1020_v26 }
  0xc1   :  { %v482_v13 = vmul.f32 0.044715, %v469_v9  ;;  %v374_v14 = vadd.f32 %v373_v11, %v331_v10 }
  0xc2   :  { %v558_v15 = vpack.c.bf16 %v545_v12, %v545_v12 }
  0xc3   :  { %v495_v16 = vadd.f32 %v482_v13, %v414_v0  ;;  %v417_v17 = vadd.f32 %v416_v39, %v374_v14 }
  0xc4   :  { %572 = vst.msk [vmem:[%s1101_s3 + $0x4] sm:$0xf] %vm570_vm1, %v558_v15 }
  0xc5   :  { %v798_v19 = vpop.eup %797  ;;  %v508_v20 = vmul.f32 0.7978846, %v495_v16  ;;  %v457_v21 = vmul.f32 %v417_v17, %v417_v17  ;;  %v388_v22 = vpop.f32.mrf.mxu3  ;;  %v444_v61 = vmul.f32 0.5, %v417_v17 }
  0xc6   :  { %v423_v23 = vpop.f32.mrf.mxu2  ;;  %v533_v25 = vadd.f32 1.0, %v798_v19  ;;  %v332_v27 = vpop.f32.mrf.mxu0  ;;  %v389_v10 = vadd.f32 %v388_v22, %v346_v6  ;;  %v348_v22 = vadd.f32 %v1017_v18, %v1023_v38 }
  0xc7   :  { %799 = vtanh.f32 %v508_v20  ;;  %v470_v28 = vmul.f32 %v457_v21, %v417_v17  ;;  %v333_v29 = vadd.f32 %v1017_v18, %v332_v27  ;;  %v375_v30 = vpop.f32.mrf.mxu1 }
  0xc8   :  { %v546_v31 = vmul.f32 %v533_v25, %v442_v24 }
  0xc9   :  { %v483_v32 = vmul.f32 0.044715, %v470_v28  ;;  %v376_v33 = vadd.f32 %v375_v30, %v333_v29 }
  0xca   :  { %v559_v34 = vpack.c.bf16 %v546_v31, %v546_v31 }
  0xcb   :  { %v496_v35 = vadd.f32 %v483_v32, %v417_v17  ;;  %v419_v36 = vadd.f32 %v418_v52, %v376_v33 }
  0xcc   :  { %573 = vst.msk [vmem:[%s1101_s3 + $0x8] sm:$0xf] %vm570_vm1, %v559_v34 }
  0xcd   :  { %v800_v37 = vpop.eup %799  ;;  %v509_v39 = vmul.f32 0.7978846, %v496_v35  ;;  %v458_v40 = vmul.f32 %v419_v36, %v419_v36  ;;  %v390_v41 = vpop.f32.mrf.mxu3  ;;  %v445_v16 = vmul.f32 0.5, %v419_v36 }
  0xce   :  { %v426_v42 = vpop.f32.mrf.mxu2  ;;  %v534_v44 = vadd.f32 1.0, %v800_v37  ;;  %v335_v45 = vpop.f32.mrf.mxu0  ;;  %v391_v33 = vadd.f32 %v390_v41, %v348_v22 }
  0xcf   :  { %801 = vtanh.f32 %v509_v39  ;;  %v471_v46 = vmul.f32 %v458_v40, %v419_v36  ;;  %v336_v47 = vadd.f32 %v1017_v18, %v335_v45  ;;  %v378_v48 = vpop.f32.mrf.mxu1 }
  0xd0   :  { %v547_v49 = vmul.f32 %v534_v44, %v443_v43 }
  0xd1   :  { %v484_v50 = vmul.f32 0.044715, %v471_v46  ;;  %v379_v52 = vadd.f32 %v378_v48, %v336_v47 }
  0xd2   :  { %v560_v53 = vpack.c.bf16 %v547_v49, %v547_v49 }
  0xd3   :  { %v497_v54 = vadd.f32 %v484_v50, %v419_v36  ;;  %v422_v55 = vadd.f32 %v421_v5, %v379_v52 }
  0xd4   :  { %574 = vst.msk [vmem:[%s1101_s3 + $0xc] sm:$0xf] %vm570_vm1, %v560_v53  ;;  %v351_v53 = vadd.f32 %v1017_v18, %v1026_v51 }
  0xd5   :  { %v802_v56 = vpop.eup %801  ;;  %v510_v57 = vmul.f32 0.7978846, %v497_v54  ;;  %v459_v58 = vmul.f32 %v422_v55, %v422_v55  ;;  %v1048_v59 = vpop.f32.mrf.mxu3  ;;  %v446_v40 = vmul.f32 0.5, %v422_v55 }
  0xd6   :  { %v1050_v60 = vpop.f32.mrf.mxu2  ;;  %v535_v62 = vadd.f32 1.0, %v802_v56  ;;  %v337_v63 = vpop.f32.mrf.mxu0 }
  0xd7   :  { %803 = vtanh.f32 %v510_v57  ;;  %v472_v0 = vmul.f32 %v459_v58, %v422_v55  ;;  %v338_v1 = vadd.f32 %v1017_v18, %v337_v63  ;;  %v380_v2 = vpop.f32.mrf.mxu1  ;;  %v394_v58 = vadd.f32 %v1048_v59, %v351_v53 }
  0xd8   :  { %v548_v3 = vmul.f32 %v535_v62, %v444_v61 }
  0xd9   :  { %v485_v4 = vmul.f32 0.044715, %v472_v0  ;;  %v381_v5 = vadd.f32 %v380_v2, %v338_v1 }
  0xda   :  { %v561_v7 = vpack.c.bf16 %v548_v3, %v548_v3 }
  0xdb   :  { %v498_v8 = vadd.f32 %v485_v4, %v422_v55  ;;  %v424_v9 = vadd.f32 %v423_v23, %v381_v5 }
  0xdc   :  { %575 = vst.msk [vmem:[%s1101_s3 + $0x10] sm:$0xf] %vm570_vm1, %v561_v7 }
  0xdd   :  { %v804_v11 = vpop.eup %803  ;;  %v511_v12 = vmul.f32 0.7978846, %v498_v8  ;;  %v460_v13 = vmul.f32 %v424_v9, %v424_v9  ;;  %v395_v15 = vpop.f32.mrf.mxu3  ;;  %v447_v2 = vmul.f32 0.5, %v424_v9 }
  0xde   :  { %v431_v14 = vpop.f32.mrf.mxu2  ;;  %v536_v17 = vadd.f32 1.0, %v804_v11  ;;  %v340_v20 = vpop.f32.mrf.mxu0 }
  0xdf   :  { %v432_v19 = vadd.f32 %v431_v14, %v389_v10  ;;  %805 = vtanh.f32 %v511_v12  ;;  %v473_v26 = vmul.f32 %v460_v13, %v424_v9  ;;  %v341_v21 = vadd.f32 %v1017_v18, %v340_v20  ;;  %v383_v23 = vpop.f32.mrf.mxu1 }
  0xe0   :  { %v549_v24 = vmul.f32 %v536_v17, %v445_v16 }
  0xe1   :  { %v463_v25 = vmul.f32 %v432_v19, %v432_v19  ;;  %v486_v27 = vmul.f32 0.044715, %v473_v26  ;;  %v384_v28 = vadd.f32 %v383_v23, %v341_v21  ;;  %v450_v8 = vmul.f32 0.5, %v432_v19 }
  0xe2   :  { %v562_v29 = vpack.c.bf16 %v549_v24, %v549_v24 }
  0xe3   :  { %v476_v30 = vmul.f32 %v463_v25, %v432_v19  ;;  %v499_v31 = vadd.f32 %v486_v27, %v424_v9  ;;  %v427_v32 = vadd.f32 %v426_v42, %v384_v28 }
  0xe4   :  { %576 = vst.msk [vmem:[%s1101_s3 + $0x14] sm:$0xf] %vm570_vm1, %v562_v29 }
  0xe5   :  { %v489_v34 = vmul.f32 0.044715, %v476_v30  ;;  %v806_v35 = vpop.eup %805  ;;  %v512_v36 = vmul.f32 0.7978846, %v499_v31  ;;  %v461_v37 = vmul.f32 %v427_v32, %v427_v32  ;;  %v448_v26 = vmul.f32 0.5, %v427_v32 }
  0xe6   :  { %v433_v39 = vpop.f32.mrf.mxu2  ;;  %v537_v43 = vadd.f32 1.0, %v806_v35  ;;  %v342_v38 = vpop.f32.mrf.mxu0 }
  0xe7   :  { %v502_v44 = vadd.f32 %v489_v34, %v432_v19  ;;  %v434_v45 = vadd.f32 %v433_v39, %v391_v33  ;;  %807 = vtanh.f32 %v512_v36  ;;  %v474_v46 = vmul.f32 %v461_v37, %v427_v32  ;;  %v385_v50 = vpop.f32.mrf.mxu1 }
  0xe8   :  { %v343_v42 = vadd.f32 %v1017_v18, %v342_v38  ;;  %v550_v47 = vmul.f32 %v537_v43, %v446_v40 }
  0xe9   :  { %v515_v48 = vmul.f32 0.7978846, %v502_v44  ;;  %v464_v49 = vmul.f32 %v434_v45, %v434_v45  ;;  %v487_v52 = vmul.f32 0.044715, %v474_v46  ;;  %v451_v27 = vmul.f32 0.5, %v434_v45 }
  0xea   :  { %v386_v41 = vadd.f32 %v385_v50, %v343_v42  ;;  %v563_v54 = vpack.c.bf16 %v550_v47, %v550_v47 }
  0xeb   :  { %809 = vtanh.f32 %v515_v48  ;;  %v477_v55 = vmul.f32 %v464_v49, %v434_v45  ;;  %v500_v56 = vadd.f32 %v487_v52, %v427_v32 }
  0xec   :  { %v429_v57 = vadd.f32 %v1050_v60, %v386_v41  ;;  %577 = vst.msk [vmem:[%s1101_s3 + $0x18] sm:$0xf] %vm570_vm1, %v563_v54 }
  0xed   :  { %v490_v61 = vmul.f32 0.044715, %v477_v55  ;;  %v808_v62 = vpop.eup %807  ;;  %v513_v63 = vmul.f32 0.7978846, %v500_v56 }
  0xee   :  { %v462_v0 = vmul.f32 %v429_v57, %v429_v57  ;;  %v436_v1 = vpop.f32.mrf.mxu2  ;;  %v538_v18 = vadd.f32 1.0, %v808_v62  ;;  %v449_v32 = vmul.f32 0.5, %v429_v57 }
  0xef   :  { %v503_v51 = vadd.f32 %v490_v61, %v434_v45  ;;  %v437_v3 = vadd.f32 %v436_v1, %v394_v58  ;;  %811 = vtanh.f32 %v513_v63 }
  0xf0   :  { %v475_v4 = vmul.f32 %v462_v0, %v429_v57  ;;  %v551_v60 = vmul.f32 %v538_v18, %v447_v2 }
  0xf1   :  { %v810_v5 = vpop.eup %809  ;;  %v516_v6 = vmul.f32 0.7978846, %v503_v51  ;;  %v465_v7 = vmul.f32 %v437_v3, %v437_v3  ;;  %v452_v36 = vmul.f32 0.5, %v437_v3 }
  0xf2   :  { %v541_v10 = vadd.f32 1.0, %v810_v5  ;;  %v488_v11 = vmul.f32 0.044715, %v475_v4  ;;  %v564_v12 = vpack.c.bf16 %v551_v60, %v551_v60 }
  0xf3   :  { %813 = vtanh.f32 %v516_v6  ;;  %v478_v59 = vmul.f32 %v465_v7, %v437_v3 }
  0xf4   :  { %v554_v13 = vmul.f32 %v541_v10, %v450_v8  ;;  %v501_v14 = vadd.f32 %v488_v11, %v429_v57  ;;  %578 = vst.msk [vmem:[%s1101_s3 + $0x1c] sm:$0xf] %vm570_vm1, %v564_v12 }
  0xf5   :  { %v491_v9 = vmul.f32 0.044715, %v478_v59  ;;  %v812_v15 = vpop.eup %811 }
  0xf6   :  { %v567_v16 = vpack.c.bf16 %v554_v13, %v554_v13  ;;  %v514_v17 = vmul.f32 0.7978846, %v501_v14  ;;  %v438_v20 = vpop.f32.mrf.mxu2  ;;  %v539_v21 = vadd.f32 1.0, %v812_v15 }
  0xf7   :  { %v504_v19 = vadd.f32 %v491_v9, %v437_v3 }
  0xf8   :  { %581 = vst.msk [vmem:[%s1101_s3 + $0x28] sm:$0xf] %vm570_vm1, %v567_v16  ;;  %815 = vtanh.f32 %v514_v17  ;;  %v552_v24 = vmul.f32 %v539_v21, %v448_v26 }
  0xf9   :  { %v814_v23 = vpop.eup %813  ;;  %v517_v25 = vmul.f32 0.7978846, %v504_v19 }
  0xfa   :  { %v542_v28 = vadd.f32 1.0, %v814_v23  ;;  %v565_v22 = vpack.c.bf16 %v552_v24, %v552_v24 }
  0xfb   :  { %817 = vtanh.f32 %v517_v25 }
  0xfc   :  { %v555_v29 = vmul.f32 %v542_v28, %v451_v27  ;;  %579 = vst.msk [vmem:[%s1101_s3 + $0x20] sm:$0xf] %vm570_vm1, %v565_v22 }
  0xfe   :  { %v816_v30 = vpop.eup %815  ;;  %v568_v31 = vpack.c.bf16 %v555_v29, %v555_v29 }
  0xff   :  { %v540_v33 = vadd.f32 1.0, %v816_v30 }
 0x100   :  { %582 = vst.msk [vmem:[%s1101_s3 + $0x2c] sm:$0xf] %vm570_vm1, %v568_v31 }
 0x101   :  { %v818_v34 = vpop.eup %817  ;;  %v553_v35 = vmul.f32 %v540_v33, %v449_v32 }
 0x102   :  { %v543_v37 = vadd.f32 1.0, %v818_v34 }
 0x103   :  { %v566_v39 = vpack.c.bf16 %v553_v35, %v553_v35 }
 0x104   :  { %v556_v40 = vmul.f32 %v543_v37, %v452_v36 }
 0x105   :  { %580 = vst.msk [vmem:[%s1101_s3 + $0x24] sm:$0xf] %vm570_vm1, %v566_v39 }
 0x106   :  { %v569_v43 = vpack.c.bf16 %v556_v40, %v556_v40 }
 0x108   :  { %584 = vst.msk [vmem:[%s1101_s3 + $0x30] sm:$0x1] %vm583_vm2, %v569_v43 }

// kernel: conv_encoder_forward.9
= control target key start
LH: loop header
LB: loop body
LE: loop exit
PB: predicated region body
PF: predicated region fallthrough
CT: control target
= control target key end

     0   :  { %vm513_vm0 = vcmask 523264   ;;  %vm880_vm1 = vcmask 519168   ;;  %vm893_vm2 = vcmask 516096   ;;  %s1711_s1 = inlined_call_operand.vmem [shape: bf16[576,64], index: 1, kind: input, shape index: {}]   ;;  %s1712_s2 = inlined_call_operand.vmem [shape: f32[1,64], index: 2, kind: input, shape index: {}]   ;;  %s1713_s0 = inlined_call_operand.vmem [shape: bf16[98,576], index: 0, kind: input, shape index: {}]   ;;  %s1714_s3 = inlined_call_operand.vmem [shape: bf16[98,64], index: 3, kind: output, shape index: {}]  }
   0x1   :  { %v1207_v0 = vld [vmem:[%s1711_s1 + $0x38] sm:$0xff]  ;;  %v1206_v1 = vld [vmem:[%s1711_s1 + $0x30] sm:$0xff]  ;;  %v1205_v2 = vld [vmem:[%s1711_s1 + $0x28] sm:$0xff] }
   0x2   :  { %1236 = vmatpush.bf16.msra.mxu1 %v1207_v0  ;;  %1237 = vmatpush.bf16.msra.mxu2 %v1207_v0  ;;  %v1204_v3 = vld [vmem:[%s1711_s1 + $0x20] sm:$0xff]  ;;  %v1203_v4 = vld [vmem:[%s1711_s1 + $0x18] sm:$0xff]  ;;  %v1202_v5 = vld [vmem:[%s1711_s1 + $0x10] sm:$0xff] }
   0x3   :  { %1238 = vmatpush.bf16.msra.mxu3 %v1207_v0  ;;  %535 = vmatpush.bf16.msra.mxu0 %v1207_v0  ;;  %v1201_v6 = vld [vmem:[%s1711_s1 + $0x8] sm:$0xff]  ;;  %v1331_v7 = vld [vmem:[%s1713_s0 + $0xf0] sm:$0x11]  ;;  %v1200_v8 = vld [vmem:[%s1711_s1] sm:$0xff] }
   0x4   :  { %v941_v9 = vld [vmem:[%s1713_s0 + $0x50] sm:$0xf]  ;;  %v1182_v10 = vld [vmem:[%s1713_s0 + $0x60] sm:$0xf0]  ;;  %v981_v11 = vld [vmem:[%s1713_s0 + $0xa0] sm:$0xf]  ;;  %v229_v15 = vunpack.c.l.b16 %v1331_v7 }
   0x5   :  { %v1192_v12 = vld [vmem:[%s1713_s0 + $0xb0] sm:$0xf0]  ;;  %v901_v13 = vld [vmem:[%s1713_s0] sm:$0xf]  ;;  %v1231_v16 = vld [vmem:[%s1711_s1 + $0xf8] sm:$0xff]  ;;  %v942_v18 = vor.u32 %v1182_v10, %v941_v9 }
   0x6   :  { %1239 = vmatpush.bf16.msra.mxu1 %v1206_v1  ;;  %1240 = vmatpush.bf16.msra.mxu2 %v1206_v1  ;;  %v1172_v14 = vld [vmem:[%s1713_s0 + $0x10] sm:$0xf0]  ;;  %v1223_v17 = vld [vmem:[%s1711_s1 + $0xb8] sm:$0xff]  ;;  %v982_v19 = vor.u32 %v1192_v12, %v981_v11  ;;  %v264_v22 = vpack.c.b16 %v229_v15, %v229_v15  ;;  %v1229_v28 = vld [vmem:[%s1711_s1 + $0xe8] sm:$0xff] }
   0x7   :  { %1241 = vmatpush.bf16.msra.mxu3 %v1206_v1  ;;  %536 = vmatpush.bf16.msra.mxu0 %v1206_v1  ;;  %v1215_v20 = vld [vmem:[%s1711_s1 + $0x78] sm:$0xff]  ;;  %v902_v21 = vor.u32 %v1172_v14, %v901_v13  ;;  %v1230_v24 = vld [vmem:[%s1711_s1 + $0xf0] sm:$0xff]  ;;  %v1221_v29 = vld [vmem:[%s1711_s1 + $0xa8] sm:$0xff] }
   0x8   :  { %v1235_v23 = vld [vmem:[%s1711_s1 + $0x118] sm:$0xff]  ;;  %v1222_v25 = vld [vmem:[%s1711_s1 + $0xb0] sm:$0xff]  ;;  %v1213_v30 = vld [vmem:[%s1711_s1 + $0x68] sm:$0xff] }
   0x9   :  { %v1214_v26 = vld [vmem:[%s1711_s1 + $0x70] sm:$0xff]  ;;  %v1233_v31 = vld [vmem:[%s1711_s1 + $0x108] sm:$0xff]  ;;  %v1228_v32 = vld [vmem:[%s1711_s1 + $0xe0] sm:$0xff] }
   0xa   :  { %1242 = vmatpush.bf16.msra.mxu1 %v1205_v2  ;;  %1243 = vmatpush.bf16.msra.mxu2 %v1205_v2  ;;  %v1234_v27 = vld [vmem:[%s1711_s1 + $0x110] sm:$0xff]  ;;  %v1220_v33 = vld [vmem:[%s1711_s1 + $0xa0] sm:$0xff]  ;;  %v961_v35 = vld [vmem:[%s1713_s0 + $0x78] sm:$0xf] }
   0xb   :  { %1244 = vmatpush.bf16.msra.mxu3 %v1205_v2  ;;  %537 = vmatpush.bf16.msra.mxu0 %v1205_v2  ;;  %v1212_v34 = vld [vmem:[%s1711_s1 + $0x60] sm:$0xff]  ;;  %v1187_v36 = vld [vmem:[%s1713_s0 + $0x88] sm:$0xf0]  ;;  %v1001_v37 = vld [vmem:[%s1713_s0 + $0xc8] sm:$0xf] }
   0xc   :  { %v1197_v38 = vld [vmem:[%s1713_s0 + $0xd8] sm:$0xf0]  ;;  %v921_v39 = vld [vmem:[%s1713_s0 + $0x28] sm:$0xf]  ;;  %v1232_v41 = vld [vmem:[%s1711_s1 + $0x100] sm:$0xff]  ;;  %v962_v44 = vor.u32 %v1187_v36, %v961_v35 }
   0xd   :  { %v1177_v40 = vld [vmem:[%s1713_s0 + $0x38] sm:$0xf0]  ;;  %v1002_v45 = vor.u32 %v1197_v38, %v1001_v37  ;;  %v1226_v48 = vld [vmem:[%s1711_s1 + $0xd0] sm:$0xff]  ;;  %v1225_v51 = vld [vmem:[%s1711_s1 + $0xc8] sm:$0xff] }
   0xe   :  { %1245 = vmatpush.bf16.msra.mxu1 %v1204_v3  ;;  %1246 = vmatpush.bf16.msra.mxu2 %v1204_v3  ;;  %v1227_v42 = vld [vmem:[%s1711_s1 + $0xd8] sm:$0xff]  ;;  %v922_v47 = vor.u32 %v1177_v40, %v921_v39  ;;  %v1218_v49 = vld [vmem:[%s1711_s1 + $0x90] sm:$0xff]  ;;  %v1217_v52 = vld [vmem:[%s1711_s1 + $0x88] sm:$0xff] }
   0xf   :  { %1247 = vmatpush.bf16.msra.mxu3 %v1204_v3  ;;  %538 = vmatpush.bf16.msra.mxu0 %v1204_v3  ;;  %v1219_v43 = vld [vmem:[%s1711_s1 + $0x98] sm:$0xff]  ;;  %v1210_v50 = vld [vmem:[%s1711_s1 + $0x50] sm:$0xff]  ;;  %v1209_v53 = vld [vmem:[%s1711_s1 + $0x48] sm:$0xff] }
  0x10   :  { %v1211_v46 = vld [vmem:[%s1711_s1 + $0x58] sm:$0xff]  ;;  %v1224_v54 = vld [vmem:[%s1711_s1 + $0xc0] sm:$0xff]  ;;  %v1171_v56 = vld [vmem:[%s1713_s0 + $0xc] sm:$0xf] }
  0x11   :  { %v1216_v55 = vld [vmem:[%s1711_s1 + $0x80] sm:$0xff]  ;;  %v903_v60 = vld [vmem:[%s1713_s0 + $0x14] sm:$0xf0]  ;;  %v909_v61 = vld [vmem:[%s1713_s0 + $0x8] sm:$0xf] }
  0x12   :  { %1248 = vmatpush.bf16.msra.mxu1 %v1203_v4  ;;  %1249 = vmatpush.bf16.msra.mxu2 %v1203_v4  ;;  %v911_v57 = vld [vmem:[%s1713_s0 + $0x1c] sm:$0xf0]  ;;  %v1170_v59 = vld [vmem:[%s1713_s0 + $0x4] sm:$0xf]  ;;  %v1173_v62 = vld [vmem:[%s1713_s0 + $0x18] sm:$0xf0] }
  0x13   :  { %1250 = vmatpush.bf16.msra.mxu3 %v1203_v4  ;;  %539 = vmatpush.bf16.msra.mxu0 %v1203_v4  ;;  %v1208_v58 = vld [vmem:[%s1711_s1 + $0x40] sm:$0xff]  ;;  %v914_v63 = vor.u32 %v1171_v56, %v911_v57  ;;  %v917_v0 = vld [vmem:[%s1713_s0 + $0x10] sm:$0xf]  ;;  %v906_v2 = vor.u32 %v1170_v59, %v903_v60  ;;  %v910_v3 = vor.u32 %v1173_v62, %v909_v61  ;;  %v937_v13 = vld [vmem:[%s1713_s0 + $0x38] sm:$0xf] }
  0x14   :  { %v1174_v1 = vld [vmem:[%s1713_s0 + $0x20] sm:$0xf0]  ;;  %v923_v9 = vld [vmem:[%s1713_s0 + $0x3c] sm:$0xf0]  ;;  %v929_v10 = vld [vmem:[%s1713_s0 + $0x30] sm:$0xf] }
  0x15   :  { %v918_v4 = vor.u32 %v1174_v1, %v917_v0  ;;  %v1178_v11 = vld [vmem:[%s1713_s0 + $0x40] sm:$0xf0]  ;;  %v1179_v14 = vld [vmem:[%s1713_s0 + $0x48] sm:$0xf0]  ;;  %v1188_v35 = vld [vmem:[%s1713_s0 + $0x90] sm:$0xf0] }
  0x16   :  { %1251 = vmatpush.bf16.msra.mxu1 %v1202_v5  ;;  %1252 = vmatpush.bf16.msra.mxu2 %v1202_v5  ;;  %v977_v37 = vld [vmem:[%s1713_s0 + $0x88] sm:$0xf]  ;;  %v1189_v38 = vld [vmem:[%s1713_s0 + $0x98] sm:$0xf0]  ;;  %v1195_v56 = vld [vmem:[%s1713_s0 + $0xcc] sm:$0xf] }
  0x17   :  { %1253 = vmatpush.bf16.msra.mxu3 %v1202_v5  ;;  %540 = vmatpush.bf16.msra.mxu0 %v1202_v5  ;;  %v1176_v5 = vld [vmem:[%s1713_s0 + $0x34] sm:$0xf]  ;;  %v1003_v57 = vld [vmem:[%s1713_s0 + $0xdc] sm:$0xf0]  ;;  %v1198_v59 = vld [vmem:[%s1713_s0 + $0xe0] sm:$0xf0] }
  0x18   :  { %v1017_v61 = vld [vmem:[%s1713_s0 + $0xd8] sm:$0xf]  ;;  %v1199_v62 = vld [vmem:[%s1713_s0 + $0xe8] sm:$0xf0] }
  0x19   :  { %v1018_v1 = vor.u32 %v1199_v62, %v1017_v61 }
  0x1a   :  { %1254 = vmatpush.bf16.msra.mxu1 %v1201_v6  ;;  %1255 = vmatpush.bf16.msra.mxu2 %v1201_v6 }
  0x1b   :  { %1256 = vmatpush.bf16.msra.mxu3 %v1201_v6  ;;  %541 = vmatpush.bf16.msra.mxu0 %v1201_v6  ;;  %v931_v6 = vld [vmem:[%s1713_s0 + $0x44] sm:$0xf0] }
  0x1c   :  { %v934_v12 = vor.u32 %v1176_v5, %v931_v6  ;;  %v230_v5 = vunpack.c.h.b16 %v1331_v7 }
  0x1e   :  { %1257 = vmatpush.bf16.msra.mxu1 %v1200_v8  ;;  %1258 = vmatpush.bf16.msra.mxu2 %v1200_v8 }
  0x1f   :  { %1259 = vmatpush.bf16.msra.mxu3 %v1200_v8  ;;  %542 = vmatpush.bf16.msra.mxu0 %v1200_v8  ;;  %v1175_v8 = vld [vmem:[%s1713_s0 + $0x2c] sm:$0xf] }
  0x20   :  { %v926_v15 = vor.u32 %v1175_v8, %v923_v9 }
  0x21   :  { %553 = vmatmul.bf16.vlgmr.msra.gmra.mxu1 %v942_v18  ;;  %563 = vmatmul.bf16.vlgmr.msra.gmra.mxu2 %v982_v19  ;;  %v1181_v18 = vld [vmem:[%s1713_s0 + $0x5c] sm:$0xf]  ;;  %v951_v19 = vld [vmem:[%s1713_s0 + $0x6c] sm:$0xf0] }
  0x22   :  { %621 = vmatpush.bf16.msrb.mxu2 %v1223_v17  ;;  %578 = vmatpush.bf16.msrb.mxu1 %v1215_v20  ;;  %v938_v17 = vor.u32 %v1179_v14, %v937_v13  ;;  %v1180_v20 = vld [vmem:[%s1713_s0 + $0x54] sm:$0xf] }
  0x23   :  { %664 = vmatpush.bf16.msrb.mxu3 %v1231_v16  ;;  %543 = vmatmul.bf16.vlgmr.msra.gmra.mxu0 %v902_v21  ;;  %v930_v16 = vor.u32 %v1178_v11, %v929_v10  ;;  %v943_v21 = vld [vmem:[%s1713_s0 + $0x64] sm:$0xf0]  ;;  %v265_v10 = vpack.c.b16 %v230_v5, %v230_v5 }
  0x24   :  { %573 = vmatmul.bf16.vlgmr.msra.gmra.mxu3 %v264_v22  ;;  %711 = vmatpush.bf16.msrb.mxu0 %v1235_v23  ;;  %v949_v22 = vld [vmem:[%s1713_s0 + $0x58] sm:$0xf]  ;;  %v1183_v23 = vld [vmem:[%s1713_s0 + $0x68] sm:$0xf0] }
  0x26   :  { %622 = vmatpush.bf16.msrb.mxu2 %v1222_v25  ;;  %579 = vmatpush.bf16.msrb.mxu1 %v1214_v26  ;;  %v957_v25 = vld [vmem:[%s1713_s0 + $0x60] sm:$0xf]  ;;  %v1184_v26 = vld [vmem:[%s1713_s0 + $0x70] sm:$0xf0] }
  0x27   :  { %665 = vmatpush.bf16.msrb.mxu3 %v1230_v24  ;;  %v954_v24 = vor.u32 %v1181_v18, %v951_v19 }
  0x28   :  { %712 = vmatpush.bf16.msrb.mxu0 %v1234_v27  ;;  %v946_v27 = vor.u32 %v1180_v20, %v943_v21 }
  0x2a   :  { %623 = vmatpush.bf16.msrb.mxu2 %v1221_v29  ;;  %580 = vmatpush.bf16.msrb.mxu1 %v1213_v30  ;;  %v958_v29 = vor.u32 %v1184_v26, %v957_v25  ;;  %v1186_v30 = vld [vmem:[%s1713_s0 + $0x84] sm:$0xf] }
  0x2b   :  { %666 = vmatpush.bf16.msrb.mxu3 %v1229_v28  ;;  %v950_v28 = vor.u32 %v1183_v23, %v949_v22 }
  0x2c   :  { %713 = vmatpush.bf16.msrb.mxu0 %v1233_v31  ;;  %v971_v31 = vld [vmem:[%s1713_s0 + $0x94] sm:$0xf0] }
  0x2d   :  { %v974_v36 = vor.u32 %v1186_v30, %v971_v31 }
  0x2e   :  { %624 = vmatpush.bf16.msrb.mxu2 %v1220_v33  ;;  %581 = vmatpush.bf16.msrb.mxu1 %v1212_v34  ;;  %v963_v33 = vld [vmem:[%s1713_s0 + $0x8c] sm:$0xf0]  ;;  %v969_v34 = vld [vmem:[%s1713_s0 + $0x80] sm:$0xf] }
  0x2f   :  { %667 = vmatpush.bf16.msrb.mxu3 %v1228_v32  ;;  %v1185_v32 = vld [vmem:[%s1713_s0 + $0x7c] sm:$0xf]  ;;  %v970_v40 = vor.u32 %v1188_v35, %v969_v34 }
  0x30   :  { %714 = vmatpush.bf16.msrb.mxu0 %v1232_v41  ;;  %v966_v39 = vor.u32 %v1185_v32, %v963_v33  ;;  %v978_v41 = vor.u32 %v1189_v38, %v977_v37 }
  0x31   :  { %558 = vmatmul.bf16.gmra.mxu1 %v962_v44  ;;  %568 = vmatmul.bf16.gmra.mxu2 %v1002_v45  ;;  %v1190_v44 = vld [vmem:[%s1713_s0 + $0xa4] sm:$0xf]  ;;  %v983_v45 = vld [vmem:[%s1713_s0 + $0xb4] sm:$0xf0] }
  0x32   :  { %625 = vmatpush.bf16.msrb.mxu2 %v1219_v43  ;;  %582 = vmatpush.bf16.msrb.mxu1 %v1211_v46  ;;  %v991_v43 = vld [vmem:[%s1713_s0 + $0xbc] sm:$0xf0]  ;;  %v989_v46 = vld [vmem:[%s1713_s0 + $0xa8] sm:$0xf] }
  0x33   :  { %668 = vmatpush.bf16.msrb.mxu3 %v1227_v42  ;;  %548 = vmatmul.bf16.gmra.mxu0 %v922_v47  ;;  %v1191_v42 = vld [vmem:[%s1713_s0 + $0xac] sm:$0xf]  ;;  %v1193_v47 = vld [vmem:[%s1713_s0 + $0xb8] sm:$0xf0] }
  0x36   :  { %626 = vmatpush.bf16.msrb.mxu2 %v1218_v49  ;;  %583 = vmatpush.bf16.msrb.mxu1 %v1210_v50  ;;  %v997_v49 = vld [vmem:[%s1713_s0 + $0xb0] sm:$0xf]  ;;  %v1194_v50 = vld [vmem:[%s1713_s0 + $0xc0] sm:$0xf0] }
  0x37   :  { %669 = vmatpush.bf16.msrb.mxu3 %v1226_v48  ;;  %v994_v48 = vor.u32 %v1191_v42, %v991_v43 }
  0x3a   :  { %627 = vmatpush.bf16.msrb.mxu2 %v1217_v52  ;;  %584 = vmatpush.bf16.msrb.mxu1 %v1209_v53  ;;  %v990_v52 = vor.u32 %v1193_v47, %v989_v46  ;;  %v998_v53 = vor.u32 %v1194_v50, %v997_v49 }
  0x3b   :  { %670 = vmatpush.bf16.msrb.mxu3 %v1225_v51  ;;  %v986_v51 = vor.u32 %v1190_v44, %v983_v45 }
  0x3e   :  { %628 = vmatpush.bf16.msrb.mxu2 %v1216_v55  ;;  %585 = vmatpush.bf16.msrb.mxu1 %v1208_v58  ;;  %v1011_v55 = vld [vmem:[%s1713_s0 + $0xe4] sm:$0xf0]  ;;  %v1009_v58 = vld [vmem:[%s1713_s0 + $0xd0] sm:$0xf] }
  0x3f   :  { %671 = vmatpush.bf16.msrb.mxu3 %v1224_v54  ;;  %v1196_v54 = vld [vmem:[%s1713_s0 + $0xd4] sm:$0xf]  ;;  %v1010_v0 = vor.u32 %v1198_v59, %v1009_v58 }
  0x40   :  { %v1014_v60 = vor.u32 %v1196_v54, %v1011_v55 }
  0x41   :  { %586 = vmatmul.bf16.vlgmr.msrb.gmra.mxu1 %v906_v2  ;;  %629 = vmatmul.bf16.vlgmr.msrb.gmra.mxu2 %v910_v3  ;;  %v52_v2 = vld [vmem:[%s1713_s0 + $0xf8] sm:$0x11] }
  0x42   :  { %672 = vmatmul.bf16.vlgmr.msrb.gmra.mxu3 %v914_v63  ;;  %v1006_v63 = vor.u32 %v1195_v56, %v1003_v57  ;;  %v232_v3 = vunpack.c.h.b16 %v52_v2  ;;  %v231_v6 = vunpack.c.l.b16 %v52_v2 }
  0x43   :  { %1163 = vmatmul.msk.bf16.vlgmr.msrb.gmra.mxu0 %vm513_vm0, %v918_v4  ;;  %v53_v4 = vld [vmem:[%s1713_s0 + $0x100] sm:$0x1] }
  0x44   :  { %v233_v8 = vunpack.c.l.b16 %v53_v4  ;;  %v267_v9 = vpack.c.b16 %v232_v3, %v232_v3  ;;  %v266_v11 = vpack.c.b16 %v231_v6, %v231_v6 }
  0x46   :  { %v268_v13 = vpack.c.b16 %v233_v8, %v233_v8 }
  0x51   :  { %591 = vmatmul.bf16.gmra.mxu1 %v926_v15  ;;  %634 = vmatmul.bf16.gmra.mxu2 %v930_v16  ;;  %v1620_v15 = vld [vmem:[%s1712_s2] ss:$0 sm:$0xff] }
  0x52   :  { %677 = vmatmul.bf16.gmra.mxu3 %v934_v12 }
  0x53   :  { %1164 = vmatmul.msk.bf16.gmra.mxu0 %vm513_vm0, %v938_v17 }
  0x61   :  { %596 = vmatmul.bf16.gmra.mxu1 %v946_v27  ;;  %639 = vmatmul.bf16.gmra.mxu2 %v950_v28 }
  0x62   :  { %682 = vmatmul.bf16.gmra.mxu3 %v954_v24 }
  0x63   :  { %1165 = vmatmul.msk.bf16.gmra.mxu0 %vm513_vm0, %v958_v29 }
  0x71   :  { %601 = vmatmul.bf16.gmra.mxu1 %v966_v39  ;;  %644 = vmatmul.bf16.gmra.mxu2 %v970_v40 }
  0x72   :  { %687 = vmatmul.bf16.gmra.mxu3 %v974_v36 }
  0x73   :  { %1166 = vmatmul.msk.bf16.gmra.mxu0 %vm513_vm0, %v978_v41 }
  0x81   :  { %606 = vmatmul.bf16.gmra.mxu1 %v986_v51  ;;  %649 = vmatmul.bf16.gmra.mxu2 %v990_v52 }
  0x82   :  { %692 = vmatmul.bf16.gmra.mxu3 %v994_v48 }
  0x83   :  { %1167 = vmatmul.msk.bf16.gmra.mxu0 %vm513_vm0, %v998_v53 }
  0x91   :  { %611 = vmatmul.bf16.gmra.mxu1 %v1006_v63  ;;  %654 = vmatmul.bf16.gmra.mxu2 %v1010_v0 }
  0x92   :  { %697 = vmatmul.bf16.gmra.mxu3 %v1014_v60 }
  0x93   :  { %1168 = vmatmul.msk.bf16.gmra.mxu0 %vm513_vm0, %v1018_v1 }
  0x9e   :  { %v1614_v12 = vpop.f32.mrf.mxu1 }
  0xa0   :  { %v544_v14 = vpop.f32.mrf.mxu0 }
  0xa1   :  { %616 = vmatmul.bf16.gmra.mxu1 %v265_v10  ;;  %659 = vmatmul.bf16.gmra.mxu2 %v266_v11  ;;  %v545_v34 = vadd.f32 %v1620_v15, %v544_v14 }
  0xa2   :  { %702 = vmatmul.bf16.gmra.mxu3 %v267_v9 }
  0xa3   :  { %1169 = vmatmul.msk.bf16.gmra.mxu0 %vm513_vm0, %v268_v13 }
  0xa4   :  { %v564_v7 = vpop.f32.mrf.mxu2 }
  0xa5   :  { %v1623_v16 = vadd.f32 %v1620_v15, %v564_v7 }
  0xa6   :  { %v1625_v17 = vpop.f32.mrf.mxu1 }
  0xa7   :  { %v574_v18 = vpop.f32.mrf.mxu3 }
  0xa8   :  { %v546_v19 = vpop.f32.mrf.mxu0  ;;  %v1628_v20 = vadd.f32 %v1620_v15, %v574_v18 }
  0xa9   :  { %v547_v42 = vadd.f32 %v1620_v15, %v546_v19 }
  0xac   :  { %v566_v21 = vpop.f32.mrf.mxu2 }
  0xad   :  { %v1631_v22 = vadd.f32 %v1620_v15, %v566_v21 }
  0xae   :  { %v1633_v23 = vpop.f32.mrf.mxu1 }
  0xaf   :  { %v576_v24 = vpop.f32.mrf.mxu3 }
  0xb0   :  { %v549_v25 = vpop.f32.mrf.mxu0 }
  0xb1   :  { %v550_v54 = vadd.f32 %v1620_v15, %v549_v25 }
  0xb4   :  { %v569_v26 = vpop.f32.mrf.mxu2 }
  0xb5   :  { %v1636_v27 = vadd.f32 %v1620_v15, %v569_v26 }
  0xb6   :  { %v1638_v28 = vpop.f32.mrf.mxu1 }
  0xb8   :  { %v551_v29 = vpop.f32.mrf.mxu0 }
  0xb9   :  { %v552_v4 = vadd.f32 %v1620_v15, %v551_v29 }
  0xbc   :  { %v571_v30 = vpop.f32.mrf.mxu2 }
  0xbd   :  { %v1641_v31 = vadd.f32 %v1620_v15, %v571_v30 }
  0xbe   :  { %v587_v32 = vpop.f32.mrf.mxu1 }
  0xbf   :  { %v588_v36 = vadd.f32 %v587_v32, %v545_v34 }
  0xc0   :  { %v716_v33 = vpop.f32.mrf.mxu0 }
  0xc4   :  { %v630_v37 = vpop.f32.mrf.mxu2 }
  0xc5   :  { %v673_v35 = vpop.f32.mrf.mxu3  ;;  %v631_v38 = vadd.f32 %v630_v37, %v588_v36 }
  0xc6   :  { %v589_v39 = vpop.f32.mrf.mxu1 }
  0xc7   :  { %v674_v40 = vadd.f32 %v673_v35, %v631_v38  ;;  %v590_v46 = vadd.f32 %v589_v39, %v547_v42 }
  0xc8   :  { %v718_v41 = vpop.f32.mrf.mxu0 }
  0xc9   :  { %v717_v43 = vadd.f32 %v716_v33, %v674_v40  ;;  %v555_v33 = vadd.f32 %v1620_v15, %v1614_v12 }
  0xcb   :  { %v763_v45 = vmul.f32 %v717_v43, %v717_v43  ;;  %v750_v14 = vmul.f32 0.5, %v717_v43 }
  0xcc   :  { %v632_v47 = vpop.f32.mrf.mxu2 }
  0xcd   :  { %v675_v44 = vpop.f32.mrf.mxu3  ;;  %v776_v48 = vmul.f32 %v763_v45, %v717_v43  ;;  %v633_v49 = vadd.f32 %v632_v47, %v590_v46 }
  0xce   :  { %v592_v50 = vpop.f32.mrf.mxu1 }
  0xcf   :  { %v789_v51 = vmul.f32 0.044715, %v776_v48  ;;  %v676_v52 = vadd.f32 %v675_v44, %v633_v49  ;;  %v593_v60 = vadd.f32 %v592_v50, %v550_v54 }
  0xd0   :  { %v721_v53 = vpop.f32.mrf.mxu0 }
  0xd1   :  { %v802_v55 = vadd.f32 %v789_v51, %v717_v43  ;;  %v719_v56 = vadd.f32 %v718_v41, %v676_v52  ;;  %v557_v51 = vadd.f32 %v1620_v15, %v1625_v17 }
  0xd3   :  { %v815_v58 = vmul.f32 0.7978846, %v802_v55  ;;  %v764_v59 = vmul.f32 %v719_v56, %v719_v56  ;;  %v751_v41 = vmul.f32 0.5, %v719_v56 }
  0xd4   :  { %v635_v61 = vpop.f32.mrf.mxu2 }
  0xd5   :  { %v678_v57 = vpop.f32.mrf.mxu3  ;;  %1261 = vtanh.f32 %v815_v58  ;;  %v777_v62 = vmul.f32 %v764_v59, %v719_v56  ;;  %v636_v63 = vadd.f32 %v635_v61, %v593_v60 }
  0xd6   :  { %v594_v0 = vpop.f32.mrf.mxu1 }
  0xd7   :  { %v790_v1 = vmul.f32 0.044715, %v777_v62  ;;  %v679_v2 = vadd.f32 %v678_v57, %v636_v63  ;;  %v595_v13 = vadd.f32 %v594_v0, %v552_v4 }
  0xd8   :  { %v723_v3 = vpop.f32.mrf.mxu0 }
  0xd9   :  { %v803_v5 = vadd.f32 %v790_v1, %v719_v56  ;;  %v722_v6 = vadd.f32 %v721_v53, %v679_v2 }
  0xdb   :  { %v1262_v9 = vpop.eup %1261  ;;  %v816_v10 = vmul.f32 0.7978846, %v803_v5  ;;  %v765_v11 = vmul.f32 %v722_v6, %v722_v6  ;;  %v752_v59 = vmul.f32 0.5, %v722_v6  ;;  %v560_v5 = vadd.f32 %v1620_v15, %v1633_v23 }
  0xdc   :  { %v841_v7 = vadd.f32 1.0, %v1262_v9  ;;  %v637_v18 = vpop.f32.mrf.mxu2 }
  0xdd   :  { %v680_v8 = vpop.f32.mrf.mxu3  ;;  %1263 = vtanh.f32 %v816_v10  ;;  %v778_v19 = vmul.f32 %v765_v11, %v722_v6  ;;  %v638_v21 = vadd.f32 %v637_v18, %v595_v13 }
  0xde   :  { %v854_v24 = vmul.f32 %v841_v7, %v750_v14  ;;  %v597_v25 = vpop.f32.mrf.mxu1 }
  0xdf   :  { %v791_v26 = vmul.f32 0.044715, %v778_v19  ;;  %v681_v30 = vadd.f32 %v680_v8, %v638_v21  ;;  %v598_v40 = vadd.f32 %v597_v25, %v555_v33  ;;  %v562_v33 = vadd.f32 %v1620_v15, %v1638_v28 }
  0xe0   :  { %v726_v32 = vpop.f32.mrf.mxu0  ;;  %v867_v29 = vpack.c.bf16 %v854_v24, %v854_v24 }
  0xe1   :  { %v804_v34 = vadd.f32 %v791_v26, %v722_v6  ;;  %v724_v35 = vadd.f32 %v723_v3, %v681_v30 }
  0xe2   :  { %881 = vst.msk [vmem:[%s1714_s3] sm:$0xf] %vm880_vm1, %v867_v29 }
  0xe3   :  { %v1264_v37 = vpop.eup %1263  ;;  %v817_v38 = vmul.f32 0.7978846, %v804_v34  ;;  %v766_v39 = vmul.f32 %v724_v35, %v724_v35  ;;  %v753_v7 = vmul.f32 0.5, %v724_v35 }
  0xe4   :  { %v842_v42 = vadd.f32 1.0, %v1264_v37  ;;  %v640_v43 = vpop.f32.mrf.mxu2 }
  0xe5   :  { %v683_v36 = vpop.f32.mrf.mxu3  ;;  %1265 = vtanh.f32 %v817_v38  ;;  %v779_v44 = vmul.f32 %v766_v39, %v724_v35  ;;  %v641_v45 = vadd.f32 %v640_v43, %v598_v40 }
  0xe6   :  { %v855_v46 = vmul.f32 %v842_v42, %v751_v41  ;;  %v599_v12 = vpop.f32.mrf.mxu1 }
  0xe7   :  { %v792_v47 = vmul.f32 0.044715, %v779_v44  ;;  %v684_v48 = vadd.f32 %v683_v36, %v641_v45  ;;  %v600_v58 = vadd.f32 %v599_v12, %v557_v51 }
  0xe8   :  { %v728_v49 = vpop.f32.mrf.mxu0  ;;  %v868_v50 = vpack.c.bf16 %v855_v46, %v855_v46 }
  0xe9   :  { %v805_v52 = vadd.f32 %v792_v47, %v724_v35  ;;  %v727_v53 = vadd.f32 %v726_v32, %v684_v48 }
  0xea   :  { %882 = vst.msk [vmem:[%s1714_s3 + $0x4] sm:$0xf] %vm880_vm1, %v868_v50 }
  0xeb   :  { %v1266_v55 = vpop.eup %1265  ;;  %v818_v56 = vmul.f32 0.7978846, %v805_v52  ;;  %v767_v57 = vmul.f32 %v727_v53, %v727_v53  ;;  %v754_v41 = vmul.f32 0.5, %v727_v53 }
  0xec   :  { %v843_v60 = vadd.f32 1.0, %v1266_v55  ;;  %v642_v61 = vpop.f32.mrf.mxu2 }
  0xed   :  { %v685_v54 = vpop.f32.mrf.mxu3  ;;  %1267 = vtanh.f32 %v818_v56  ;;  %v780_v62 = vmul.f32 %v767_v57, %v727_v53  ;;  %v643_v63 = vadd.f32 %v642_v61, %v600_v58 }
  0xee   :  { %v856_v0 = vmul.f32 %v843_v60, %v752_v59  ;;  %v602_v17 = vpop.f32.mrf.mxu1 }
  0xef   :  { %v793_v1 = vmul.f32 0.044715, %v780_v62  ;;  %v686_v2 = vadd.f32 %v685_v54, %v643_v63  ;;  %v603_v14 = vadd.f32 %v602_v17, %v560_v5 }
  0xf0   :  { %v731_v3 = vpop.f32.mrf.mxu0  ;;  %v869_v4 = vpack.c.bf16 %v856_v0, %v856_v0 }
  0xf1   :  { %v806_v8 = vadd.f32 %v793_v1, %v727_v53  ;;  %v729_v9 = vadd.f32 %v728_v49, %v686_v2 }
  0xf2   :  { %883 = vst.msk [vmem:[%s1714_s3 + $0x8] sm:$0xf] %vm880_vm1, %v869_v4 }
  0xf3   :  { %v1268_v10 = vpop.eup %1267  ;;  %v819_v11 = vmul.f32 0.7978846, %v806_v8  ;;  %v768_v13 = vmul.f32 %v729_v9, %v729_v9  ;;  %v755_v56 = vmul.f32 0.5, %v729_v9 }
  0xf4   :  { %v844_v18 = vadd.f32 1.0, %v1268_v10  ;;  %v645_v19 = vpop.f32.mrf.mxu2 }
  0xf5   :  { %v688_v6 = vpop.f32.mrf.mxu3  ;;  %1269 = vtanh.f32 %v819_v11  ;;  %v781_v21 = vmul.f32 %v768_v13, %v729_v9  ;;  %v646_v24 = vadd.f32 %v645_v19, %v603_v14 }
  0xf6   :  { %v857_v25 = vmul.f32 %v844_v18, %v753_v7  ;;  %v604_v23 = vpop.f32.mrf.mxu1 }
  0xf7   :  { %v794_v26 = vmul.f32 0.044715, %v781_v21  ;;  %v689_v30 = vadd.f32 %v688_v6, %v646_v24  ;;  %v605_v40 = vadd.f32 %v604_v23, %v562_v33 }
  0xf8   :  { %v733_v32 = vpop.f32.mrf.mxu0  ;;  %v870_v29 = vpack.c.bf16 %v857_v25, %v857_v25 }
  0xf9   :  { %v807_v34 = vadd.f32 %v794_v26, %v729_v9  ;;  %v732_v36 = vadd.f32 %v731_v3, %v689_v30 }
  0xfa   :  { %884 = vst.msk [vmem:[%s1714_s3 + $0xc] sm:$0xf] %vm880_vm1, %v870_v29 }
  0xfb   :  { %v1270_v37 = vpop.eup %1269  ;;  %v820_v38 = vmul.f32 0.7978846, %v807_v34  ;;  %v769_v39 = vmul.f32 %v732_v36, %v732_v36  ;;  %v756_v6 = vmul.f32 0.5, %v732_v36 }
  0xfc   :  { %v845_v42 = vadd.f32 1.0, %v1270_v37  ;;  %v647_v43 = vpop.f32.mrf.mxu2 }
  0xfd   :  { %v690_v35 = vpop.f32.mrf.mxu3  ;;  %1271 = vtanh.f32 %v820_v38  ;;  %v782_v44 = vmul.f32 %v769_v39, %v732_v36  ;;  %v648_v45 = vadd.f32 %v647_v43, %v605_v40 }
  0xfe   :  { %v858_v46 = vmul.f32 %v845_v42, %v754_v41  ;;  %v607_v15 = vpop.f32.mrf.mxu1 }
  0xff   :  { %v795_v28 = vmul.f32 0.044715, %v782_v44  ;;  %v691_v12 = vadd.f32 %v690_v35, %v648_v45  ;;  %v608_v55 = vadd.f32 %v607_v15, %v1623_v16 }
 0x100   :  { %v736_v47 = vpop.f32.mrf.mxu0  ;;  %v871_v48 = vpack.c.bf16 %v858_v46, %v858_v46 }
 0x101   :  { %v808_v49 = vadd.f32 %v795_v28, %v732_v36  ;;  %v734_v50 = vadd.f32 %v733_v32, %v691_v12 }
 0x102   :  { %885 = vst.msk [vmem:[%s1714_s3 + $0x10] sm:$0xf] %vm880_vm1, %v871_v48 }
 0x103   :  { %v1272_v52 = vpop.eup %1271  ;;  %v821_v53 = vmul.f32 0.7978846, %v808_v49  ;;  %v770_v54 = vmul.f32 %v734_v50, %v734_v50  ;;  %v757_v34 = vmul.f32 0.5, %v734_v50 }
 0x104   :  { %v846_v57 = vadd.f32 1.0, %v1272_v52  ;;  %v650_v58 = vpop.f32.mrf.mxu2 }
 0x105   :  { %v693_v51 = vpop.f32.mrf.mxu3  ;;  %1273 = vtanh.f32 %v821_v53  ;;  %v783_v59 = vmul.f32 %v770_v54, %v734_v50  ;;  %v651_v60 = vadd.f32 %v650_v58, %v608_v55 }
 0x106   :  { %v859_v61 = vmul.f32 %v846_v57, %v755_v56  ;;  %v609_v62 = vpop.f32.mrf.mxu1 }
 0x107   :  { %v796_v63 = vmul.f32 0.044715, %v783_v59  ;;  %v694_v0 = vadd.f32 %v693_v51, %v651_v60  ;;  %v610_v9 = vadd.f32 %v609_v62, %v1631_v22 }
 0x108   :  { %v738_v17 = vpop.f32.mrf.mxu0  ;;  %v872_v1 = vpack.c.bf16 %v859_v61, %v859_v61 }
 0x109   :  { %v809_v2 = vadd.f32 %v796_v63, %v734_v50  ;;  %v737_v3 = vadd.f32 %v736_v47, %v694_v0 }
 0x10a   :  { %886 = vst.msk [vmem:[%s1714_s3 + $0x14] sm:$0xf] %vm880_vm1, %v872_v1 }
 0x10b   :  { %v1274_v4 = vpop.eup %1273  ;;  %v822_v5 = vmul.f32 0.7978846, %v809_v2  ;;  %v771_v8 = vmul.f32 %v737_v3, %v737_v3  ;;  %v758_v48 = vmul.f32 0.5, %v737_v3 }
 0x10c   :  { %v847_v10 = vadd.f32 1.0, %v1274_v4  ;;  %v652_v11 = vpop.f32.mrf.mxu2 }
 0x10d   :  { %v695_v16 = vpop.f32.mrf.mxu3  ;;  %1275 = vtanh.f32 %v822_v5  ;;  %v784_v13 = vmul.f32 %v771_v8, %v737_v3  ;;  %v653_v14 = vadd.f32 %v652_v11, %v610_v9 }
 0x10e   :  { %v860_v7 = vmul.f32 %v847_v10, %v756_v6  ;;  %v612_v18 = vpop.f32.mrf.mxu1 }
 0x10f   :  { %v797_v19 = vmul.f32 0.044715, %v784_v13  ;;  %v696_v21 = vadd.f32 %v695_v16, %v653_v14  ;;  %v613_v33 = vadd.f32 %v612_v18, %v1636_v27 }
 0x110   :  { %v741_v24 = vpop.f32.mrf.mxu0  ;;  %v873_v25 = vpack.c.bf16 %v860_v7, %v860_v7 }
 0x111   :  { %v810_v23 = vadd.f32 %v797_v19, %v737_v3  ;;  %v739_v26 = vadd.f32 %v738_v17, %v696_v21 }
 0x112   :  { %887 = vst.msk [vmem:[%s1714_s3 + $0x18] sm:$0xf] %vm880_vm1, %v873_v25 }
 0x113   :  { %v1276_v30 = vpop.eup %1275  ;;  %v823_v32 = vmul.f32 0.7978846, %v810_v23  ;;  %v772_v29 = vmul.f32 %v739_v26, %v739_v26  ;;  %v759_v17 = vmul.f32 0.5, %v739_v26 }
 0x114   :  { %v848_v36 = vadd.f32 1.0, %v1276_v30  ;;  %v655_v35 = vpop.f32.mrf.mxu2 }
 0x115   :  { %v698_v22 = vpop.f32.mrf.mxu3  ;;  %1277 = vtanh.f32 %v823_v32  ;;  %v785_v37 = vmul.f32 %v772_v29, %v739_v26  ;;  %v656_v38 = vadd.f32 %v655_v35, %v613_v33 }
 0x116   :  { %v861_v39 = vmul.f32 %v848_v36, %v757_v34  ;;  %v614_v40 = vpop.f32.mrf.mxu1 }
 0x117   :  { %v798_v41 = vmul.f32 0.044715, %v785_v37  ;;  %v699_v42 = vadd.f32 %v698_v22, %v656_v38  ;;  %v615_v47 = vadd.f32 %v614_v40, %v1641_v31 }
 0x118   :  { %v743_v43 = vpop.f32.mrf.mxu0  ;;  %v874_v44 = vpack.c.bf16 %v861_v39, %v861_v39 }
 0x119   :  { %v811_v45 = vadd.f32 %v798_v41, %v739_v26  ;;  %v742_v46 = vadd.f32 %v741_v24, %v699_v42 }
 0x11a   :  { %888 = vst.msk [vmem:[%s1714_s3 + $0x1c] sm:$0xf] %vm880_vm1, %v874_v44 }
 0x11b   :  { %v1278_v15 = vpop.eup %1277  ;;  %v824_v28 = vmul.f32 0.7978846, %v811_v45  ;;  %v773_v12 = vmul.f32 %v742_v46, %v742_v46  ;;  %v760_v19 = vmul.f32 0.5, %v742_v46 }
 0x11c   :  { %v849_v49 = vadd.f32 1.0, %v1278_v15  ;;  %v657_v50 = vpop.f32.mrf.mxu2 }
 0x11d   :  { %v700_v27 = vpop.f32.mrf.mxu3  ;;  %1279 = vtanh.f32 %v824_v28  ;;  %v786_v51 = vmul.f32 %v773_v12, %v742_v46  ;;  %v658_v52 = vadd.f32 %v657_v50, %v615_v47 }
 0x11e   :  { %v862_v53 = vmul.f32 %v849_v49, %v758_v48  ;;  %v617_v54 = vpop.f32.mrf.mxu1 }
 0x11f   :  { %v799_v55 = vmul.f32 0.044715, %v786_v51  ;;  %v701_v56 = vadd.f32 %v700_v27, %v658_v52  ;;  %v618_v0 = vadd.f32 %v617_v54, %v1628_v20 }
 0x120   :  { %v746_v57 = vpop.f32.mrf.mxu0  ;;  %v875_v58 = vpack.c.bf16 %v862_v53, %v862_v53 }
 0x121   :  { %v812_v59 = vadd.f32 %v799_v55, %v742_v46  ;;  %v744_v60 = vadd.f32 %v743_v43, %v701_v56 }
 0x122   :  { %889 = vst.msk [vmem:[%s1714_s3 + $0x20] sm:$0xf] %vm880_vm1, %v875_v58 }
 0x123   :  { %v1280_v61 = vpop.eup %1279  ;;  %v825_v62 = vmul.f32 0.7978846, %v812_v59  ;;  %v774_v63 = vmul.f32 %v744_v60, %v744_v60  ;;  %v761_v33 = vmul.f32 0.5, %v744_v60 }
 0x124   :  { %v850_v1 = vadd.f32 1.0, %v1280_v61  ;;  %v660_v2 = vpop.f32.mrf.mxu2 }
 0x125   :  { %v703_v31 = vpop.f32.mrf.mxu3  ;;  %1281 = vtanh.f32 %v825_v62  ;;  %v787_v3 = vmul.f32 %v774_v63, %v744_v60  ;;  %v661_v16 = vadd.f32 %v660_v2, %v618_v0 }
 0x126   :  { %v863_v4 = vmul.f32 %v850_v1, %v759_v17  ;;  %v619_v5 = vpop.f32.mrf.mxu1 }
 0x127   :  { %v800_v8 = vmul.f32 0.044715, %v787_v3  ;;  %v704_v9 = vadd.f32 %v703_v31, %v661_v16 }
 0x128   :  { %v748_v6 = vpop.f32.mrf.mxu0  ;;  %v876_v10 = vpack.c.bf16 %v863_v4, %v863_v4 }
 0x129   :  { %v813_v11 = vadd.f32 %v800_v8, %v744_v60  ;;  %v747_v13 = vadd.f32 %v746_v57, %v704_v9 }
 0x12a   :  { %890 = vst.msk [vmem:[%s1714_s3 + $0x24] sm:$0xf] %vm880_vm1, %v876_v10 }
 0x12b   :  { %v1282_v14 = vpop.eup %1281  ;;  %v826_v7 = vmul.f32 0.7978846, %v813_v11  ;;  %v775_v18 = vmul.f32 %v747_v13, %v747_v13  ;;  %v762_v38 = vmul.f32 0.5, %v747_v13 }
 0x12c   :  { %v851_v21 = vadd.f32 1.0, %v1282_v14  ;;  %v662_v24 = vpop.f32.mrf.mxu2 }
 0x12d   :  { %v705_v20 = vpop.f32.mrf.mxu3  ;;  %1283 = vtanh.f32 %v826_v7  ;;  %v788_v25 = vmul.f32 %v775_v18, %v747_v13 }
 0x12e   :  { %v864_v23 = vmul.f32 %v851_v21, %v760_v19 }
 0x12f   :  { %v801_v26 = vmul.f32 0.044715, %v788_v25 }
 0x130   :  { %v877_v22 = vpack.c.bf16 %v864_v23, %v864_v23 }
 0x131   :  { %v814_v30 = vadd.f32 %v801_v26, %v747_v13 }
 0x132   :  { %891 = vst.msk [vmem:[%s1714_s3 + $0x28] sm:$0xf] %vm880_vm1, %v877_v22 }
 0x133   :  { %v1284_v32 = vpop.eup %1283  ;;  %v827_v29 = vmul.f32 0.7978846, %v814_v30 }
 0x134   :  { %v852_v34 = vadd.f32 1.0, %v1284_v32 }
 0x135   :  { %1285 = vtanh.f32 %v827_v29 }
 0x136   :  { %v865_v36 = vmul.f32 %v852_v34, %v761_v33 }
 0x138   :  { %v878_v35 = vpack.c.bf16 %v865_v36, %v865_v36 }
 0x13a   :  { %892 = vst.msk [vmem:[%s1714_s3 + $0x2c] sm:$0xf] %vm880_vm1, %v878_v35 }
 0x13b   :  { %v1286_v37 = vpop.eup %1285 }
 0x13c   :  { %v853_v39 = vadd.f32 1.0, %v1286_v37 }
 0x13e   :  { %v866_v40 = vmul.f32 %v853_v39, %v762_v38 }
 0x140   :  { %v879_v41 = vpack.c.bf16 %v866_v40, %v866_v40 }
 0x142   :  { %894 = vst.msk [vmem:[%s1714_s3 + $0x30] sm:$0x1] %vm893_vm2, %v879_v41 }

// kernel: conv_encoder_forward.10
= control target key start
LH: loop header
LB: loop body
LE: loop exit
PB: predicated region body
PF: predicated region fallthrough
CT: control target
= control target key end

     0   :  { %vm369_vm0 = vcmask 523264   ;;  %vm511_vm1 = vcmask 519168   ;;  %s972_s1 = inlined_call_operand.vmem [shape: bf16[576,64], index: 1, kind: input, shape index: {}]   ;;  %s973_s2 = inlined_call_operand.vmem [shape: f32[1,64], index: 2, kind: input, shape index: {}]   ;;  %s974_s0 = inlined_call_operand.vmem [shape: bf16[32,576], index: 0, kind: input, shape index: {}]   ;;  %s975_s3 = inlined_call_operand.vmem [shape: bf16[32,64], index: 3, kind: output, shape index: {}]  }
   0x1   :  { %v723_v0 = vld [vmem:[%s972_s1 + $0x38] sm:$0xff]  ;;  %v722_v4 = vld [vmem:[%s972_s1 + $0x30] sm:$0xff]  ;;  %v721_v8 = vld [vmem:[%s972_s1 + $0x28] sm:$0xff] }
   0x2   :  { %v731_v1 = vld [vmem:[%s972_s1 + $0x78] sm:$0xff]  ;;  %376 = vmatpush.bf16.msra.mxu0 %v723_v0  ;;  %v730_v5 = vld [vmem:[%s972_s1 + $0x70] sm:$0xff]  ;;  %v729_v9 = vld [vmem:[%s972_s1 + $0x68] sm:$0xff] }
   0x3   :  { %v739_v2 = vld [vmem:[%s972_s1 + $0xb8] sm:$0xff]  ;;  %395 = vmatpush.bf16.msra.mxu1 %v731_v1  ;;  %v738_v6 = vld [vmem:[%s972_s1 + $0xb0] sm:$0xff]  ;;  %v737_v10 = vld [vmem:[%s972_s1 + $0xa8] sm:$0xff] }
   0x4   :  { %v747_v3 = vld [vmem:[%s972_s1 + $0xf8] sm:$0xff]  ;;  %414 = vmatpush.bf16.msra.mxu2 %v739_v2  ;;  %v746_v7 = vld [vmem:[%s972_s1 + $0xf0] sm:$0xff]  ;;  %v745_v11 = vld [vmem:[%s972_s1 + $0xe8] sm:$0xff] }
   0x5   :  { %433 = vmatpush.bf16.msra.mxu3 %v747_v3  ;;  %v720_v12 = vld [vmem:[%s972_s1 + $0x20] sm:$0xff]  ;;  %v719_v16 = vld [vmem:[%s972_s1 + $0x18] sm:$0xff]  ;;  %v718_v20 = vld [vmem:[%s972_s1 + $0x10] sm:$0xff] }
   0x6   :  { %377 = vmatpush.bf16.msra.mxu0 %v722_v4  ;;  %v728_v13 = vld [vmem:[%s972_s1 + $0x60] sm:$0xff]  ;;  %v727_v17 = vld [vmem:[%s972_s1 + $0x58] sm:$0xff]  ;;  %v726_v21 = vld [vmem:[%s972_s1 + $0x50] sm:$0xff] }
   0x7   :  { %396 = vmatpush.bf16.msra.mxu1 %v730_v5  ;;  %v736_v14 = vld [vmem:[%s972_s1 + $0xa0] sm:$0xff]  ;;  %v735_v18 = vld [vmem:[%s972_s1 + $0x98] sm:$0xff]  ;;  %v734_v22 = vld [vmem:[%s972_s1 + $0x90] sm:$0xff] }
   0x8   :  { %415 = vmatpush.bf16.msra.mxu2 %v738_v6  ;;  %v744_v15 = vld [vmem:[%s972_s1 + $0xe0] sm:$0xff]  ;;  %v743_v19 = vld [vmem:[%s972_s1 + $0xd8] sm:$0xff]  ;;  %v742_v23 = vld [vmem:[%s972_s1 + $0xd0] sm:$0xff] }
   0x9   :  { %434 = vmatpush.bf16.msra.mxu3 %v746_v7  ;;  %v717_v24 = vld [vmem:[%s972_s1 + $0x8] sm:$0xff]  ;;  %v716_v28 = vld [vmem:[%s972_s1] sm:$0xff]  ;;  %v708_v33 = vld [vmem:[%s974_s0 + $0x10] sm:$0xf0] }
   0xa   :  { %378 = vmatpush.bf16.msra.mxu0 %v721_v8  ;;  %v725_v25 = vld [vmem:[%s972_s1 + $0x48] sm:$0xff]  ;;  %v724_v29 = vld [vmem:[%s972_s1 + $0x40] sm:$0xff]  ;;  %v524_v35 = vld [vmem:[%s974_s0 + $0x14] sm:$0xf0] }
   0xb   :  { %397 = vmatpush.bf16.msra.mxu1 %v729_v9  ;;  %v733_v26 = vld [vmem:[%s972_s1 + $0x88] sm:$0xff]  ;;  %v732_v30 = vld [vmem:[%s972_s1 + $0x80] sm:$0xff]  ;;  %v709_v37 = vld [vmem:[%s974_s0 + $0x18] sm:$0xf0] }
   0xc   :  { %416 = vmatpush.bf16.msra.mxu2 %v737_v10  ;;  %v741_v27 = vld [vmem:[%s972_s1 + $0xc8] sm:$0xff]  ;;  %v740_v31 = vld [vmem:[%s972_s1 + $0xc0] sm:$0xff]  ;;  %v751_v40 = vld [vmem:[%s972_s1 + $0x118] sm:$0xff] }
   0xd   :  { %435 = vmatpush.bf16.msra.mxu3 %v745_v11  ;;  %v522_v32 = vld [vmem:[%s974_s0] sm:$0xf]  ;;  %v706_v34 = vld [vmem:[%s974_s0 + $0x4] sm:$0xf]  ;;  %v530_v36 = vld [vmem:[%s974_s0 + $0x8] sm:$0xf] }
   0xe   :  { %379 = vmatpush.bf16.msra.mxu0 %v720_v12  ;;  %v707_v38 = vld [vmem:[%s974_s0 + $0xc] sm:$0xf]  ;;  %v532_v39 = vld [vmem:[%s974_s0 + $0x1c] sm:$0xf0]  ;;  %v523_v41 = vor.u32 %v708_v33, %v522_v32  ;;  %v527_v42 = vor.u32 %v706_v34, %v524_v35  ;;  %v531_v43 = vor.u32 %v709_v37, %v530_v36  ;;  %v750_v45 = vld [vmem:[%s972_s1 + $0x110] sm:$0xff] }
   0xf   :  { %398 = vmatpush.bf16.msra.mxu1 %v728_v13  ;;  %v535_v44 = vor.u32 %v707_v38, %v532_v39  ;;  %v749_v46 = vld [vmem:[%s972_s1 + $0x108] sm:$0xff]  ;;  %v748_v47 = vld [vmem:[%s972_s1 + $0x100] sm:$0xff]  ;;  %v713_v49 = vld [vmem:[%s974_s0 + $0x38] sm:$0xf0] }
  0x10   :  { %417 = vmatpush.bf16.msra.mxu2 %v736_v14  ;;  %v542_v48 = vld [vmem:[%s974_s0 + $0x28] sm:$0xf]  ;;  %v711_v50 = vld [vmem:[%s974_s0 + $0x2c] sm:$0xf]  ;;  %v544_v51 = vld [vmem:[%s974_s0 + $0x3c] sm:$0xf0] }
  0x11   :  { %436 = vmatpush.bf16.msra.mxu3 %v744_v15  ;;  %v550_v52 = vld [vmem:[%s974_s0 + $0x30] sm:$0xf]  ;;  %v714_v53 = vld [vmem:[%s974_s0 + $0x40] sm:$0xf0]  ;;  %v712_v54 = vld [vmem:[%s974_s0 + $0x34] sm:$0xf]  ;;  %v543_v56 = vor.u32 %v713_v49, %v542_v48  ;;  %v547_v57 = vor.u32 %v711_v50, %v544_v51 }
  0x12   :  { %380 = vmatpush.bf16.msra.mxu0 %v719_v16  ;;  %v552_v55 = vld [vmem:[%s974_s0 + $0x44] sm:$0xf0]  ;;  %v551_v58 = vor.u32 %v714_v53, %v550_v52  ;;  %v538_v60 = vld [vmem:[%s974_s0 + $0x10] sm:$0xf]  ;;  %v710_v61 = vld [vmem:[%s974_s0 + $0x20] sm:$0xf0] }
  0x13   :  { %399 = vmatpush.bf16.msra.mxu1 %v727_v17  ;;  %v555_v59 = vor.u32 %v712_v54, %v552_v55  ;;  %v558_v62 = vld [vmem:[%s974_s0 + $0x38] sm:$0xf]  ;;  %v715_v63 = vld [vmem:[%s974_s0 + $0x48] sm:$0xf0]  ;;  %v539_v0 = vor.u32 %v710_v61, %v538_v60  ;;  %v756_v11 = vld [vmem:[%s973_s2] ss:$0 sm:$0xff] }
  0x14   :  { %418 = vmatpush.bf16.msra.mxu2 %v735_v18  ;;  %v559_v1 = vor.u32 %v715_v63, %v558_v62 }
  0x15   :  { %437 = vmatpush.bf16.msra.mxu3 %v743_v19 }
  0x16   :  { %381 = vmatpush.bf16.msra.mxu0 %v718_v20 }
  0x17   :  { %400 = vmatpush.bf16.msra.mxu1 %v726_v21 }
  0x18   :  { %419 = vmatpush.bf16.msra.mxu2 %v734_v22 }
  0x19   :  { %438 = vmatpush.bf16.msra.mxu3 %v742_v23 }
  0x1a   :  { %382 = vmatpush.bf16.msra.mxu0 %v717_v24 }
  0x1b   :  { %401 = vmatpush.bf16.msra.mxu1 %v725_v25 }
  0x1c   :  { %420 = vmatpush.bf16.msra.mxu2 %v733_v26 }
  0x1d   :  { %439 = vmatpush.bf16.msra.mxu3 %v741_v27 }
  0x1e   :  { %383 = vmatpush.bf16.msra.mxu0 %v716_v28 }
  0x1f   :  { %402 = vmatpush.bf16.msra.mxu1 %v724_v29 }
  0x20   :  { %421 = vmatpush.bf16.msra.mxu2 %v732_v30 }
  0x21   :  { %440 = vmatpush.bf16.msra.mxu3 %v740_v31  ;;  %384 = vmatmul.bf16.vlgmr.msra.gmra.mxu0 %v523_v41 }
  0x22   :  { %456 = vmatpush.bf16.msrb.mxu0 %v751_v40  ;;  %403 = vmatmul.bf16.vlgmr.msra.gmra.mxu1 %v527_v42 }
  0x23   :  { %752 = vmatpush.bf16.msrb.mxu1 %v751_v40  ;;  %422 = vmatmul.bf16.vlgmr.msra.gmra.mxu2 %v531_v43 }
  0x24   :  { %441 = vmatmul.bf16.vlgmr.msra.gmra.mxu3 %v535_v44 }
  0x26   :  { %457 = vmatpush.bf16.msrb.mxu0 %v750_v45 }
  0x27   :  { %753 = vmatpush.bf16.msrb.mxu1 %v750_v45 }
  0x2a   :  { %458 = vmatpush.bf16.msrb.mxu0 %v749_v46 }
  0x2b   :  { %754 = vmatpush.bf16.msrb.mxu1 %v749_v46 }
  0x2e   :  { %459 = vmatpush.bf16.msrb.mxu0 %v748_v47 }
  0x2f   :  { %755 = vmatpush.bf16.msrb.mxu1 %v748_v47 }
  0x31   :  { %389 = vmatmul.bf16.gmra.mxu0 %v543_v56 }
  0x32   :  { %408 = vmatmul.bf16.gmra.mxu1 %v547_v57 }
  0x33   :  { %427 = vmatmul.bf16.gmra.mxu2 %v551_v58 }
  0x34   :  { %446 = vmatmul.bf16.gmra.mxu3 %v555_v59 }
  0x41   :  { %704 = vmatmul.msk.bf16.vlgmr.msrb.gmra.mxu0 %vm369_vm0, %v539_v0 }
  0x42   :  { %705 = vmatmul.msk.bf16.vlgmr.msrb.gmra.mxu1 %vm369_vm0, %v559_v1 }
  0x9e   :  { %v385_v2 = vpop.f32.mrf.mxu0 }
  0x9f   :  { %v404_v3 = vpop.f32.mrf.mxu1  ;;  %v386_v13 = vadd.f32 %v756_v11, %v385_v2 }
  0xa1   :  { %v405_v18 = vadd.f32 %v404_v3, %v386_v13 }
  0xa6   :  { %v423_v4 = vpop.f32.mrf.mxu2  ;;  %v387_v6 = vpop.f32.mrf.mxu0 }
  0xa7   :  { %v442_v5 = vpop.f32.mrf.mxu3  ;;  %v406_v7 = vpop.f32.mrf.mxu1  ;;  %v424_v20 = vadd.f32 %v423_v4, %v405_v18  ;;  %v388_v23 = vadd.f32 %v756_v11, %v387_v6 }
  0xa9   :  { %v443_v25 = vadd.f32 %v442_v5, %v424_v20  ;;  %v407_v30 = vadd.f32 %v406_v7, %v388_v23 }
  0xae   :  { %v425_v8 = vpop.f32.mrf.mxu2  ;;  %v390_v9 = vpop.f32.mrf.mxu0 }
  0xaf   :  { %v409_v10 = vpop.f32.mrf.mxu1  ;;  %v444_v12 = vpop.f32.mrf.mxu3  ;;  %v391_v14 = vadd.f32 %v756_v11, %v390_v9  ;;  %v426_v34 = vadd.f32 %v425_v8, %v407_v30 }
  0xb1   :  { %v410_v19 = vadd.f32 %v409_v10, %v391_v14  ;;  %v445_v41 = vadd.f32 %v444_v12, %v426_v34 }
  0xb6   :  { %v428_v15 = vpop.f32.mrf.mxu2  ;;  %v392_v16 = vpop.f32.mrf.mxu0 }
  0xb7   :  { %v411_v17 = vpop.f32.mrf.mxu1  ;;  %v429_v21 = vadd.f32 %v428_v15, %v410_v19  ;;  %v447_v22 = vpop.f32.mrf.mxu3  ;;  %v393_v24 = vadd.f32 %v756_v11, %v392_v16 }
  0xb9   :  { %v448_v26 = vadd.f32 %v447_v22, %v429_v21  ;;  %v412_v31 = vadd.f32 %v411_v17, %v393_v24 }
  0xbe   :  { %v430_v27 = vpop.f32.mrf.mxu2  ;;  %v461_v28 = vpop.f32.mrf.mxu0 }
  0xbf   :  { %v466_v29 = vpop.f32.mrf.mxu1  ;;  %v462_v32 = vadd.f32 %v461_v28, %v443_v25  ;;  %v431_v35 = vadd.f32 %v430_v27, %v412_v31  ;;  %v449_v40 = vpop.f32.mrf.mxu3 }
  0xc0   :  { %v467_v33 = vadd.f32 %v466_v29, %v448_v26 }
  0xc1   :  { %v475_v36 = vmul.f32 %v462_v32, %v462_v32  ;;  %v450_v42 = vadd.f32 %v449_v40, %v431_v35  ;;  %v471_v0 = vmul.f32 0.5, %v462_v32 }
  0xc2   :  { %v477_v37 = vmul.f32 %v467_v33, %v467_v33  ;;  %v473_v3 = vmul.f32 0.5, %v467_v33 }
  0xc3   :  { %v479_v38 = vmul.f32 %v475_v36, %v462_v32 }
  0xc4   :  { %v481_v39 = vmul.f32 %v477_v37, %v467_v33 }
  0xc5   :  { %v483_v43 = vmul.f32 0.044715, %v479_v38 }
  0xc6   :  { %v485_v44 = vmul.f32 0.044715, %v481_v39  ;;  %v463_v45 = vpop.f32.mrf.mxu0 }
  0xc7   :  { %v468_v46 = vpop.f32.mrf.mxu1  ;;  %v487_v47 = vadd.f32 %v483_v43, %v462_v32  ;;  %v464_v49 = vadd.f32 %v463_v45, %v445_v41 }
  0xc8   :  { %v489_v48 = vadd.f32 %v485_v44, %v467_v33  ;;  %v469_v50 = vadd.f32 %v468_v46, %v450_v42 }
  0xc9   :  { %v491_v51 = vmul.f32 0.7978846, %v487_v47  ;;  %v476_v53 = vmul.f32 %v464_v49, %v464_v49  ;;  %v472_v11 = vmul.f32 0.5, %v464_v49 }
  0xca   :  { %v493_v52 = vmul.f32 0.7978846, %v489_v48  ;;  %v478_v54 = vmul.f32 %v469_v50, %v469_v50  ;;  %v474_v13 = vmul.f32 0.5, %v469_v50 }
  0xcb   :  { %757 = vtanh.f32 %v491_v51  ;;  %v480_v55 = vmul.f32 %v476_v53, %v464_v49 }
  0xcc   :  { %759 = vtanh.f32 %v493_v52  ;;  %v482_v56 = vmul.f32 %v478_v54, %v469_v50 }
  0xcd   :  { %v484_v57 = vmul.f32 0.044715, %v480_v55 }
  0xce   :  { %v486_v58 = vmul.f32 0.044715, %v482_v56 }
  0xcf   :  { %v488_v59 = vadd.f32 %v484_v57, %v464_v49 }
  0xd0   :  { %v490_v60 = vadd.f32 %v486_v58, %v469_v50 }
  0xd1   :  { %v758_v61 = vpop.eup %757  ;;  %v492_v62 = vmul.f32 0.7978846, %v488_v59 }
  0xd2   :  { %v760_v63 = vpop.eup %759  ;;  %v499_v1 = vadd.f32 1.0, %v758_v61  ;;  %v494_v2 = vmul.f32 0.7978846, %v490_v60 }
  0xd3   :  { %v501_v4 = vadd.f32 1.0, %v760_v63  ;;  %761 = vtanh.f32 %v492_v62 }
  0xd4   :  { %v503_v5 = vmul.f32 %v499_v1, %v471_v0  ;;  %763 = vtanh.f32 %v494_v2 }
  0xd5   :  { %v505_v6 = vmul.f32 %v501_v4, %v473_v3 }
  0xd6   :  { %v507_v7 = vpack.c.bf16 %v503_v5, %v503_v5 }
  0xd7   :  { %v509_v8 = vpack.c.bf16 %v505_v6, %v505_v6 }
  0xd8   :  { %512 = vst.msk [vmem:[%s975_s3] sm:$0xf] %vm511_vm1, %v507_v7 }
  0xd9   :  { %v762_v9 = vpop.eup %761  ;;  %514 = vst.msk [vmem:[%s975_s3 + $0x8] sm:$0xf] %vm511_vm1, %v509_v8 }
  0xda   :  { %v764_v10 = vpop.eup %763  ;;  %v500_v12 = vadd.f32 1.0, %v762_v9 }
  0xdb   :  { %v502_v14 = vadd.f32 1.0, %v764_v10 }
  0xdc   :  { %v504_v15 = vmul.f32 %v500_v12, %v472_v11 }
  0xdd   :  { %v506_v16 = vmul.f32 %v502_v14, %v474_v13 }
  0xde   :  { %v508_v17 = vpack.c.bf16 %v504_v15, %v504_v15 }
  0xdf   :  { %v510_v18 = vpack.c.bf16 %v506_v16, %v506_v16 }
  0xe0   :  { %513 = vst.msk [vmem:[%s975_s3 + $0x4] sm:$0xf] %vm511_vm1, %v508_v17 }
  0xe1   :  { %515 = vst.msk [vmem:[%s975_s3 + $0xc] sm:$0xf] %vm511_vm1, %v510_v18 }

// kernel: conv_encoder_forward.11
= control target key start
LH: loop header
LB: loop body
LE: loop exit
PB: predicated region body
PF: predicated region fallthrough
CT: control target
= control target key end

     0   :  { %s1242_s0 = inlined_call_operand.vmem [shape: bf16[2,1024], index: 0, kind: input, shape index: {}]   ;;  %s1243_s1 = inlined_call_operand.vmem [shape: bf16[1024,20], index: 1, kind: input, shape index: {}]   ;;  %s1244_s2 = inlined_call_operand.vmem [shape: f32[1,20], index: 2, kind: input, shape index: {}]   ;;  %s1245_s3 = inlined_call_operand.hbm [shape: f32[2,20], index: 3, kind: output, shape index: {}]  }
   0x1   :  { %v935_v0 = vld [vmem:[%s1243_s1 + $0x38] sm:$0xff]  ;;  %v934_v4 = vld [vmem:[%s1243_s1 + $0x30] sm:$0xff]  ;;  %v933_v8 = vld [vmem:[%s1243_s1 + $0x28] sm:$0xff] }
   0x2   :  { %v943_v1 = vld [vmem:[%s1243_s1 + $0x78] sm:$0xff]  ;;  %550 = vmatpush.bf16.msra.mxu0 %v935_v0  ;;  %v942_v5 = vld [vmem:[%s1243_s1 + $0x70] sm:$0xff]  ;;  %v941_v9 = vld [vmem:[%s1243_s1 + $0x68] sm:$0xff] }
   0x3   :  { %v951_v2 = vld [vmem:[%s1243_s1 + $0xb8] sm:$0xff]  ;;  %563 = vmatpush.bf16.msra.mxu1 %v943_v1  ;;  %v950_v6 = vld [vmem:[%s1243_s1 + $0xb0] sm:$0xff]  ;;  %v949_v10 = vld [vmem:[%s1243_s1 + $0xa8] sm:$0xff] }
   0x4   :  { %v959_v3 = vld [vmem:[%s1243_s1 + $0xf8] sm:$0xff]  ;;  %576 = vmatpush.bf16.msra.mxu2 %v951_v2  ;;  %v958_v7 = vld [vmem:[%s1243_s1 + $0xf0] sm:$0xff]  ;;  %v957_v11 = vld [vmem:[%s1243_s1 + $0xe8] sm:$0xff] }
   0x5   :  { %589 = vmatpush.bf16.msra.mxu3 %v959_v3  ;;  %v932_v12 = vld [vmem:[%s1243_s1 + $0x20] sm:$0xff]  ;;  %v931_v17 = vld [vmem:[%s1243_s1 + $0x18] sm:$0xff]  ;;  %v930_v21 = vld [vmem:[%s1243_s1 + $0x10] sm:$0xff] }
   0x6   :  { %551 = vmatpush.bf16.msra.mxu0 %v934_v4  ;;  %v940_v13 = vld [vmem:[%s1243_s1 + $0x60] sm:$0xff]  ;;  %v939_v18 = vld [vmem:[%s1243_s1 + $0x58] sm:$0xff]  ;;  %v938_v22 = vld [vmem:[%s1243_s1 + $0x50] sm:$0xff] }
   0x7   :  { %564 = vmatpush.bf16.msra.mxu1 %v942_v5  ;;  %v948_v14 = vld [vmem:[%s1243_s1 + $0xa0] sm:$0xff]  ;;  %v947_v19 = vld [vmem:[%s1243_s1 + $0x98] sm:$0xff] }
   0x8   :  { %577 = vmatpush.bf16.msra.mxu2 %v950_v6  ;;  %v956_v15 = vld [vmem:[%s1243_s1 + $0xe0] sm:$0xff]  ;;  %v955_v20 = vld [vmem:[%s1243_s1 + $0xd8] sm:$0xff] }
   0x9   :  { %590 = vmatpush.bf16.msra.mxu3 %v958_v7  ;;  %v15_v16 = vld [vmem:[%s1242_s0] sm:$0xff] }
   0xa   :  { %552 = vmatpush.bf16.msra.mxu0 %v933_v8  ;;  %149 = vst [vmem:[#allocation1] ss:$9 sm:$0xff] %v15_v16 }
   0xb   :  { %565 = vmatpush.bf16.msra.mxu1 %v941_v9 }
   0xc   :  { %578 = vmatpush.bf16.msra.mxu2 %v949_v10 }
   0xd   :  { %591 = vmatpush.bf16.msra.mxu3 %v957_v11 }
   0xe   :  { %553 = vmatpush.bf16.msra.mxu0 %v932_v12 }
   0xf   :  { %566 = vmatpush.bf16.msra.mxu1 %v940_v13 }
  0x10   :  { %579 = vmatpush.bf16.msra.mxu2 %v948_v14 }
  0x11   :  { %592 = vmatpush.bf16.msra.mxu3 %v956_v15 }
  0x12   :  { %554 = vmatpush.bf16.msra.mxu0 %v931_v17 }
  0x13   :  { %567 = vmatpush.bf16.msra.mxu1 %v939_v18 }
  0x14   :  { %8 = vsyncpa [#allocation3], 0  ;;  %580 = vmatpush.bf16.msra.mxu2 %v947_v19  ;;  %v946_v23 = vld [vmem:[%s1243_s1 + $0x90] sm:$0xff]  ;;  %v929_v25 = vld [vmem:[%s1243_s1 + $0x8] sm:$0xff]  ;;  %s1020_s4 = smov [#allocation2]   ;;  %s663_s8 = sshll.u32 %s1245_s3, 4  ;;  %s664_s8 = int_to_ptr.hbm [resolvable:$true] %s663_s8 }
  0x15   :  { %593 = vmatpush.bf16.msra.mxu3 %v955_v20  ;;  %v954_v24 = vld [vmem:[%s1243_s1 + $0xd0] sm:$0xff]  ;;  %v937_v26 = vld [vmem:[%s1243_s1 + $0x48] sm:$0xff]  ;;  %v928_v29 = vld [vmem:[%s1243_s1] sm:$0xff]  ;;  %s661_s5 = sshll.u32 %s1020_s4, 4  ;;  %vm654_vm0 = vcmask 156672   ;;  %s662_s5 = int_to_ptr.vmem [resolvable:$true] %s661_s5 }
  0x16   :  { %555 = vmatpush.bf16.msra.mxu0 %v930_v21  ;;  %v945_v27 = vld [vmem:[%s1243_s1 + $0x88] sm:$0xff]  ;;  %v936_v30 = vld [vmem:[%s1243_s1 + $0x40] sm:$0xff]  ;;  %v967_v33 = vld [vmem:[%s1243_s1 + $0x138] sm:$0xff] }
  0x17   :  { %568 = vmatpush.bf16.msra.mxu1 %v938_v22  ;;  %v953_v28 = vld [vmem:[%s1243_s1 + $0xc8] sm:$0xff]  ;;  %v944_v31 = vld [vmem:[%s1243_s1 + $0x80] sm:$0xff]  ;;  %v975_v34 = vld [vmem:[%s1243_s1 + $0x178] sm:$0xff] }
  0x18   :  { %581 = vmatpush.bf16.msra.mxu2 %v946_v23  ;;  %v952_v32 = vld [vmem:[%s1243_s1 + $0xc0] sm:$0xff]  ;;  %v983_v35 = vld [vmem:[%s1243_s1 + $0x1b8] sm:$0xff]  ;;  %v966_v37 = vld [vmem:[%s1243_s1 + $0x130] sm:$0xff] }
  0x19   :  { %594 = vmatpush.bf16.msra.mxu3 %v954_v24  ;;  %v991_v36 = vld [vmem:[%s1243_s1 + $0x1f8] sm:$0xff]  ;;  %v974_v40 = vld [vmem:[%s1243_s1 + $0x170] sm:$0xff]  ;;  %v150_v41 = vld [vmem:[#allocation1] sm:$0xff] }
  0x1a   :  { %556 = vmatpush.bf16.msra.mxu0 %v929_v25  ;;  %v152_v38 = vld [vmem:[#allocation1 + $0x12] sm:$0xff]  ;;  %v153_v39 = vld [vmem:[#allocation1 + $0x1b] sm:$0xff]  ;;  %v151_v42 = vld [vmem:[#allocation1 + $0x9] sm:$0xff] }
  0x1b   :  { %569 = vmatpush.bf16.msra.mxu1 %v937_v26  ;;  %v982_v43 = vld [vmem:[%s1243_s1 + $0x1b0] sm:$0xff]  ;;  %v965_v45 = vld [vmem:[%s1243_s1 + $0x128] sm:$0xff]  ;;  %v964_v49 = vld [vmem:[%s1243_s1 + $0x120] sm:$0xff] }
  0x1c   :  { %582 = vmatpush.bf16.msra.mxu2 %v945_v27  ;;  %v990_v44 = vld [vmem:[%s1243_s1 + $0x1f0] sm:$0xff]  ;;  %v973_v46 = vld [vmem:[%s1243_s1 + $0x168] sm:$0xff]  ;;  %v972_v50 = vld [vmem:[%s1243_s1 + $0x160] sm:$0xff] }
  0x1d   :  { %595 = vmatpush.bf16.msra.mxu3 %v953_v28  ;;  %v981_v47 = vld [vmem:[%s1243_s1 + $0x1a8] sm:$0xff]  ;;  %v980_v51 = vld [vmem:[%s1243_s1 + $0x1a0] sm:$0xff]  ;;  %v963_v53 = vld [vmem:[%s1243_s1 + $0x118] sm:$0xff] }
  0x1e   :  { %557 = vmatpush.bf16.msra.mxu0 %v928_v29  ;;  %v989_v48 = vld [vmem:[%s1243_s1 + $0x1e8] sm:$0xff]  ;;  %v988_v52 = vld [vmem:[%s1243_s1 + $0x1e0] sm:$0xff]  ;;  %v971_v54 = vld [vmem:[%s1243_s1 + $0x158] sm:$0xff] }
  0x1f   :  { %570 = vmatpush.bf16.msra.mxu1 %v936_v30  ;;  %v979_v55 = vld [vmem:[%s1243_s1 + $0x198] sm:$0xff]  ;;  %v962_v57 = vld [vmem:[%s1243_s1 + $0x110] sm:$0xff]  ;;  %v961_v61 = vld [vmem:[%s1243_s1 + $0x108] sm:$0xff] }
  0x20   :  { %583 = vmatpush.bf16.msra.mxu2 %v944_v31  ;;  %v987_v56 = vld [vmem:[%s1243_s1 + $0x1d8] sm:$0xff]  ;;  %v970_v58 = vld [vmem:[%s1243_s1 + $0x150] sm:$0xff]  ;;  %v969_v62 = vld [vmem:[%s1243_s1 + $0x148] sm:$0xff] }
  0x21   :  { %596 = vmatpush.bf16.msra.mxu3 %v952_v32  ;;  %558 = vmatmul.bf16.vlgmr.msra.gmra.mxu0 %v150_v41  ;;  %v978_v59 = vld [vmem:[%s1243_s1 + $0x190] sm:$0xff]  ;;  %v977_v63 = vld [vmem:[%s1243_s1 + $0x188] sm:$0xff]  ;;  %v960_v1 = vld [vmem:[%s1243_s1 + $0x100] sm:$0xff] }
  0x22   :  { %602 = vmatpush.bf16.msrb.mxu0 %v967_v33  ;;  %571 = vmatmul.bf16.vlgmr.msra.gmra.mxu1 %v151_v42  ;;  %v986_v60 = vld [vmem:[%s1243_s1 + $0x1d0] sm:$0xff]  ;;  %v985_v0 = vld [vmem:[%s1243_s1 + $0x1c8] sm:$0xff]  ;;  %v968_v2 = vld [vmem:[%s1243_s1 + $0x140] sm:$0xff] }
  0x23   :  { %615 = vmatpush.bf16.msrb.mxu1 %v975_v34  ;;  %584 = vmatmul.bf16.vlgmr.msra.gmra.mxu2 %v152_v38  ;;  %v976_v3 = vld [vmem:[%s1243_s1 + $0x180] sm:$0xff]  ;;  %v155_v6 = vld [vmem:[#allocation1 + $0x2d] sm:$0xff]  ;;  %v156_v7 = vld [vmem:[#allocation1 + $0x36] sm:$0xff] }
  0x24   :  { %628 = vmatpush.bf16.msrb.mxu2 %v983_v35  ;;  %597 = vmatmul.bf16.vlgmr.msra.gmra.mxu3 %v153_v39  ;;  %v984_v4 = vld [vmem:[%s1243_s1 + $0x1c0] sm:$0xff] }
  0x25   :  { %641 = vmatpush.bf16.msrb.mxu3 %v991_v36  ;;  %v154_v5 = vld [vmem:[#allocation1 + $0x24] sm:$0xff]  ;;  %v993_v15 = vld [vmem:[%s1244_s2] ss:$0 sm:$0xff] }
  0x26   :  { %603 = vmatpush.bf16.msrb.mxu0 %v966_v37  ;;  %v157_v8 = vld [vmem:[#allocation1 + $0x3f] sm:$0xff] }
  0x27   :  { %616 = vmatpush.bf16.msrb.mxu1 %v974_v40 }
  0x28   :  { %629 = vmatpush.bf16.msrb.mxu2 %v982_v43 }
  0x29   :  { %642 = vmatpush.bf16.msrb.mxu3 %v990_v44 }
  0x2a   :  { %604 = vmatpush.bf16.msrb.mxu0 %v965_v45 }
  0x2b   :  { %617 = vmatpush.bf16.msrb.mxu1 %v973_v46 }
  0x2c   :  { %630 = vmatpush.bf16.msrb.mxu2 %v981_v47 }
  0x2d   :  { %643 = vmatpush.bf16.msrb.mxu3 %v989_v48 }
  0x2e   :  { %605 = vmatpush.bf16.msrb.mxu0 %v964_v49 }
  0x2f   :  { %618 = vmatpush.bf16.msrb.mxu1 %v972_v50 }
  0x30   :  { %631 = vmatpush.bf16.msrb.mxu2 %v980_v51 }
  0x31   :  { %644 = vmatpush.bf16.msrb.mxu3 %v988_v52 }
  0x32   :  { %606 = vmatpush.bf16.msrb.mxu0 %v963_v53 }
  0x33   :  { %619 = vmatpush.bf16.msrb.mxu1 %v971_v54 }
  0x34   :  { %632 = vmatpush.bf16.msrb.mxu2 %v979_v55 }
  0x35   :  { %645 = vmatpush.bf16.msrb.mxu3 %v987_v56 }
  0x36   :  { %607 = vmatpush.bf16.msrb.mxu0 %v962_v57 }
  0x37   :  { %620 = vmatpush.bf16.msrb.mxu1 %v970_v58 }
  0x38   :  { %633 = vmatpush.bf16.msrb.mxu2 %v978_v59 }
  0x39   :  { %646 = vmatpush.bf16.msrb.mxu3 %v986_v60 }
  0x3a   :  { %608 = vmatpush.bf16.msrb.mxu0 %v961_v61 }
  0x3b   :  { %621 = vmatpush.bf16.msrb.mxu1 %v969_v62 }
  0x3c   :  { %634 = vmatpush.bf16.msrb.mxu2 %v977_v63 }
  0x3d   :  { %647 = vmatpush.bf16.msrb.mxu3 %v985_v0 }
  0x3e   :  { %609 = vmatpush.bf16.msrb.mxu0 %v960_v1 }
  0x3f   :  { %622 = vmatpush.bf16.msrb.mxu1 %v968_v2 }
  0x40   :  { %635 = vmatpush.bf16.msrb.mxu2 %v976_v3 }
  0x41   :  { %648 = vmatpush.bf16.msrb.mxu3 %v984_v4  ;;  %610 = vmatmul.bf16.vlgmr.msrb.gmra.mxu0 %v154_v5 }
  0x42   :  { %623 = vmatmul.bf16.vlgmr.msrb.gmra.mxu1 %v155_v6 }
  0x43   :  { %636 = vmatmul.bf16.vlgmr.msrb.gmra.mxu2 %v156_v7 }
  0x44   :  { %649 = vmatmul.bf16.vlgmr.msrb.gmra.mxu3 %v157_v8 }
  0x9e   :  { %v559_v9 = vpop.f32.mrf.mxu0 }
  0x9f   :  { %v572_v10 = vpop.f32.mrf.mxu1  ;;  %v560_v18 = vadd.f32 %v993_v15, %v559_v9 }
  0xa1   :  { %v573_v19 = vadd.f32 %v572_v10, %v560_v18 }
  0xa6   :  { %v585_v11 = vpop.f32.mrf.mxu2  ;;  %v561_v13 = vpop.f32.mrf.mxu0 }
  0xa7   :  { %v598_v12 = vpop.f32.mrf.mxu3  ;;  %v574_v14 = vpop.f32.mrf.mxu1  ;;  %v586_v20 = vadd.f32 %v585_v11, %v573_v19 }
  0xa9   :  { %v599_v21 = vadd.f32 %v598_v12, %v586_v20 }
  0xae   :  { %v587_v16 = vpop.f32.mrf.mxu2 }
  0xaf   :  { %v600_v17 = vpop.f32.mrf.mxu3 }
  0xbe   :  { %v611_v22 = vpop.f32.mrf.mxu0 }
  0xbf   :  { %v624_v23 = vpop.f32.mrf.mxu1  ;;  %v612_v24 = vadd.f32 %v611_v22, %v599_v21 }
  0xc1   :  { %v625_v25 = vadd.f32 %v624_v23, %v612_v24 }
  0xc6   :  { %v637_v26 = vpop.f32.mrf.mxu2  ;;  %v613_v29 = vpop.f32.mrf.mxu0 }
  0xc7   :  { %v650_v27 = vpop.f32.mrf.mxu3  ;;  %v638_v28 = vadd.f32 %v637_v26, %v625_v25  ;;  %v626_v30 = vpop.f32.mrf.mxu1 }
  0xc9   :  { %v651_v31 = vadd.f32 %v650_v27, %v638_v28 }
  0xcb   :  { %655 = vst.msk [vmem:[#allocation2] sm:$0x3] %vm654_vm0, %v651_v31 }
  0xcc   :  { %666 = dma.vmem_to_hbm [thread:$0]  %s662_s5, 32, %s664_s8, [#allocation3]  }
  0xce   :  { %v639_v32 = vpop.f32.mrf.mxu2 }
  0xcf   :  { %v652_v33 = vpop.f32.mrf.mxu3 }
  0xd0   :  { %1018 = dma.done.wait [#allocation3], 32  }
  0xd1   :  { %1019 = vsyncadd [#allocation3], 4294967264 }
  0xd2   :  { %671 = vsyncpa [#allocation3], 1 }

</bundles_post_ra>
